<compile_context>
chip_gen: v7x
topology: tpu7x:2x2x1
jax: 0.10.0
libtpu: 0.0.40
codegen_flags: <defaults>
</compile_context>

<pallas_src>
import functools

import jax
import jax.numpy as jnp
from jax.experimental import pallas as pl


# ----------------------------- static model config -----------------------------
# Encoder layers: (in_ch, out_ch, kernel_size, ignore_pool)
ENC_CFG = [(1, 8, 10, False), (8, 16, 10, False), (16, 32, 5, False), (32, 64, 5, True)]
# Decoder layers: (in_ch, out_ch, kernel_size); each followed by Upsample(x5, nearest)
DEC_CFG = [(64, 32, 5), (32, 16, 5), (16, 8, 10)]
FINAL_CFG = (8, 1, 10)          # Conv1d(8 -> 1, k=10, 'same') + Sigmoid
POOL_K = 5
UPS_S = 5
N_LAYERS = len(ENC_CFG) + len(DEC_CFG) + 1


# ------------------- in-kernel helpers (pure jnp on VMEM-resident values) -------------------

def _conv1d_same(h, w_flat, bias, *, B, Cin, K, L):
    """Conv1d(stride=1, padding='same') on a (Cin, B*L) activation via one im2col matmul.

    w_flat: (Cout, K*Cin), column index j*Cin + c  <->  torch w[o, c, j].
    bias  : (Cout, 1).
    Returns (Cout, B*L) f32.
    """
    # PyTorch 'same' padding: left = (K-1)//2, right = (K-1) - left (asymmetric for even K).
    left = (K - 1) // 2
    right = (K - 1) - left
    cols = []
    for b in range(B):
        seg = h[:, b * L:(b + 1) * L]                 # (Cin, L) — this batch's segment
        parts = []
        if left:
            parts.append(jnp.zeros((Cin, left), jnp.float32))
        parts.append(seg)
        if right:
            parts.append(jnp.zeros((Cin, right), jnp.float32))
        xp = jnp.concatenate(parts, axis=1)           # (Cin, L + K - 1), zero-padded
        # K shifted copies stacked along sublanes -> (K*Cin, L)
        cols.append(jnp.concatenate([xp[:, j:j + L] for j in range(K)], axis=0))
    slab = cols[0] if B == 1 else jnp.concatenate(cols, axis=1)   # (K*Cin, B*L)
    y = jnp.dot(w_flat, slab, preferred_element_type=jnp.float32)  # one MXU matmul / layer
    return y + bias                                                # bias broadcast over lanes


def _maxpool(h, *, k, BL):
    """nn.MaxPool1d(kernel=stride=k) along the lane axis of a (C, B*L) activation.

    Batch segment length L is a multiple of k, so no window crosses a batch boundary.
    """
    Lm = BL - (k - 1)
    m = h[:, 0:Lm]
    for j in range(1, k):                             # windowed max via shifted slices (VPU)
        m = jnp.maximum(m, h[:, j:j + Lm])
    Lo = BL // k
    rows = jax.lax.broadcasted_iota(jnp.int32, (Lm, Lo), 0)
    cols = jax.lax.broadcasted_iota(jnp.int32, (Lm, Lo), 1)
    sel = jnp.where(rows == cols * k, 1.0, 0.0)       # one-hot stride-k column selector
    return jnp.dot(m, sel, preferred_element_type=jnp.float32)


def _upsample_nearest(h, *, s, BL):
    """nn.Upsample(scale_factor=s, mode='nearest') along the lane axis of (C, B*L)."""
    rows = jax.lax.broadcasted_iota(jnp.int32, (BL, BL * s), 0)
    cols = jax.lax.broadcasted_iota(jnp.int32, (BL, BL * s), 1)
    d = cols - rows * s
    rep = jnp.where(jnp.logical_and(d >= 0, d < s), 1.0, 0.0)   # one-hot repeat matrix
    return jnp.dot(h, rep, preferred_element_type=jnp.float32)


# ----------------------------- fused forward kernel -----------------------------

def _fused_ae_kernel(x_ref, *refs, B, L0):
    """Entire ModConvAE forward for the whole batch in one kernel invocation.

    x_ref : (1, B*L0) input, batch folded into the lane axis.
    refs  : (w0, b0, ..., w7, b7, o_ref) — 8 conv layers' flattened weights/biases + output.
    o_ref : (1, B*L0) sigmoid output (lane-dense).
    """
    o_ref = refs[-1]
    wb = refs[:-1]

    h = x_ref[...]                      # (1, B*L0) f32; stays on-chip for the whole network
    L = L0
    idx = 0

    # ----- encoder: Conv1d + ReLU (+ Dropout = identity) [+ MaxPool1d(5)] -----
    for (cin, cout, k, ignore_pool) in ENC_CFG:
        w = wb[idx][...]
        bias = wb[idx + 1][...]
        idx += 2
        h = _conv1d_same(h, w, bias, B=B, Cin=cin, K=k, L=L)
        h = jnp.maximum(h, 0.0)         # ReLU
        if not ignore_pool:
            h = _maxpool(h, k=POOL_K, BL=B * L)
            L //= POOL_K

    # ----- nn.Flatten() + reshape(B, out_filt, latent // out_filt) -----
    # Row-major flatten of (C, L) per batch followed by reshape back to (C, latent//C)
    # is the identity on this layout, so there is nothing to do here.

    # ----- decoder: Conv1d + ReLU (+ Dropout = identity) + Upsample(x5, nearest) -----
    for (cin, cout, k) in DEC_CFG:
        w = wb[idx][...]
        bias = wb[idx + 1][...]
        idx += 2
        h = _conv1d_same(h, w, bias, B=B, Cin=cin, K=k, L=L)
        h = jnp.maximum(h, 0.0)         # ReLU
        h = _upsample_nearest(h, s=UPS_S, BL=B * L)
        L *= UPS_S

    # ----- final Conv1d(8 -> 1, k=10, 'same') + Sigmoid -----
    cin, cout, k = FINAL_CFG
    w = wb[idx][...]
    bias = wb[idx + 1][...]
    h = _conv1d_same(h, w, bias, B=B, Cin=cin, K=k, L=L)
    h = 1.0 / (1.0 + jnp.exp(-h))       # sigmoid: exp on EUP; one divide on a (1, B*L) tile
    o_ref[...] = h.astype(o_ref.dtype)


# ----------------------------- wrapper -----------------------------

@jax.jit
def mod_conv_ae_forward(params, x):
    """x: (B, 1, L) f32 -> (B, 1, L) f32. Single fused pallas_call for the whole network."""
    B, cin0, L0 = x.shape
    assert cin0 == 1
    assert L0 % (POOL_K ** 3) == 0, "length must round-trip through 3 pools / 3 upsamples"

    layers = list(params["enc"]) + list(params["dec"]) + [params["final"]]
    flat_args = [x.reshape(1, B * L0)]          # batch folded into the lane axis
    for (w, b) in layers:
        cout, cin, k = w.shape
        # (Cout, Cin, K) -> (Cout, K*Cin): lane-dense, matches the in-kernel im2col row order.
        flat_args.append(jnp.transpose(w, (0, 2, 1)).reshape(cout, k * cin))
        flat_args.append(b.reshape(cout, 1))

    y = pl.pallas_call(
        functools.partial(_fused_ae_kernel, B=B, L0=L0),
        out_shape=jax.ShapeDtypeStruct((1, B * L0), jnp.float32),
        # No grid / no BlockSpecs: one kernel invocation, every array is a single
        # whole-array VMEM block (total footprint << 1 MiB).
    )(*flat_args)
    return y.reshape(B, 1, L0)


# ----------------------------- parameter init (torch-like) -----------------------------

def _init_conv(key, cout, cin, k):
    kw, kb = jax.random.split(key)
    bound = 1.0 / float(cin * k) ** 0.5         # same scale as torch default Conv1d init
    w = jax.random.uniform(kw, (cout, cin, k), jnp.float32, -bound, bound)
    b = jax.random.uniform(kb, (cout,), jnp.float32, -bound, bound)
    return w, b


def init_params(key):
    keys = jax.random.split(key, N_LAYERS)
    params = {"enc": [], "dec": [], "final": None}
    i = 0
    for (cin, cout, k, _) in ENC_CFG:
        params["enc"].append(_init_conv(keys[i], cout, cin, k)); i += 1
    for (cin, cout, k) in DEC_CFG:
        params["dec"].append(_init_conv(keys[i], cout, cin, k)); i += 1
    cin, cout, k = FINAL_CFG
    params["final"] = _init_conv(keys[i], cout, cin, k)
    return params


# ----------------------------- main -----------------------------

if __name__ == "__main__":
    key = jax.random.PRNGKey(0)
    k_param, k_x = jax.random.split(key)

    params = init_params(k_param)

    # Small input: batch=2, 1 channel, length 250 (divisible by 5^3 so the AE round-trips).
    B, L = 2, 250
    x = jax.random.uniform(k_x, (B, 1, L), jnp.float32)

    y = mod_conv_ae_forward(params, x)
    y = jax.block_until_ready(y)

    assert y.shape == (B, 1, L), y.shape
    assert bool(jnp.all(jnp.isfinite(y)))
    assert bool(jnp.all((y >= 0.0) & (y <= 1.0)))   # sigmoid output range

    print("KERNEL_OK")
</pallas_src>

<mosaic_0001>
module attributes {stable_mosaic.version = 11 : i64} {
  func.func @_fused_ae_kernel(%arg0: memref<1x500xf32, #tpu.memory_space<vmem>>, %arg1: memref<8x10xf32, #tpu.memory_space<vmem>>, %arg2: memref<8x1xf32, #tpu.memory_space<vmem>>, %arg3: memref<16x80xf32, #tpu.memory_space<vmem>>, %arg4: memref<16x1xf32, #tpu.memory_space<vmem>>, %arg5: memref<32x80xf32, #tpu.memory_space<vmem>>, %arg6: memref<32x1xf32, #tpu.memory_space<vmem>>, %arg7: memref<64x160xf32, #tpu.memory_space<vmem>>, %arg8: memref<64x1xf32, #tpu.memory_space<vmem>>, %arg9: memref<32x320xf32, #tpu.memory_space<vmem>>, %arg10: memref<32x1xf32, #tpu.memory_space<vmem>>, %arg11: memref<16x160xf32, #tpu.memory_space<vmem>>, %arg12: memref<16x1xf32, #tpu.memory_space<vmem>>, %arg13: memref<8x160xf32, #tpu.memory_space<vmem>>, %arg14: memref<8x1xf32, #tpu.memory_space<vmem>>, %arg15: memref<1x80xf32, #tpu.memory_space<vmem>>, %arg16: memref<1x1xf32, #tpu.memory_space<vmem>>, %arg17: memref<1x500xf32, #tpu.memory_space<vmem>>) attributes {dimension_semantics = [], scalar_prefetch = 0 : i64, scratch_operands = 0 : i64, tpu.core_type = #tpu.core_type<tc>} {
    %c0 = arith.constant 0 : index
    %c0_0 = arith.constant 0 : index
    %0 = vector.load %arg0[%c0, %c0_0] : memref<1x500xf32, #tpu.memory_space<vmem>>, vector<1x500xf32>
    %c0_1 = arith.constant 0 : index
    %c0_2 = arith.constant 0 : index
    %1 = vector.load %arg1[%c0_1, %c0_2] : memref<8x10xf32, #tpu.memory_space<vmem>>, vector<8x10xf32>
    %c0_3 = arith.constant 0 : index
    %c0_4 = arith.constant 0 : index
    %2 = vector.load %arg2[%c0_3, %c0_4] : memref<8x1xf32, #tpu.memory_space<vmem>>, vector<8x1xf32>
    %3 = vector.extract_strided_slice %0 {offsets = [0, 0], sizes = [1, 250], strides = [1, 1]} : vector<1x500xf32> to vector<1x250xf32>
    %cst = arith.constant 0.000000e+00 : f32
    %4 = vector.broadcast %cst : f32 to vector<1x4xf32>
    %cst_5 = arith.constant 0.000000e+00 : f32
    %5 = vector.broadcast %cst_5 : f32 to vector<1x5xf32>
    %6 = tpu.concatenate %4, %3, %5 in 1 : vector<1x4xf32>, vector<1x250xf32>, vector<1x5xf32> -> vector<1x259xf32>
    %7 = vector.extract_strided_slice %6 {offsets = [0, 0], sizes = [1, 250], strides = [1, 1]} : vector<1x259xf32> to vector<1x250xf32>
    %8 = vector.extract_strided_slice %6 {offsets = [0, 1], sizes = [1, 250], strides = [1, 1]} : vector<1x259xf32> to vector<1x250xf32>
    %9 = vector.extract_strided_slice %6 {offsets = [0, 2], sizes = [1, 250], strides = [1, 1]} : vector<1x259xf32> to vector<1x250xf32>
    %10 = vector.extract_strided_slice %6 {offsets = [0, 3], sizes = [1, 250], strides = [1, 1]} : vector<1x259xf32> to vector<1x250xf32>
    %11 = vector.extract_strided_slice %6 {offsets = [0, 4], sizes = [1, 250], strides = [1, 1]} : vector<1x259xf32> to vector<1x250xf32>
    %12 = vector.extract_strided_slice %6 {offsets = [0, 5], sizes = [1, 250], strides = [1, 1]} : vector<1x259xf32> to vector<1x250xf32>
    %13 = vector.extract_strided_slice %6 {offsets = [0, 6], sizes = [1, 250], strides = [1, 1]} : vector<1x259xf32> to vector<1x250xf32>
    %14 = vector.extract_strided_slice %6 {offsets = [0, 7], sizes = [1, 250], strides = [1, 1]} : vector<1x259xf32> to vector<1x250xf32>
    %15 = vector.extract_strided_slice %6 {offsets = [0, 8], sizes = [1, 250], strides = [1, 1]} : vector<1x259xf32> to vector<1x250xf32>
    %16 = vector.extract_strided_slice %6 {offsets = [0, 9], sizes = [1, 250], strides = [1, 1]} : vector<1x259xf32> to vector<1x250xf32>
    %17 = tpu.concatenate %7, %8, %9, %10, %11, %12, %13, %14, %15, %16 in 0 : vector<1x250xf32>, vector<1x250xf32>, vector<1x250xf32>, vector<1x250xf32>, vector<1x250xf32>, vector<1x250xf32>, vector<1x250xf32>, vector<1x250xf32>, vector<1x250xf32>, vector<1x250xf32> -> vector<10x250xf32>
    %18 = vector.extract_strided_slice %0 {offsets = [0, 250], sizes = [1, 250], strides = [1, 1]} : vector<1x500xf32> to vector<1x250xf32>
    %cst_6 = arith.constant 0.000000e+00 : f32
    %19 = vector.broadcast %cst_6 : f32 to vector<1x4xf32>
    %cst_7 = arith.constant 0.000000e+00 : f32
    %20 = vector.broadcast %cst_7 : f32 to vector<1x5xf32>
    %21 = tpu.concatenate %19, %18, %20 in 1 : vector<1x4xf32>, vector<1x250xf32>, vector<1x5xf32> -> vector<1x259xf32>
    %22 = vector.extract_strided_slice %21 {offsets = [0, 0], sizes = [1, 250], strides = [1, 1]} : vector<1x259xf32> to vector<1x250xf32>
    %23 = vector.extract_strided_slice %21 {offsets = [0, 1], sizes = [1, 250], strides = [1, 1]} : vector<1x259xf32> to vector<1x250xf32>
    %24 = vector.extract_strided_slice %21 {offsets = [0, 2], sizes = [1, 250], strides = [1, 1]} : vector<1x259xf32> to vector<1x250xf32>
    %25 = vector.extract_strided_slice %21 {offsets = [0, 3], sizes = [1, 250], strides = [1, 1]} : vector<1x259xf32> to vector<1x250xf32>
    %26 = vector.extract_strided_slice %21 {offsets = [0, 4], sizes = [1, 250], strides = [1, 1]} : vector<1x259xf32> to vector<1x250xf32>
    %27 = vector.extract_strided_slice %21 {offsets = [0, 5], sizes = [1, 250], strides = [1, 1]} : vector<1x259xf32> to vector<1x250xf32>
    %28 = vector.extract_strided_slice %21 {offsets = [0, 6], sizes = [1, 250], strides = [1, 1]} : vector<1x259xf32> to vector<1x250xf32>
    %29 = vector.extract_strided_slice %21 {offsets = [0, 7], sizes = [1, 250], strides = [1, 1]} : vector<1x259xf32> to vector<1x250xf32>
    %30 = vector.extract_strided_slice %21 {offsets = [0, 8], sizes = [1, 250], strides = [1, 1]} : vector<1x259xf32> to vector<1x250xf32>
    %31 = vector.extract_strided_slice %21 {offsets = [0, 9], sizes = [1, 250], strides = [1, 1]} : vector<1x259xf32> to vector<1x250xf32>
    %32 = tpu.concatenate %22, %23, %24, %25, %26, %27, %28, %29, %30, %31 in 0 : vector<1x250xf32>, vector<1x250xf32>, vector<1x250xf32>, vector<1x250xf32>, vector<1x250xf32>, vector<1x250xf32>, vector<1x250xf32>, vector<1x250xf32>, vector<1x250xf32>, vector<1x250xf32> -> vector<10x250xf32>
    %33 = tpu.concatenate %17, %32 in 1 : vector<10x250xf32>, vector<10x250xf32> -> vector<10x500xf32>
    %cst_8 = arith.constant dense<0.000000e+00> : vector<8x500xf32>
    %34 = tpu.matmul %1, %33, %cst_8 {dimension_numbers = #tpu.dot_dimension_numbers<[1], [0], [0], [1], [0, 0, 1, 1], [], []>} : vector<8x10xf32>, vector<10x500xf32>, vector<8x500xf32> -> vector<8x500xf32>
    %35 = vector.broadcast %2 : vector<8x1xf32> to vector<8x500xf32>
    %36 = arith.addf %34, %35 : vector<8x500xf32>
    %cst_9 = arith.constant 0.000000e+00 : f32
    %37 = vector.broadcast %cst_9 : f32 to vector<8x500xf32>
    %38 = arith.maximumf %36, %37 : vector<8x500xf32>
    %39 = vector.extract_strided_slice %38 {offsets = [0, 0], sizes = [8, 496], strides = [1, 1]} : vector<8x500xf32> to vector<8x496xf32>
    %40 = vector.extract_strided_slice %38 {offsets = [0, 1], sizes = [8, 496], strides = [1, 1]} : vector<8x500xf32> to vector<8x496xf32>
    %41 = arith.maximumf %39, %40 : vector<8x496xf32>
    %42 = vector.extract_strided_slice %38 {offsets = [0, 2], sizes = [8, 496], strides = [1, 1]} : vector<8x500xf32> to vector<8x496xf32>
    %43 = arith.maximumf %41, %42 : vector<8x496xf32>
    %44 = vector.extract_strided_slice %38 {offsets = [0, 3], sizes = [8, 496], strides = [1, 1]} : vector<8x500xf32> to vector<8x496xf32>
    %45 = arith.maximumf %43, %44 : vector<8x496xf32>
    %46 = vector.extract_strided_slice %38 {offsets = [0, 4], sizes = [8, 496], strides = [1, 1]} : vector<8x500xf32> to vector<8x496xf32>
    %47 = arith.maximumf %45, %46 : vector<8x496xf32>
    %48 = tpu.iota {dimensions = array<i32: 0>} : vector<496x100xi32>
    %49 = tpu.iota {dimensions = array<i32: 1>} : vector<496x100xi32>
    %c5_i32 = arith.constant 5 : i32
    %50 = vector.broadcast %c5_i32 : i32 to vector<496x100xi32>
    %51 = arith.muli %49, %50 : vector<496x100xi32>
    %52 = arith.cmpi eq, %48, %51 : vector<496x100xi32>
    %cst_10 = arith.constant 1.000000e+00 : f32
    %cst_11 = arith.constant 0.000000e+00 : f32
    %53 = vector.broadcast %cst_10 : f32 to vector<496x100xf32>
    %54 = vector.broadcast %cst_11 : f32 to vector<496x100xf32>
    %55 = arith.select %52, %53, %54 : vector<496x100xi1>, vector<496x100xf32>
    %cst_12 = arith.constant dense<0.000000e+00> : vector<8x100xf32>
    %56 = tpu.matmul %47, %55, %cst_12 {dimension_numbers = #tpu.dot_dimension_numbers<[1], [0], [0], [1], [0, 0, 1, 1], [], []>} : vector<8x496xf32>, vector<496x100xf32>, vector<8x100xf32> -> vector<8x100xf32>
    %c0_13 = arith.constant 0 : index
    %c0_14 = arith.constant 0 : index
    %57 = vector.load %arg3[%c0_13, %c0_14] : memref<16x80xf32, #tpu.memory_space<vmem>>, vector<16x80xf32>
    %c0_15 = arith.constant 0 : index
    %c0_16 = arith.constant 0 : index
    %58 = vector.load %arg4[%c0_15, %c0_16] : memref<16x1xf32, #tpu.memory_space<vmem>>, vector<16x1xf32>
    %59 = vector.extract_strided_slice %56 {offsets = [0, 0], sizes = [8, 50], strides = [1, 1]} : vector<8x100xf32> to vector<8x50xf32>
    %cst_17 = arith.constant 0.000000e+00 : f32
    %60 = vector.broadcast %cst_17 : f32 to vector<8x4xf32>
    %cst_18 = arith.constant 0.000000e+00 : f32
    %61 = vector.broadcast %cst_18 : f32 to vector<8x5xf32>
    %62 = tpu.concatenate %60, %59, %61 in 1 : vector<8x4xf32>, vector<8x50xf32>, vector<8x5xf32> -> vector<8x59xf32>
    %63 = vector.extract_strided_slice %62 {offsets = [0, 0], sizes = [8, 50], strides = [1, 1]} : vector<8x59xf32> to vector<8x50xf32>
    %64 = vector.extract_strided_slice %62 {offsets = [0, 1], sizes = [8, 50], strides = [1, 1]} : vector<8x59xf32> to vector<8x50xf32>
    %65 = vector.extract_strided_slice %62 {offsets = [0, 2], sizes = [8, 50], strides = [1, 1]} : vector<8x59xf32> to vector<8x50xf32>
    %66 = vector.extract_strided_slice %62 {offsets = [0, 3], sizes = [8, 50], strides = [1, 1]} : vector<8x59xf32> to vector<8x50xf32>
    %67 = vector.extract_strided_slice %62 {offsets = [0, 4], sizes = [8, 50], strides = [1, 1]} : vector<8x59xf32> to vector<8x50xf32>
    %68 = vector.extract_strided_slice %62 {offsets = [0, 5], sizes = [8, 50], strides = [1, 1]} : vector<8x59xf32> to vector<8x50xf32>
    %69 = vector.extract_strided_slice %62 {offsets = [0, 6], sizes = [8, 50], strides = [1, 1]} : vector<8x59xf32> to vector<8x50xf32>
    %70 = vector.extract_strided_slice %62 {offsets = [0, 7], sizes = [8, 50], strides = [1, 1]} : vector<8x59xf32> to vector<8x50xf32>
    %71 = vector.extract_strided_slice %62 {offsets = [0, 8], sizes = [8, 50], strides = [1, 1]} : vector<8x59xf32> to vector<8x50xf32>
    %72 = vector.extract_strided_slice %62 {offsets = [0, 9], sizes = [8, 50], strides = [1, 1]} : vector<8x59xf32> to vector<8x50xf32>
    %73 = tpu.concatenate %63, %64, %65, %66, %67, %68, %69, %70, %71, %72 in 0 : vector<8x50xf32>, vector<8x50xf32>, vector<8x50xf32>, vector<8x50xf32>, vector<8x50xf32>, vector<8x50xf32>, vector<8x50xf32>, vector<8x50xf32>, vector<8x50xf32>, vector<8x50xf32> -> vector<80x50xf32>
    %74 = vector.extract_strided_slice %56 {offsets = [0, 50], sizes = [8, 50], strides = [1, 1]} : vector<8x100xf32> to vector<8x50xf32>
    %cst_19 = arith.constant 0.000000e+00 : f32
    %75 = vector.broadcast %cst_19 : f32 to vector<8x4xf32>
    %cst_20 = arith.constant 0.000000e+00 : f32
    %76 = vector.broadcast %cst_20 : f32 to vector<8x5xf32>
    %77 = tpu.concatenate %75, %74, %76 in 1 : vector<8x4xf32>, vector<8x50xf32>, vector<8x5xf32> -> vector<8x59xf32>
    %78 = vector.extract_strided_slice %77 {offsets = [0, 0], sizes = [8, 50], strides = [1, 1]} : vector<8x59xf32> to vector<8x50xf32>
    %79 = vector.extract_strided_slice %77 {offsets = [0, 1], sizes = [8, 50], strides = [1, 1]} : vector<8x59xf32> to vector<8x50xf32>
    %80 = vector.extract_strided_slice %77 {offsets = [0, 2], sizes = [8, 50], strides = [1, 1]} : vector<8x59xf32> to vector<8x50xf32>
    %81 = vector.extract_strided_slice %77 {offsets = [0, 3], sizes = [8, 50], strides = [1, 1]} : vector<8x59xf32> to vector<8x50xf32>
    %82 = vector.extract_strided_slice %77 {offsets = [0, 4], sizes = [8, 50], strides = [1, 1]} : vector<8x59xf32> to vector<8x50xf32>
    %83 = vector.extract_strided_slice %77 {offsets = [0, 5], sizes = [8, 50], strides = [1, 1]} : vector<8x59xf32> to vector<8x50xf32>
    %84 = vector.extract_strided_slice %77 {offsets = [0, 6], sizes = [8, 50], strides = [1, 1]} : vector<8x59xf32> to vector<8x50xf32>
    %85 = vector.extract_strided_slice %77 {offsets = [0, 7], sizes = [8, 50], strides = [1, 1]} : vector<8x59xf32> to vector<8x50xf32>
    %86 = vector.extract_strided_slice %77 {offsets = [0, 8], sizes = [8, 50], strides = [1, 1]} : vector<8x59xf32> to vector<8x50xf32>
    %87 = vector.extract_strided_slice %77 {offsets = [0, 9], sizes = [8, 50], strides = [1, 1]} : vector<8x59xf32> to vector<8x50xf32>
    %88 = tpu.concatenate %78, %79, %80, %81, %82, %83, %84, %85, %86, %87 in 0 : vector<8x50xf32>, vector<8x50xf32>, vector<8x50xf32>, vector<8x50xf32>, vector<8x50xf32>, vector<8x50xf32>, vector<8x50xf32>, vector<8x50xf32>, vector<8x50xf32>, vector<8x50xf32> -> vector<80x50xf32>
    %89 = tpu.concatenate %73, %88 in 1 : vector<80x50xf32>, vector<80x50xf32> -> vector<80x100xf32>
    %cst_21 = arith.constant dense<0.000000e+00> : vector<16x100xf32>
    %90 = tpu.matmul %57, %89, %cst_21 {dimension_numbers = #tpu.dot_dimension_numbers<[1], [0], [0], [1], [0, 0, 1, 1], [], []>} : vector<16x80xf32>, vector<80x100xf32>, vector<16x100xf32> -> vector<16x100xf32>
    %91 = vector.broadcast %58 : vector<16x1xf32> to vector<16x100xf32>
    %92 = arith.addf %90, %91 : vector<16x100xf32>
    %cst_22 = arith.constant 0.000000e+00 : f32
    %93 = vector.broadcast %cst_22 : f32 to vector<16x100xf32>
    %94 = arith.maximumf %92, %93 : vector<16x100xf32>
    %95 = vector.extract_strided_slice %94 {offsets = [0, 0], sizes = [16, 96], strides = [1, 1]} : vector<16x100xf32> to vector<16x96xf32>
    %96 = vector.extract_strided_slice %94 {offsets = [0, 1], sizes = [16, 96], strides = [1, 1]} : vector<16x100xf32> to vector<16x96xf32>
    %97 = arith.maximumf %95, %96 : vector<16x96xf32>
    %98 = vector.extract_strided_slice %94 {offsets = [0, 2], sizes = [16, 96], strides = [1, 1]} : vector<16x100xf32> to vector<16x96xf32>
    %99 = arith.maximumf %97, %98 : vector<16x96xf32>
    %100 = vector.extract_strided_slice %94 {offsets = [0, 3], sizes = [16, 96], strides = [1, 1]} : vector<16x100xf32> to vector<16x96xf32>
    %101 = arith.maximumf %99, %100 : vector<16x96xf32>
    %102 = vector.extract_strided_slice %94 {offsets = [0, 4], sizes = [16, 96], strides = [1, 1]} : vector<16x100xf32> to vector<16x96xf32>
    %103 = arith.maximumf %101, %102 : vector<16x96xf32>
    %104 = tpu.iota {dimensions = array<i32: 0>} : vector<96x20xi32>
    %105 = tpu.iota {dimensions = array<i32: 1>} : vector<96x20xi32>
    %c5_i32_23 = arith.constant 5 : i32
    %106 = vector.broadcast %c5_i32_23 : i32 to vector<96x20xi32>
    %107 = arith.muli %105, %106 : vector<96x20xi32>
    %108 = arith.cmpi eq, %104, %107 : vector<96x20xi32>
    %cst_24 = arith.constant 1.000000e+00 : f32
    %cst_25 = arith.constant 0.000000e+00 : f32
    %109 = vector.broadcast %cst_24 : f32 to vector<96x20xf32>
    %110 = vector.broadcast %cst_25 : f32 to vector<96x20xf32>
    %111 = arith.select %108, %109, %110 : vector<96x20xi1>, vector<96x20xf32>
    %cst_26 = arith.constant dense<0.000000e+00> : vector<16x20xf32>
    %112 = tpu.matmul %103, %111, %cst_26 {dimension_numbers = #tpu.dot_dimension_numbers<[1], [0], [0], [1], [0, 0, 1, 1], [], []>} : vector<16x96xf32>, vector<96x20xf32>, vector<16x20xf32> -> vector<16x20xf32>
    %c0_27 = arith.constant 0 : index
    %c0_28 = arith.constant 0 : index
    %113 = vector.load %arg5[%c0_27, %c0_28] : memref<32x80xf32, #tpu.memory_space<vmem>>, vector<32x80xf32>
    %c0_29 = arith.constant 0 : index
    %c0_30 = arith.constant 0 : index
    %114 = vector.load %arg6[%c0_29, %c0_30] : memref<32x1xf32, #tpu.memory_space<vmem>>, vector<32x1xf32>
    %115 = vector.extract_strided_slice %112 {offsets = [0, 0], sizes = [16, 10], strides = [1, 1]} : vector<16x20xf32> to vector<16x10xf32>
    %cst_31 = arith.constant 0.000000e+00 : f32
    %116 = vector.broadcast %cst_31 : f32 to vector<16x2xf32>
    %cst_32 = arith.constant 0.000000e+00 : f32
    %117 = vector.broadcast %cst_32 : f32 to vector<16x2xf32>
    %118 = tpu.concatenate %116, %115, %117 in 1 : vector<16x2xf32>, vector<16x10xf32>, vector<16x2xf32> -> vector<16x14xf32>
    %119 = vector.extract_strided_slice %118 {offsets = [0, 0], sizes = [16, 10], strides = [1, 1]} : vector<16x14xf32> to vector<16x10xf32>
    %120 = vector.extract_strided_slice %118 {offsets = [0, 1], sizes = [16, 10], strides = [1, 1]} : vector<16x14xf32> to vector<16x10xf32>
    %121 = vector.extract_strided_slice %118 {offsets = [0, 2], sizes = [16, 10], strides = [1, 1]} : vector<16x14xf32> to vector<16x10xf32>
    %122 = vector.extract_strided_slice %118 {offsets = [0, 3], sizes = [16, 10], strides = [1, 1]} : vector<16x14xf32> to vector<16x10xf32>
    %123 = vector.extract_strided_slice %118 {offsets = [0, 4], sizes = [16, 10], strides = [1, 1]} : vector<16x14xf32> to vector<16x10xf32>
    %124 = tpu.concatenate %119, %120, %121, %122, %123 in 0 : vector<16x10xf32>, vector<16x10xf32>, vector<16x10xf32>, vector<16x10xf32>, vector<16x10xf32> -> vector<80x10xf32>
    %125 = vector.extract_strided_slice %112 {offsets = [0, 10], sizes = [16, 10], strides = [1, 1]} : vector<16x20xf32> to vector<16x10xf32>
    %cst_33 = arith.constant 0.000000e+00 : f32
    %126 = vector.broadcast %cst_33 : f32 to vector<16x2xf32>
    %cst_34 = arith.constant 0.000000e+00 : f32
    %127 = vector.broadcast %cst_34 : f32 to vector<16x2xf32>
    %128 = tpu.concatenate %126, %125, %127 in 1 : vector<16x2xf32>, vector<16x10xf32>, vector<16x2xf32> -> vector<16x14xf32>
    %129 = vector.extract_strided_slice %128 {offsets = [0, 0], sizes = [16, 10], strides = [1, 1]} : vector<16x14xf32> to vector<16x10xf32>
    %130 = vector.extract_strided_slice %128 {offsets = [0, 1], sizes = [16, 10], strides = [1, 1]} : vector<16x14xf32> to vector<16x10xf32>
    %131 = vector.extract_strided_slice %128 {offsets = [0, 2], sizes = [16, 10], strides = [1, 1]} : vector<16x14xf32> to vector<16x10xf32>
    %132 = vector.extract_strided_slice %128 {offsets = [0, 3], sizes = [16, 10], strides = [1, 1]} : vector<16x14xf32> to vector<16x10xf32>
    %133 = vector.extract_strided_slice %128 {offsets = [0, 4], sizes = [16, 10], strides = [1, 1]} : vector<16x14xf32> to vector<16x10xf32>
    %134 = tpu.concatenate %129, %130, %131, %132, %133 in 0 : vector<16x10xf32>, vector<16x10xf32>, vector<16x10xf32>, vector<16x10xf32>, vector<16x10xf32> -> vector<80x10xf32>
    %135 = tpu.concatenate %124, %134 in 1 : vector<80x10xf32>, vector<80x10xf32> -> vector<80x20xf32>
    %cst_35 = arith.constant dense<0.000000e+00> : vector<32x20xf32>
    %136 = tpu.matmul %113, %135, %cst_35 {dimension_numbers = #tpu.dot_dimension_numbers<[1], [0], [0], [1], [0, 0, 1, 1], [], []>} : vector<32x80xf32>, vector<80x20xf32>, vector<32x20xf32> -> vector<32x20xf32>
    %137 = vector.broadcast %114 : vector<32x1xf32> to vector<32x20xf32>
    %138 = arith.addf %136, %137 : vector<32x20xf32>
    %cst_36 = arith.constant 0.000000e+00 : f32
    %139 = vector.broadcast %cst_36 : f32 to vector<32x20xf32>
    %140 = arith.maximumf %138, %139 : vector<32x20xf32>
    %141 = vector.extract_strided_slice %140 {offsets = [0, 0], sizes = [32, 16], strides = [1, 1]} : vector<32x20xf32> to vector<32x16xf32>
    %142 = vector.extract_strided_slice %140 {offsets = [0, 1], sizes = [32, 16], strides = [1, 1]} : vector<32x20xf32> to vector<32x16xf32>
    %143 = arith.maximumf %141, %142 : vector<32x16xf32>
    %144 = vector.extract_strided_slice %140 {offsets = [0, 2], sizes = [32, 16], strides = [1, 1]} : vector<32x20xf32> to vector<32x16xf32>
    %145 = arith.maximumf %143, %144 : vector<32x16xf32>
    %146 = vector.extract_strided_slice %140 {offsets = [0, 3], sizes = [32, 16], strides = [1, 1]} : vector<32x20xf32> to vector<32x16xf32>
    %147 = arith.maximumf %145, %146 : vector<32x16xf32>
    %148 = vector.extract_strided_slice %140 {offsets = [0, 4], sizes = [32, 16], strides = [1, 1]} : vector<32x20xf32> to vector<32x16xf32>
    %149 = arith.maximumf %147, %148 : vector<32x16xf32>
    %150 = tpu.iota {dimensions = array<i32: 0>} : vector<16x4xi32>
    %151 = tpu.iota {dimensions = array<i32: 1>} : vector<16x4xi32>
    %c5_i32_37 = arith.constant 5 : i32
    %152 = vector.broadcast %c5_i32_37 : i32 to vector<16x4xi32>
    %153 = arith.muli %151, %152 : vector<16x4xi32>
    %154 = arith.cmpi eq, %150, %153 : vector<16x4xi32>
    %cst_38 = arith.constant 1.000000e+00 : f32
    %cst_39 = arith.constant 0.000000e+00 : f32
    %155 = vector.broadcast %cst_38 : f32 to vector<16x4xf32>
    %156 = vector.broadcast %cst_39 : f32 to vector<16x4xf32>
    %157 = arith.select %154, %155, %156 : vector<16x4xi1>, vector<16x4xf32>
    %cst_40 = arith.constant dense<0.000000e+00> : vector<32x4xf32>
    %158 = tpu.matmul %149, %157, %cst_40 {dimension_numbers = #tpu.dot_dimension_numbers<[1], [0], [0], [1], [0, 0, 1, 1], [], []>} : vector<32x16xf32>, vector<16x4xf32>, vector<32x4xf32> -> vector<32x4xf32>
    %c0_41 = arith.constant 0 : index
    %c0_42 = arith.constant 0 : index
    %159 = vector.load %arg7[%c0_41, %c0_42] : memref<64x160xf32, #tpu.memory_space<vmem>>, vector<64x160xf32>
    %c0_43 = arith.constant 0 : index
    %c0_44 = arith.constant 0 : index
    %160 = vector.load %arg8[%c0_43, %c0_44] : memref<64x1xf32, #tpu.memory_space<vmem>>, vector<64x1xf32>
    %161 = vector.extract_strided_slice %158 {offsets = [0, 0], sizes = [32, 2], strides = [1, 1]} : vector<32x4xf32> to vector<32x2xf32>
    %cst_45 = arith.constant 0.000000e+00 : f32
    %162 = vector.broadcast %cst_45 : f32 to vector<32x2xf32>
    %cst_46 = arith.constant 0.000000e+00 : f32
    %163 = vector.broadcast %cst_46 : f32 to vector<32x2xf32>
    %164 = tpu.concatenate %162, %161, %163 in 1 : vector<32x2xf32>, vector<32x2xf32>, vector<32x2xf32> -> vector<32x6xf32>
    %165 = vector.extract_strided_slice %164 {offsets = [0, 0], sizes = [32, 2], strides = [1, 1]} : vector<32x6xf32> to vector<32x2xf32>
    %166 = vector.extract_strided_slice %164 {offsets = [0, 1], sizes = [32, 2], strides = [1, 1]} : vector<32x6xf32> to vector<32x2xf32>
    %167 = vector.extract_strided_slice %164 {offsets = [0, 2], sizes = [32, 2], strides = [1, 1]} : vector<32x6xf32> to vector<32x2xf32>
    %168 = vector.extract_strided_slice %164 {offsets = [0, 3], sizes = [32, 2], strides = [1, 1]} : vector<32x6xf32> to vector<32x2xf32>
    %169 = vector.extract_strided_slice %164 {offsets = [0, 4], sizes = [32, 2], strides = [1, 1]} : vector<32x6xf32> to vector<32x2xf32>
    %170 = tpu.concatenate %165, %166, %167, %168, %169 in 0 : vector<32x2xf32>, vector<32x2xf32>, vector<32x2xf32>, vector<32x2xf32>, vector<32x2xf32> -> vector<160x2xf32>
    %171 = vector.extract_strided_slice %158 {offsets = [0, 2], sizes = [32, 2], strides = [1, 1]} : vector<32x4xf32> to vector<32x2xf32>
    %cst_47 = arith.constant 0.000000e+00 : f32
    %172 = vector.broadcast %cst_47 : f32 to vector<32x2xf32>
    %cst_48 = arith.constant 0.000000e+00 : f32
    %173 = vector.broadcast %cst_48 : f32 to vector<32x2xf32>
    %174 = tpu.concatenate %172, %171, %173 in 1 : vector<32x2xf32>, vector<32x2xf32>, vector<32x2xf32> -> vector<32x6xf32>
    %175 = vector.extract_strided_slice %174 {offsets = [0, 0], sizes = [32, 2], strides = [1, 1]} : vector<32x6xf32> to vector<32x2xf32>
    %176 = vector.extract_strided_slice %174 {offsets = [0, 1], sizes = [32, 2], strides = [1, 1]} : vector<32x6xf32> to vector<32x2xf32>
    %177 = vector.extract_strided_slice %174 {offsets = [0, 2], sizes = [32, 2], strides = [1, 1]} : vector<32x6xf32> to vector<32x2xf32>
    %178 = vector.extract_strided_slice %174 {offsets = [0, 3], sizes = [32, 2], strides = [1, 1]} : vector<32x6xf32> to vector<32x2xf32>
    %179 = vector.extract_strided_slice %174 {offsets = [0, 4], sizes = [32, 2], strides = [1, 1]} : vector<32x6xf32> to vector<32x2xf32>
    %180 = tpu.concatenate %175, %176, %177, %178, %179 in 0 : vector<32x2xf32>, vector<32x2xf32>, vector<32x2xf32>, vector<32x2xf32>, vector<32x2xf32> -> vector<160x2xf32>
    %181 = tpu.concatenate %170, %180 in 1 : vector<160x2xf32>, vector<160x2xf32> -> vector<160x4xf32>
    %cst_49 = arith.constant dense<0.000000e+00> : vector<64x4xf32>
    %182 = tpu.matmul %159, %181, %cst_49 {dimension_numbers = #tpu.dot_dimension_numbers<[1], [0], [0], [1], [0, 0, 1, 1], [], []>} : vector<64x160xf32>, vector<160x4xf32>, vector<64x4xf32> -> vector<64x4xf32>
    %183 = vector.broadcast %160 : vector<64x1xf32> to vector<64x4xf32>
    %184 = arith.addf %182, %183 : vector<64x4xf32>
    %cst_50 = arith.constant 0.000000e+00 : f32
    %185 = vector.broadcast %cst_50 : f32 to vector<64x4xf32>
    %186 = arith.maximumf %184, %185 : vector<64x4xf32>
    %c0_51 = arith.constant 0 : index
    %c0_52 = arith.constant 0 : index
    %187 = vector.load %arg9[%c0_51, %c0_52] : memref<32x320xf32, #tpu.memory_space<vmem>>, vector<32x320xf32>
    %c0_53 = arith.constant 0 : index
    %c0_54 = arith.constant 0 : index
    %188 = vector.load %arg10[%c0_53, %c0_54] : memref<32x1xf32, #tpu.memory_space<vmem>>, vector<32x1xf32>
    %189 = vector.extract_strided_slice %186 {offsets = [0, 0], sizes = [64, 2], strides = [1, 1]} : vector<64x4xf32> to vector<64x2xf32>
    %cst_55 = arith.constant 0.000000e+00 : f32
    %190 = vector.broadcast %cst_55 : f32 to vector<64x2xf32>
    %cst_56 = arith.constant 0.000000e+00 : f32
    %191 = vector.broadcast %cst_56 : f32 to vector<64x2xf32>
    %192 = tpu.concatenate %190, %189, %191 in 1 : vector<64x2xf32>, vector<64x2xf32>, vector<64x2xf32> -> vector<64x6xf32>
    %193 = vector.extract_strided_slice %192 {offsets = [0, 0], sizes = [64, 2], strides = [1, 1]} : vector<64x6xf32> to vector<64x2xf32>
    %194 = vector.extract_strided_slice %192 {offsets = [0, 1], sizes = [64, 2], strides = [1, 1]} : vector<64x6xf32> to vector<64x2xf32>
    %195 = vector.extract_strided_slice %192 {offsets = [0, 2], sizes = [64, 2], strides = [1, 1]} : vector<64x6xf32> to vector<64x2xf32>
    %196 = vector.extract_strided_slice %192 {offsets = [0, 3], sizes = [64, 2], strides = [1, 1]} : vector<64x6xf32> to vector<64x2xf32>
    %197 = vector.extract_strided_slice %192 {offsets = [0, 4], sizes = [64, 2], strides = [1, 1]} : vector<64x6xf32> to vector<64x2xf32>
    %198 = tpu.concatenate %193, %194, %195, %196, %197 in 0 : vector<64x2xf32>, vector<64x2xf32>, vector<64x2xf32>, vector<64x2xf32>, vector<64x2xf32> -> vector<320x2xf32>
    %199 = vector.extract_strided_slice %186 {offsets = [0, 2], sizes = [64, 2], strides = [1, 1]} : vector<64x4xf32> to vector<64x2xf32>
    %cst_57 = arith.constant 0.000000e+00 : f32
    %200 = vector.broadcast %cst_57 : f32 to vector<64x2xf32>
    %cst_58 = arith.constant 0.000000e+00 : f32
    %201 = vector.broadcast %cst_58 : f32 to vector<64x2xf32>
    %202 = tpu.concatenate %200, %199, %201 in 1 : vector<64x2xf32>, vector<64x2xf32>, vector<64x2xf32> -> vector<64x6xf32>
    %203 = vector.extract_strided_slice %202 {offsets = [0, 0], sizes = [64, 2], strides = [1, 1]} : vector<64x6xf32> to vector<64x2xf32>
    %204 = vector.extract_strided_slice %202 {offsets = [0, 1], sizes = [64, 2], strides = [1, 1]} : vector<64x6xf32> to vector<64x2xf32>
    %205 = vector.extract_strided_slice %202 {offsets = [0, 2], sizes = [64, 2], strides = [1, 1]} : vector<64x6xf32> to vector<64x2xf32>
    %206 = vector.extract_strided_slice %202 {offsets = [0, 3], sizes = [64, 2], strides = [1, 1]} : vector<64x6xf32> to vector<64x2xf32>
    %207 = vector.extract_strided_slice %202 {offsets = [0, 4], sizes = [64, 2], strides = [1, 1]} : vector<64x6xf32> to vector<64x2xf32>
    %208 = tpu.concatenate %203, %204, %205, %206, %207 in 0 : vector<64x2xf32>, vector<64x2xf32>, vector<64x2xf32>, vector<64x2xf32>, vector<64x2xf32> -> vector<320x2xf32>
    %209 = tpu.concatenate %198, %208 in 1 : vector<320x2xf32>, vector<320x2xf32> -> vector<320x4xf32>
    %cst_59 = arith.constant dense<0.000000e+00> : vector<32x4xf32>
    %210 = tpu.matmul %187, %209, %cst_59 {dimension_numbers = #tpu.dot_dimension_numbers<[1], [0], [0], [1], [0, 0, 1, 1], [], []>} : vector<32x320xf32>, vector<320x4xf32>, vector<32x4xf32> -> vector<32x4xf32>
    %211 = vector.broadcast %188 : vector<32x1xf32> to vector<32x4xf32>
    %212 = arith.addf %210, %211 : vector<32x4xf32>
    %cst_60 = arith.constant 0.000000e+00 : f32
    %213 = vector.broadcast %cst_60 : f32 to vector<32x4xf32>
    %214 = arith.maximumf %212, %213 : vector<32x4xf32>
    %215 = tpu.iota {dimensions = array<i32: 0>} : vector<4x20xi32>
    %216 = tpu.iota {dimensions = array<i32: 1>} : vector<4x20xi32>
    %c5_i32_61 = arith.constant 5 : i32
    %217 = vector.broadcast %c5_i32_61 : i32 to vector<4x20xi32>
    %218 = arith.muli %215, %217 : vector<4x20xi32>
    %219 = arith.subi %216, %218 : vector<4x20xi32>
    %c0_i32 = arith.constant 0 : i32
    %220 = vector.broadcast %c0_i32 : i32 to vector<4x20xi32>
    %221 = arith.cmpi sge, %219, %220 : vector<4x20xi32>
    %c5_i32_62 = arith.constant 5 : i32
    %222 = vector.broadcast %c5_i32_62 : i32 to vector<4x20xi32>
    %223 = arith.cmpi slt, %219, %222 : vector<4x20xi32>
    %224 = arith.andi %221, %223 : vector<4x20xi1>
    %cst_63 = arith.constant 1.000000e+00 : f32
    %cst_64 = arith.constant 0.000000e+00 : f32
    %225 = vector.broadcast %cst_63 : f32 to vector<4x20xf32>
    %226 = vector.broadcast %cst_64 : f32 to vector<4x20xf32>
    %227 = arith.select %224, %225, %226 : vector<4x20xi1>, vector<4x20xf32>
    %cst_65 = arith.constant dense<0.000000e+00> : vector<32x20xf32>
    %228 = tpu.matmul %214, %227, %cst_65 {dimension_numbers = #tpu.dot_dimension_numbers<[1], [0], [0], [1], [0, 0, 1, 1], [], []>} : vector<32x4xf32>, vector<4x20xf32>, vector<32x20xf32> -> vector<32x20xf32>
    %c0_66 = arith.constant 0 : index
    %c0_67 = arith.constant 0 : index
    %229 = vector.load %arg11[%c0_66, %c0_67] : memref<16x160xf32, #tpu.memory_space<vmem>>, vector<16x160xf32>
    %c0_68 = arith.constant 0 : index
    %c0_69 = arith.constant 0 : index
    %230 = vector.load %arg12[%c0_68, %c0_69] : memref<16x1xf32, #tpu.memory_space<vmem>>, vector<16x1xf32>
    %231 = vector.extract_strided_slice %228 {offsets = [0, 0], sizes = [32, 10], strides = [1, 1]} : vector<32x20xf32> to vector<32x10xf32>
    %cst_70 = arith.constant 0.000000e+00 : f32
    %232 = vector.broadcast %cst_70 : f32 to vector<32x2xf32>
    %cst_71 = arith.constant 0.000000e+00 : f32
    %233 = vector.broadcast %cst_71 : f32 to vector<32x2xf32>
    %234 = tpu.concatenate %232, %231, %233 in 1 : vector<32x2xf32>, vector<32x10xf32>, vector<32x2xf32> -> vector<32x14xf32>
    %235 = vector.extract_strided_slice %234 {offsets = [0, 0], sizes = [32, 10], strides = [1, 1]} : vector<32x14xf32> to vector<32x10xf32>
    %236 = vector.extract_strided_slice %234 {offsets = [0, 1], sizes = [32, 10], strides = [1, 1]} : vector<32x14xf32> to vector<32x10xf32>
    %237 = vector.extract_strided_slice %234 {offsets = [0, 2], sizes = [32, 10], strides = [1, 1]} : vector<32x14xf32> to vector<32x10xf32>
    %238 = vector.extract_strided_slice %234 {offsets = [0, 3], sizes = [32, 10], strides = [1, 1]} : vector<32x14xf32> to vector<32x10xf32>
    %239 = vector.extract_strided_slice %234 {offsets = [0, 4], sizes = [32, 10], strides = [1, 1]} : vector<32x14xf32> to vector<32x10xf32>
    %240 = tpu.concatenate %235, %236, %237, %238, %239 in 0 : vector<32x10xf32>, vector<32x10xf32>, vector<32x10xf32>, vector<32x10xf32>, vector<32x10xf32> -> vector<160x10xf32>
    %241 = vector.extract_strided_slice %228 {offsets = [0, 10], sizes = [32, 10], strides = [1, 1]} : vector<32x20xf32> to vector<32x10xf32>
    %cst_72 = arith.constant 0.000000e+00 : f32
    %242 = vector.broadcast %cst_72 : f32 to vector<32x2xf32>
    %cst_73 = arith.constant 0.000000e+00 : f32
    %243 = vector.broadcast %cst_73 : f32 to vector<32x2xf32>
    %244 = tpu.concatenate %242, %241, %243 in 1 : vector<32x2xf32>, vector<32x10xf32>, vector<32x2xf32> -> vector<32x14xf32>
    %245 = vector.extract_strided_slice %244 {offsets = [0, 0], sizes = [32, 10], strides = [1, 1]} : vector<32x14xf32> to vector<32x10xf32>
    %246 = vector.extract_strided_slice %244 {offsets = [0, 1], sizes = [32, 10], strides = [1, 1]} : vector<32x14xf32> to vector<32x10xf32>
    %247 = vector.extract_strided_slice %244 {offsets = [0, 2], sizes = [32, 10], strides = [1, 1]} : vector<32x14xf32> to vector<32x10xf32>
    %248 = vector.extract_strided_slice %244 {offsets = [0, 3], sizes = [32, 10], strides = [1, 1]} : vector<32x14xf32> to vector<32x10xf32>
    %249 = vector.extract_strided_slice %244 {offsets = [0, 4], sizes = [32, 10], strides = [1, 1]} : vector<32x14xf32> to vector<32x10xf32>
    %250 = tpu.concatenate %245, %246, %247, %248, %249 in 0 : vector<32x10xf32>, vector<32x10xf32>, vector<32x10xf32>, vector<32x10xf32>, vector<32x10xf32> -> vector<160x10xf32>
    %251 = tpu.concatenate %240, %250 in 1 : vector<160x10xf32>, vector<160x10xf32> -> vector<160x20xf32>
    %cst_74 = arith.constant dense<0.000000e+00> : vector<16x20xf32>
    %252 = tpu.matmul %229, %251, %cst_74 {dimension_numbers = #tpu.dot_dimension_numbers<[1], [0], [0], [1], [0, 0, 1, 1], [], []>} : vector<16x160xf32>, vector<160x20xf32>, vector<16x20xf32> -> vector<16x20xf32>
    %253 = vector.broadcast %230 : vector<16x1xf32> to vector<16x20xf32>
    %254 = arith.addf %252, %253 : vector<16x20xf32>
    %cst_75 = arith.constant 0.000000e+00 : f32
    %255 = vector.broadcast %cst_75 : f32 to vector<16x20xf32>
    %256 = arith.maximumf %254, %255 : vector<16x20xf32>
    %257 = tpu.iota {dimensions = array<i32: 0>} : vector<20x100xi32>
    %258 = tpu.iota {dimensions = array<i32: 1>} : vector<20x100xi32>
    %c5_i32_76 = arith.constant 5 : i32
    %259 = vector.broadcast %c5_i32_76 : i32 to vector<20x100xi32>
    %260 = arith.muli %257, %259 : vector<20x100xi32>
    %261 = arith.subi %258, %260 : vector<20x100xi32>
    %c0_i32_77 = arith.constant 0 : i32
    %262 = vector.broadcast %c0_i32_77 : i32 to vector<20x100xi32>
    %263 = arith.cmpi sge, %261, %262 : vector<20x100xi32>
    %c5_i32_78 = arith.constant 5 : i32
    %264 = vector.broadcast %c5_i32_78 : i32 to vector<20x100xi32>
    %265 = arith.cmpi slt, %261, %264 : vector<20x100xi32>
    %266 = arith.andi %263, %265 : vector<20x100xi1>
    %cst_79 = arith.constant 1.000000e+00 : f32
    %cst_80 = arith.constant 0.000000e+00 : f32
    %267 = vector.broadcast %cst_79 : f32 to vector<20x100xf32>
    %268 = vector.broadcast %cst_80 : f32 to vector<20x100xf32>
    %269 = arith.select %266, %267, %268 : vector<20x100xi1>, vector<20x100xf32>
    %cst_81 = arith.constant dense<0.000000e+00> : vector<16x100xf32>
    %270 = tpu.matmul %256, %269, %cst_81 {dimension_numbers = #tpu.dot_dimension_numbers<[1], [0], [0], [1], [0, 0, 1, 1], [], []>} : vector<16x20xf32>, vector<20x100xf32>, vector<16x100xf32> -> vector<16x100xf32>
    %c0_82 = arith.constant 0 : index
    %c0_83 = arith.constant 0 : index
    %271 = vector.load %arg13[%c0_82, %c0_83] : memref<8x160xf32, #tpu.memory_space<vmem>>, vector<8x160xf32>
    %c0_84 = arith.constant 0 : index
    %c0_85 = arith.constant 0 : index
    %272 = vector.load %arg14[%c0_84, %c0_85] : memref<8x1xf32, #tpu.memory_space<vmem>>, vector<8x1xf32>
    %273 = vector.extract_strided_slice %270 {offsets = [0, 0], sizes = [16, 50], strides = [1, 1]} : vector<16x100xf32> to vector<16x50xf32>
    %cst_86 = arith.constant 0.000000e+00 : f32
    %274 = vector.broadcast %cst_86 : f32 to vector<16x4xf32>
    %cst_87 = arith.constant 0.000000e+00 : f32
    %275 = vector.broadcast %cst_87 : f32 to vector<16x5xf32>
    %276 = tpu.concatenate %274, %273, %275 in 1 : vector<16x4xf32>, vector<16x50xf32>, vector<16x5xf32> -> vector<16x59xf32>
    %277 = vector.extract_strided_slice %276 {offsets = [0, 0], sizes = [16, 50], strides = [1, 1]} : vector<16x59xf32> to vector<16x50xf32>
    %278 = vector.extract_strided_slice %276 {offsets = [0, 1], sizes = [16, 50], strides = [1, 1]} : vector<16x59xf32> to vector<16x50xf32>
    %279 = vector.extract_strided_slice %276 {offsets = [0, 2], sizes = [16, 50], strides = [1, 1]} : vector<16x59xf32> to vector<16x50xf32>
    %280 = vector.extract_strided_slice %276 {offsets = [0, 3], sizes = [16, 50], strides = [1, 1]} : vector<16x59xf32> to vector<16x50xf32>
    %281 = vector.extract_strided_slice %276 {offsets = [0, 4], sizes = [16, 50], strides = [1, 1]} : vector<16x59xf32> to vector<16x50xf32>
    %282 = vector.extract_strided_slice %276 {offsets = [0, 5], sizes = [16, 50], strides = [1, 1]} : vector<16x59xf32> to vector<16x50xf32>
    %283 = vector.extract_strided_slice %276 {offsets = [0, 6], sizes = [16, 50], strides = [1, 1]} : vector<16x59xf32> to vector<16x50xf32>
    %284 = vector.extract_strided_slice %276 {offsets = [0, 7], sizes = [16, 50], strides = [1, 1]} : vector<16x59xf32> to vector<16x50xf32>
    %285 = vector.extract_strided_slice %276 {offsets = [0, 8], sizes = [16, 50], strides = [1, 1]} : vector<16x59xf32> to vector<16x50xf32>
    %286 = vector.extract_strided_slice %276 {offsets = [0, 9], sizes = [16, 50], strides = [1, 1]} : vector<16x59xf32> to vector<16x50xf32>
    %287 = tpu.concatenate %277, %278, %279, %280, %281, %282, %283, %284, %285, %286 in 0 : vector<16x50xf32>, vector<16x50xf32>, vector<16x50xf32>, vector<16x50xf32>, vector<16x50xf32>, vector<16x50xf32>, vector<16x50xf32>, vector<16x50xf32>, vector<16x50xf32>, vector<16x50xf32> -> vector<160x50xf32>
    %288 = vector.extract_strided_slice %270 {offsets = [0, 50], sizes = [16, 50], strides = [1, 1]} : vector<16x100xf32> to vector<16x50xf32>
    %cst_88 = arith.constant 0.000000e+00 : f32
    %289 = vector.broadcast %cst_88 : f32 to vector<16x4xf32>
    %cst_89 = arith.constant 0.000000e+00 : f32
    %290 = vector.broadcast %cst_89 : f32 to vector<16x5xf32>
    %291 = tpu.concatenate %289, %288, %290 in 1 : vector<16x4xf32>, vector<16x50xf32>, vector<16x5xf32> -> vector<16x59xf32>
    %292 = vector.extract_strided_slice %291 {offsets = [0, 0], sizes = [16, 50], strides = [1, 1]} : vector<16x59xf32> to vector<16x50xf32>
    %293 = vector.extract_strided_slice %291 {offsets = [0, 1], sizes = [16, 50], strides = [1, 1]} : vector<16x59xf32> to vector<16x50xf32>
    %294 = vector.extract_strided_slice %291 {offsets = [0, 2], sizes = [16, 50], strides = [1, 1]} : vector<16x59xf32> to vector<16x50xf32>
    %295 = vector.extract_strided_slice %291 {offsets = [0, 3], sizes = [16, 50], strides = [1, 1]} : vector<16x59xf32> to vector<16x50xf32>
    %296 = vector.extract_strided_slice %291 {offsets = [0, 4], sizes = [16, 50], strides = [1, 1]} : vector<16x59xf32> to vector<16x50xf32>
    %297 = vector.extract_strided_slice %291 {offsets = [0, 5], sizes = [16, 50], strides = [1, 1]} : vector<16x59xf32> to vector<16x50xf32>
    %298 = vector.extract_strided_slice %291 {offsets = [0, 6], sizes = [16, 50], strides = [1, 1]} : vector<16x59xf32> to vector<16x50xf32>
    %299 = vector.extract_strided_slice %291 {offsets = [0, 7], sizes = [16, 50], strides = [1, 1]} : vector<16x59xf32> to vector<16x50xf32>
    %300 = vector.extract_strided_slice %291 {offsets = [0, 8], sizes = [16, 50], strides = [1, 1]} : vector<16x59xf32> to vector<16x50xf32>
    %301 = vector.extract_strided_slice %291 {offsets = [0, 9], sizes = [16, 50], strides = [1, 1]} : vector<16x59xf32> to vector<16x50xf32>
    %302 = tpu.concatenate %292, %293, %294, %295, %296, %297, %298, %299, %300, %301 in 0 : vector<16x50xf32>, vector<16x50xf32>, vector<16x50xf32>, vector<16x50xf32>, vector<16x50xf32>, vector<16x50xf32>, vector<16x50xf32>, vector<16x50xf32>, vector<16x50xf32>, vector<16x50xf32> -> vector<160x50xf32>
    %303 = tpu.concatenate %287, %302 in 1 : vector<160x50xf32>, vector<160x50xf32> -> vector<160x100xf32>
    %cst_90 = arith.constant dense<0.000000e+00> : vector<8x100xf32>
    %304 = tpu.matmul %271, %303, %cst_90 {dimension_numbers = #tpu.dot_dimension_numbers<[1], [0], [0], [1], [0, 0, 1, 1], [], []>} : vector<8x160xf32>, vector<160x100xf32>, vector<8x100xf32> -> vector<8x100xf32>
    %305 = vector.broadcast %272 : vector<8x1xf32> to vector<8x100xf32>
    %306 = arith.addf %304, %305 : vector<8x100xf32>
    %cst_91 = arith.constant 0.000000e+00 : f32
    %307 = vector.broadcast %cst_91 : f32 to vector<8x100xf32>
    %308 = arith.maximumf %306, %307 : vector<8x100xf32>
    %309 = tpu.iota {dimensions = array<i32: 0>} : vector<100x500xi32>
    %310 = tpu.iota {dimensions = array<i32: 1>} : vector<100x500xi32>
    %c5_i32_92 = arith.constant 5 : i32
    %311 = vector.broadcast %c5_i32_92 : i32 to vector<100x500xi32>
    %312 = arith.muli %309, %311 : vector<100x500xi32>
    %313 = arith.subi %310, %312 : vector<100x500xi32>
    %c0_i32_93 = arith.constant 0 : i32
    %314 = vector.broadcast %c0_i32_93 : i32 to vector<100x500xi32>
    %315 = arith.cmpi sge, %313, %314 : vector<100x500xi32>
    %c5_i32_94 = arith.constant 5 : i32
    %316 = vector.broadcast %c5_i32_94 : i32 to vector<100x500xi32>
    %317 = arith.cmpi slt, %313, %316 : vector<100x500xi32>
    %318 = arith.andi %315, %317 : vector<100x500xi1>
    %cst_95 = arith.constant 1.000000e+00 : f32
    %cst_96 = arith.constant 0.000000e+00 : f32
    %319 = vector.broadcast %cst_95 : f32 to vector<100x500xf32>
    %320 = vector.broadcast %cst_96 : f32 to vector<100x500xf32>
    %321 = arith.select %318, %319, %320 : vector<100x500xi1>, vector<100x500xf32>
    %cst_97 = arith.constant dense<0.000000e+00> : vector<8x500xf32>
    %322 = tpu.matmul %308, %321, %cst_97 {dimension_numbers = #tpu.dot_dimension_numbers<[1], [0], [0], [1], [0, 0, 1, 1], [], []>} : vector<8x100xf32>, vector<100x500xf32>, vector<8x500xf32> -> vector<8x500xf32>
    %c0_98 = arith.constant 0 : index
    %c0_99 = arith.constant 0 : index
    %323 = vector.load %arg15[%c0_98, %c0_99] : memref<1x80xf32, #tpu.memory_space<vmem>>, vector<1x80xf32>
    %c0_100 = arith.constant 0 : index
    %c0_101 = arith.constant 0 : index
    %324 = vector.load %arg16[%c0_100, %c0_101] : memref<1x1xf32, #tpu.memory_space<vmem>>, vector<1x1xf32>
    %325 = vector.extract_strided_slice %322 {offsets = [0, 0], sizes = [8, 250], strides = [1, 1]} : vector<8x500xf32> to vector<8x250xf32>
    %cst_102 = arith.constant 0.000000e+00 : f32
    %326 = vector.broadcast %cst_102 : f32 to vector<8x4xf32>
    %cst_103 = arith.constant 0.000000e+00 : f32
    %327 = vector.broadcast %cst_103 : f32 to vector<8x5xf32>
    %328 = tpu.concatenate %326, %325, %327 in 1 : vector<8x4xf32>, vector<8x250xf32>, vector<8x5xf32> -> vector<8x259xf32>
    %329 = vector.extract_strided_slice %328 {offsets = [0, 0], sizes = [8, 250], strides = [1, 1]} : vector<8x259xf32> to vector<8x250xf32>
    %330 = vector.extract_strided_slice %328 {offsets = [0, 1], sizes = [8, 250], strides = [1, 1]} : vector<8x259xf32> to vector<8x250xf32>
    %331 = vector.extract_strided_slice %328 {offsets = [0, 2], sizes = [8, 250], strides = [1, 1]} : vector<8x259xf32> to vector<8x250xf32>
    %332 = vector.extract_strided_slice %328 {offsets = [0, 3], sizes = [8, 250], strides = [1, 1]} : vector<8x259xf32> to vector<8x250xf32>
    %333 = vector.extract_strided_slice %328 {offsets = [0, 4], sizes = [8, 250], strides = [1, 1]} : vector<8x259xf32> to vector<8x250xf32>
    %334 = vector.extract_strided_slice %328 {offsets = [0, 5], sizes = [8, 250], strides = [1, 1]} : vector<8x259xf32> to vector<8x250xf32>
    %335 = vector.extract_strided_slice %328 {offsets = [0, 6], sizes = [8, 250], strides = [1, 1]} : vector<8x259xf32> to vector<8x250xf32>
    %336 = vector.extract_strided_slice %328 {offsets = [0, 7], sizes = [8, 250], strides = [1, 1]} : vector<8x259xf32> to vector<8x250xf32>
    %337 = vector.extract_strided_slice %328 {offsets = [0, 8], sizes = [8, 250], strides = [1, 1]} : vector<8x259xf32> to vector<8x250xf32>
    %338 = vector.extract_strided_slice %328 {offsets = [0, 9], sizes = [8, 250], strides = [1, 1]} : vector<8x259xf32> to vector<8x250xf32>
    %339 = tpu.concatenate %329, %330, %331, %332, %333, %334, %335, %336, %337, %338 in 0 : vector<8x250xf32>, vector<8x250xf32>, vector<8x250xf32>, vector<8x250xf32>, vector<8x250xf32>, vector<8x250xf32>, vector<8x250xf32>, vector<8x250xf32>, vector<8x250xf32>, vector<8x250xf32> -> vector<80x250xf32>
    %340 = vector.extract_strided_slice %322 {offsets = [0, 250], sizes = [8, 250], strides = [1, 1]} : vector<8x500xf32> to vector<8x250xf32>
    %cst_104 = arith.constant 0.000000e+00 : f32
    %341 = vector.broadcast %cst_104 : f32 to vector<8x4xf32>
    %cst_105 = arith.constant 0.000000e+00 : f32
    %342 = vector.broadcast %cst_105 : f32 to vector<8x5xf32>
    %343 = tpu.concatenate %341, %340, %342 in 1 : vector<8x4xf32>, vector<8x250xf32>, vector<8x5xf32> -> vector<8x259xf32>
    %344 = vector.extract_strided_slice %343 {offsets = [0, 0], sizes = [8, 250], strides = [1, 1]} : vector<8x259xf32> to vector<8x250xf32>
    %345 = vector.extract_strided_slice %343 {offsets = [0, 1], sizes = [8, 250], strides = [1, 1]} : vector<8x259xf32> to vector<8x250xf32>
    %346 = vector.extract_strided_slice %343 {offsets = [0, 2], sizes = [8, 250], strides = [1, 1]} : vector<8x259xf32> to vector<8x250xf32>
    %347 = vector.extract_strided_slice %343 {offsets = [0, 3], sizes = [8, 250], strides = [1, 1]} : vector<8x259xf32> to vector<8x250xf32>
    %348 = vector.extract_strided_slice %343 {offsets = [0, 4], sizes = [8, 250], strides = [1, 1]} : vector<8x259xf32> to vector<8x250xf32>
    %349 = vector.extract_strided_slice %343 {offsets = [0, 5], sizes = [8, 250], strides = [1, 1]} : vector<8x259xf32> to vector<8x250xf32>
    %350 = vector.extract_strided_slice %343 {offsets = [0, 6], sizes = [8, 250], strides = [1, 1]} : vector<8x259xf32> to vector<8x250xf32>
    %351 = vector.extract_strided_slice %343 {offsets = [0, 7], sizes = [8, 250], strides = [1, 1]} : vector<8x259xf32> to vector<8x250xf32>
    %352 = vector.extract_strided_slice %343 {offsets = [0, 8], sizes = [8, 250], strides = [1, 1]} : vector<8x259xf32> to vector<8x250xf32>
    %353 = vector.extract_strided_slice %343 {offsets = [0, 9], sizes = [8, 250], strides = [1, 1]} : vector<8x259xf32> to vector<8x250xf32>
    %354 = tpu.concatenate %344, %345, %346, %347, %348, %349, %350, %351, %352, %353 in 0 : vector<8x250xf32>, vector<8x250xf32>, vector<8x250xf32>, vector<8x250xf32>, vector<8x250xf32>, vector<8x250xf32>, vector<8x250xf32>, vector<8x250xf32>, vector<8x250xf32>, vector<8x250xf32> -> vector<80x250xf32>
    %355 = tpu.concatenate %339, %354 in 1 : vector<80x250xf32>, vector<80x250xf32> -> vector<80x500xf32>
    %cst_106 = arith.constant dense<0.000000e+00> : vector<1x500xf32>
    %356 = tpu.matmul %323, %355, %cst_106 {dimension_numbers = #tpu.dot_dimension_numbers<[1], [0], [0], [1], [0, 0, 1, 1], [], []>} : vector<1x80xf32>, vector<80x500xf32>, vector<1x500xf32> -> vector<1x500xf32>
    %357 = vector.broadcast %324 : vector<1x1xf32> to vector<1x500xf32>
    %358 = arith.addf %356, %357 : vector<1x500xf32>
    %cst_107 = arith.constant 0.000000e+00 : f32
    %359 = vector.broadcast %cst_107 : f32 to vector<1x500xf32>
    %360 = arith.subf %359, %358 : vector<1x500xf32>
    %361 = math.exp %360 : vector<1x500xf32>
    %cst_108 = arith.constant 1.000000e+00 : f32
    %362 = vector.broadcast %cst_108 : f32 to vector<1x500xf32>
    %363 = arith.addf %362, %361 : vector<1x500xf32>
    %cst_109 = arith.constant 1.000000e+00 : f32
    %364 = vector.broadcast %cst_109 : f32 to vector<1x500xf32>
    %365 = arith.divf %364, %363 : vector<1x500xf32>
    %c0_110 = arith.constant 0 : index
    %c0_111 = arith.constant 0 : index
    %366 = vector.load %arg17[%c0_110, %c0_111] : memref<1x500xf32, #tpu.memory_space<vmem>>, vector<1x500xf32>
    tpu.vector_store %arg17[%c0_110, %c0_111], %365 {strides = array<i32>} : memref<1x500xf32, #tpu.memory_space<vmem>>, vector<1x500xf32>,
    return
  }
}

</mosaic_0001>

<bundles_post_ra>
// kernel: mod_conv_ae_forward.1
= control target key start
LH: loop header
LB: loop body
LE: loop exit
PB: predicated region body
PF: predicated region fallthrough
CT: control target
= control target key end

     0   :  { %v62_v0 = vlaneseq  ;;  %s6281_s27 = smov 10   ;;  %s6282_s28 = smov 4   ;;  %v6283_v13 = vmov 0.0   ;;  %vm8164_vm0 = vcmask 80896   ;;  %vm8163_vm1 = vcmask 31744   ;;  %s8145_s0 = inlined_call_operand.vmem [shape: f32[1,500], index: 0, kind: input, shape index: {}]   ;;  %s8146_s2 = inlined_call_operand.vmem [shape: f32[8,1], index: 2, kind: input, shape index: {}]   ;;  %s8147_s1 = inlined_call_operand.vmem [shape: f32[8,10], index: 1, kind: input, shape index: {}]   ;;  %s8148_s3 = inlined_call_operand.vmem [shape: f32[16,80], index: 3, kind: input, shape index: {}]   ;;  %s8149_s4 = inlined_call_operand.vmem [shape: f32[16,1], index: 4, kind: input, shape index: {}]   ;;  %s8150_s6 = inlined_call_operand.vmem [shape: f32[32,1], index: 6, kind: input, shape index: {}]   ;;  %s8151_s5 = inlined_call_operand.vmem [shape: f32[32,80], index: 5, kind: input, shape index: {}]   ;;  %s8152_s7 = inlined_call_operand.vmem [shape: f32[64,160], index: 7, kind: input, shape index: {}]   ;;  %s8153_s8 = inlined_call_operand.vmem [shape: f32[64,1], index: 8, kind: input, shape index: {}]   ;;  %s8154_s9 = inlined_call_operand.vmem [shape: f32[32,320], index: 9, kind: input, shape index: {}]   ;;  %s8155_s10 = inlined_call_operand.vmem [shape: f32[32,1], index: 10, kind: input, shape index: {}]   ;;  %s8156_s12 = inlined_call_operand.vmem [shape: f32[16,1], index: 12, kind: input, shape index: {}]   ;;  %s8157_s11 = inlined_call_operand.vmem [shape: f32[16,160], index: 11, kind: input, shape index: {}]   ;;  %s8158_s14 = inlined_call_operand.vmem [shape: f32[8,1], index: 14, kind: input, shape index: {}]   ;;  %s8159_s13 = inlined_call_operand.vmem [shape: f32[8,160], index: 13, kind: input, shape index: {}]   ;;  %s8160_s16 = inlined_call_operand.<no memory space> [shape: f32[1,1], index: 16, kind: input, shape index: {}]   ;;  %s8161_s15 = inlined_call_operand.vmem [shape: f32[1,80], index: 15, kind: input, shape index: {}]   ;;  %s8162_s17 = inlined_call_operand.vmem [shape: f32[1,500], index: 17, kind: output, shape index: {}]  }
   0x1   :  { %8199 = sst [smem:[#allocation3_spill]] %s8145_s0  ;;  %424 = vmatprep.mubr.f32.mxu1 %v6283_v13  ;;  %vm8175_vm2 = vcmask 1031168   ;;  %s6284_s29 = smov 120   ;;  %v145_v47 = vrot.slane %v6283_v13, 1  ;;  %v168_v51 = vrot.slane %v6283_v13, 7  ;;  %vm8174_vm3 = vcmask 1039360  }
   0x2   :  { %8200 = sst [smem:[#allocation4_spill]] %s8146_s2  ;;  %v6392_v1 = vshrl.u32 %v62_v0, 7  ;;  %s8201_s26 = sld [smem:[#allocation3_spill]]  ;;  %vm180_vm4 = vcmask 1040384   ;;  %vm183_vm5 = vcmask 1041408   ;;  %vm8173_vm6 = vcmask 1022976  }
   0x3   :  { %s6285_s0 = smov 127   ;;  %s6286_s30 = smov 126   ;;  %vm186_vm7 = vcmask 1042432   ;;  %vm8172_vm8 = vcmask 1014784   ;;  %vm8171_vm9 = vcmask 1043456   ;;  %vm8170_vm10 = vcmask 1006592  }
   0x4   :  { %v68_v3 = vsub.s32 1, %v6392_v1  ;;  %v205_v4 = vsub.s32 2, %v6392_v1  ;;  %v64_v5 = vsub.s32 0, %v6392_v1  ;;  %v209_v8 = vsub.s32 3, %v6392_v1  ;;  %s6287_s18 = smov 125   ;;  %s6288_s19 = smov 124  }
   0x5   :  { %s8180_s2 = smov 123   ;;  %s6290_s20 = smov 122   ;;  %vm192_vm11 = vcmask 1044480   ;;  %vm8169_vm12 = vcmask 998400   ;;  %vm8168_vm13 = vcmask 990208   ;;  %vm195_vm14 = vcmask 1045504  }
   0x6   :  { %s8178_s21 = smov 121   ;;  %s8182_s22 = smov 119   ;;  %vm8166_vm15 = vcmask 973824  }
   0x7   :  { %s8202_s25 = sld [smem:[#allocation4_spill]]  ;;  %s8184_s24 = smov 50  }
   0x8   :  { %v58_v2 = vld [vmem:[%s8201_s26] sm:$0xf]  ;;  %s8304_s26 = smov 50   ;;  %s8305_s23 = smov 119  }
   0x9   :  { %v69_v6 = vrot.slane %v58_v2, %v68_v3  ;;  %v206_v7 = vrot.slane %v58_v2, %v205_v4  ;;  %v65_v9 = vrot.slane %v58_v2, %v64_v5  ;;  %v210_v12 = vrot.slane %v58_v2, %v209_v8 }
   0xb   :  { %v5178_v10 = vpack.i.bf16 %v206_v7, %v69_v6  ;;  %v5183_v11 = vpack.i.bf16 %v69_v6, %v65_v9 }
   0xd   :  { %5179 = vrot.lane.b32.xlu0 %v5178_v10, %s6281_s27  ;;  %5184 = vrot.lane.b32.xlu1 %v5183_v11, %s6282_s28 }
  0x11   :  { %215 = vrot.lane.b32.xlu0 %v210_v12, %s6281_s27 }
  0x7f   :  { %v5180_v14 = vpop.permute.xlu0 %5179  ;;  %v5185_v35 = vpop.permute.xlu1 %5184 }
  0x80   :  { %v5182_v15 = vunpack.i.h.bf16 %v5180_v14  ;;  %v5181_v16 = vunpack.i.l.bf16 %v5180_v14  ;;  %v5187_v39 = vunpack.i.h.bf16 %v5185_v35  ;;  %v5186_v43 = vunpack.i.l.bf16 %v5185_v35 }
  0x82   :  { %v218_v17 = vsel %vm8164_vm0, %v5181_v16, %v5182_v15  ;;  %v75_v48 = vsel %vm8163_vm1, %v5186_v43, %v5187_v39  ;;  %v6442_v49 = vsel %vm8163_vm1, 0.0, %v5186_v43 }
  0x83   :  { %v6409_v18 = vsel %vm8163_vm1, 0.0, %v218_v17  ;;  %v216_v19 = vpop.permute.xlu0 %215  ;;  %v6445_v50 = vsel %vm8175_vm2, %v75_v48, 0.0  ;;  %v83_v52 = vrot.slane %v6442_v49, 7  ;;  %v93_v55 = vrot.slane %v6442_v49, 6 }
  0x84   :  { %v219_v20 = vsel %vm8164_vm0, %v5182_v15, %v216_v19  ;;  %v226_v23 = vrot.slane %v6409_v18, 7  ;;  %v235_v27 = vrot.slane %v6409_v18, 6  ;;  %v244_v30 = vrot.slane %v6409_v18, 5 }
  0x85   :  { %v6413_v21 = vsel %vm8175_vm2, %v219_v20, 0.0  ;;  %v253_v33 = vrot.slane %v6409_v18, 4  ;;  %v262_v37 = vrot.slane %v6409_v18, 3  ;;  %v271_v41 = vrot.slane %v6409_v18, 2 }
  0x86   :  { %v5188_v22 = vpack.i.bf16 %v6413_v21, %v6409_v18  ;;  %v227_v24 = vrot.slane %v6413_v21, 7  ;;  %v236_v25 = vrot.slane %v6413_v21, 6  ;;  %v245_v28 = vrot.slane %v6413_v21, 5 }
  0x87   :  { %v254_v31 = vrot.slane %v6413_v21, 4  ;;  %v263_v34 = vrot.slane %v6413_v21, 3  ;;  %v272_v38 = vrot.slane %v6413_v21, 2  ;;  %v281_v42 = vrot.slane %v6413_v21, 1 }
  0x88   :  { %5189 = vrot.lane.b32.xlu0 %v5188_v22, %s6284_s29  ;;  %v5193_v26 = vpack.i.bf16 %v227_v24, %v226_v23  ;;  %v5198_v29 = vpack.i.bf16 %v236_v25, %v235_v27  ;;  %v5203_v32 = vpack.i.bf16 %v245_v28, %v244_v30  ;;  %v280_v45 = vrot.slane %v6409_v18, 1 }
  0x89   :  { %v5208_v36 = vpack.i.bf16 %v254_v31, %v253_v33  ;;  %v5213_v40 = vpack.i.bf16 %v263_v34, %v262_v37  ;;  %v5218_v44 = vpack.i.bf16 %v272_v38, %v271_v41  ;;  %v84_v53 = vrot.slane %v6445_v50, 7 }
  0x8a   :  { %5194 = vrot.lane.b32.xlu1 %v5193_v26, %s6285_s0  ;;  %v5223_v46 = vpack.i.bf16 %v281_v42, %v280_v45  ;;  %v5233_v54 = vpack.i.bf16 %v6442_v49, %v6445_v50  ;;  %v94_v56 = vrot.slane %v6445_v50, 6  ;;  %v102_v58 = vrot.slane %v6442_v49, 5 }
  0x8b   :  { %v5238_v57 = vpack.i.bf16 %v83_v52, %v84_v53  ;;  %v103_v59 = vrot.slane %v6445_v50, 5  ;;  %v112_v61 = vrot.slane %v6442_v49, 4  ;;  %v113_v62 = vrot.slane %v6445_v50, 4 }
  0x8c   :  { %5199 = vrot.lane.b32.xlu0 %v5198_v29, %s6286_s30  ;;  %v5243_v60 = vpack.i.bf16 %v93_v55, %v94_v56  ;;  %v122_v2 = vrot.slane %v6442_v49, 3  ;;  %v123_v3 = vrot.slane %v6445_v50, 3  ;;  %v132_v6 = vrot.slane %v6442_v49, 2 }
  0x8d   :  { %v5248_v63 = vpack.i.bf16 %v102_v58, %v103_v59  ;;  %v5253_v4 = vpack.i.bf16 %v112_v61, %v113_v62  ;;  %v133_v7 = vrot.slane %v6445_v50, 2  ;;  %v143_v9 = vrot.slane %v6442_v49, 1 }
  0x8e   :  { %5204 = vrot.lane.b32.xlu1 %v5203_v32, %s6287_s18  ;;  %v5258_v8 = vpack.i.bf16 %v122_v2, %v123_v3  ;;  %v144_v10 = vrot.slane %v6445_v50, 1  ;;  %vm8167_vm1 = vcmask 982016   ;;  %vm198_vm0 = vcmask 1046528  }
  0x8f   :  { %v5263_v11 = vpack.i.bf16 %v132_v6, %v133_v7 }
  0x90   :  { %5209 = vrot.lane.b32.xlu0 %v5208_v36, %s6288_s19  ;;  %v5268_v12 = vpack.i.bf16 %v143_v9, %v144_v10 }
  0x92   :  { %5214 = vrot.lane.b32.xlu1 %v5213_v40, %s8180_s2 }
  0x94   :  { %5219 = vrot.lane.b32.xlu0 %v5218_v44, %s6290_s20 }
  0x96   :  { %5224 = vrot.lane.b32.xlu1 %v5223_v46, %s8178_s21 }
  0x98   :  { %150 = vrot.lane.b32.xlu0 %v145_v47, %s8178_s21 }
  0x9a   :  { %5229 = vrot.lane.b32.xlu1 %v5193_v26, %s8182_s22 }
  0x9c   :  { %173 = vrot.lane.b32.xlu0 %v168_v51, %s8182_s22 }
  0x9e   :  { %161 = vrot.lane.b32.xlu1 %v6283_v13, %s6284_s29 }
  0xa0   :  { %5234 = vrot.lane.b32.xlu0 %v5233_v54, %s6284_s29 }
  0xa2   :  { %5239 = vrot.lane.b32.xlu1 %v5238_v57, %s6285_s0 }
  0xa4   :  { %5244 = vrot.lane.b32.xlu0 %v5243_v60, %s6286_s30 }
  0xa6   :  { %5249 = vrot.lane.b32.xlu1 %v5248_v63, %s6287_s18 }
  0xa8   :  { %5254 = vrot.lane.b32.xlu0 %v5253_v4, %s6288_s19 }
  0xaa   :  { %5259 = vrot.lane.b32.xlu1 %v5258_v8, %s8180_s2 }
  0xac   :  { %5264 = vrot.lane.b32.xlu0 %v5263_v11, %s6290_s20 }
  0xae   :  { %5269 = vrot.lane.b32.xlu1 %v5268_v12, %s8178_s21 }
  0xb2   :  { %5274 = vrot.lane.b32.xlu1 %v5238_v57, %s8182_s22 }
  0xfa   :  { %v6478_v14 = vpop.permute.xlu0 %5189 }
  0xfb   :  { %v5192_v53 = vunpack.i.h.bf16 %v6478_v14  ;;  %v5191_v54 = vunpack.i.l.bf16 %v6478_v14 }
  0xfc   :  { %v5195_v15 = vpop.permute.xlu1 %5194 }
  0xfd   :  { %v5197_v16 = vunpack.i.h.bf16 %v5195_v15  ;;  %v5196_v17 = vunpack.i.l.bf16 %v5195_v15  ;;  %v294_v2 = vsel %vm8167_vm1, %v5191_v54, %v5192_v53 }
  0xfe   :  { %v5200_v19 = vpop.permute.xlu0 %5199 }
  0xff   :  { %v232_v20 = vsel %vm8174_vm3, %v5196_v17, %v5197_v16  ;;  %v5202_v22 = vunpack.i.h.bf16 %v5200_v19  ;;  %v5201_v23 = vunpack.i.l.bf16 %v5200_v19  ;;  %v307_v29 = vsel %vm180_vm4, %v6413_v21, %v5197_v16 }
 0x100   :  { %v306_v24 = vsel %vm180_vm4, %v6409_v18, %v232_v20  ;;  %v5205_v25 = vpop.permute.xlu1 %5204  ;;  %v6293_v19 = vmov 0   ;;  %v60_v20 = vld [vmem:[%s8202_s25] sm:$0xff] }
 0x101   :  { %v241_v26 = vsel %vm8175_vm2, %v5201_v23, %v5202_v22  ;;  %v5207_v27 = vunpack.i.h.bf16 %v5205_v25  ;;  %v5206_v28 = vunpack.i.l.bf16 %v5205_v25  ;;  %v309_v36 = vsel %vm183_vm5, %v307_v29, %v5202_v22  ;;  %5288 = vset.pattern.permute.xlu0 %v6293_v19  ;;  %5334 = vset.pattern.permute.xlu1 %v6293_v19 }
 0x102   :  { %v308_v30 = vsel %vm183_vm5, %v306_v24, %v241_v26  ;;  %v5210_v31 = vpop.permute.xlu0 %5209 }
 0x103   :  { %v250_v32 = vsel %vm8173_vm6, %v5206_v28, %v5207_v27  ;;  %v5212_v33 = vunpack.i.h.bf16 %v5210_v31  ;;  %v5211_v34 = vunpack.i.l.bf16 %v5210_v31  ;;  %v311_v44 = vsel %vm186_vm7, %v309_v36, %v5207_v27 }
 0x104   :  { %v310_v18 = vsel %vm186_vm7, %v308_v30, %v250_v32  ;;  %v5215_v35 = vpop.permute.xlu1 %5214 }
 0x105   :  { %v259_v37 = vsel %vm8172_vm8, %v5211_v34, %v5212_v33  ;;  %v5217_v38 = vunpack.i.h.bf16 %v5215_v35  ;;  %v5216_v39 = vunpack.i.l.bf16 %v5215_v35  ;;  %v313_v55 = vsel %vm8171_vm9, %v311_v44, %v5212_v33 }
 0x106   :  { %v5220_v21 = vpop.permute.xlu0 %5219  ;;  %v312_v40 = vsel %vm8171_vm9, %v310_v18, %v259_v37 }
 0x107   :  { %v268_v41 = vsel %vm8170_vm10, %v5216_v39, %v5217_v38  ;;  %v5222_v42 = vunpack.i.h.bf16 %v5220_v21  ;;  %v5221_v43 = vunpack.i.l.bf16 %v5220_v21  ;;  %v315_v61 = vsel %vm192_vm11, %v313_v55, %v5217_v38 }
 0x108   :  { %v5225_v45 = vpop.permute.xlu1 %5224  ;;  %v314_v52 = vsel %vm192_vm11, %v312_v40, %v268_v41 }
 0x109   :  { %v5227_v46 = vunpack.i.h.bf16 %v5225_v45  ;;  %v5226_v47 = vunpack.i.l.bf16 %v5225_v45  ;;  %v277_v48 = vsel %vm8169_vm12, %v5221_v43, %v5222_v42  ;;  %v317_v11 = vsel %vm195_vm14, %v315_v61, %v5222_v42 }
 0x10a   :  { %v6495_v51 = vpop.permute.xlu0 %150  ;;  %v316_v60 = vsel %vm195_vm14, %v314_v52, %v277_v48 }
 0x10b   :  { %v286_v59 = vsel %vm8168_vm13, %v5226_v47, %v5227_v46  ;;  %v287_v63 = vsel %vm8168_vm13, %v5227_v46, %v6495_v51 }
 0x10c   :  { %v5230_v56 = vpop.permute.xlu1 %5229  ;;  %v318_v6 = vsel %vm198_vm0, %v316_v60, %v286_v59  ;;  %v319_v14 = vsel %vm198_vm0, %v317_v11, %v287_v63 }
 0x10d   :  { %v5232_v57 = vunpack.i.h.bf16 %v5230_v56  ;;  %v5231_v58 = vunpack.i.l.bf16 %v5230_v56 }
 0x10e   :  { %v6504_v62 = vpop.permute.xlu0 %173 }
 0x10f   :  { %v302_v3 = vsel %vm8166_vm15, %v5231_v58, %v5232_v57  ;;  %v303_v8 = vsel %vm8166_vm15, %v5232_v57, %v6504_v62 }
 0x110   :  { %v6510_v4 = vpop.permute.xlu1 %161  ;;  %v320_v7 = vsel %vm180_vm4, %v294_v2, %v302_v3 }
 0x111   :  { %v5278_v9 = vpack.i.bf16 %v320_v7, %v318_v6  ;;  %v295_v10 = vsel %vm8167_vm1, %v5192_v53, %v6510_v4 }
 0x112   :  { %v6519_v12 = vpop.permute.xlu0 %5234  ;;  %v321_v15 = vsel %vm180_vm4, %v295_v10, %v303_v8 }
 0x113   :  { %5279 = vrot.lane.b32.xlu0 %v5278_v9, %s6290_s20  ;;  %v5283_v16 = vpack.i.bf16 %v321_v15, %v319_v14  ;;  %v5237_v52 = vunpack.i.h.bf16 %v6519_v12  ;;  %v5236_v60 = vunpack.i.l.bf16 %v6519_v12 }
 0x114   :  { %v5240_v17 = vpop.permute.xlu1 %5239 }
 0x115   :  { %v5242_v22 = vunpack.i.h.bf16 %v5240_v17  ;;  %v5241_v23 = vunpack.i.l.bf16 %v5240_v17  ;;  %5284 = vrot.lane.b32.xlu1 %v5283_v16, %s6290_s20  ;;  %v164_v9 = vsel %vm8167_vm1, %v5237_v52, %v5236_v60  ;;  %v165_v17 = vsel %vm8167_vm1, %v5236_v60, %v6510_v4 }
 0x116   :  { %v5245_v24 = vpop.permute.xlu0 %5244  ;;  %v607_v60 = vadd.s32 160, %v6392_v1 }
 0x117   :  { %v90_v25 = vsel %vm8174_vm3, %v5242_v22, %v5241_v23  ;;  %v182_v26 = vsel %vm180_vm4, %v6445_v50, %v5241_v23  ;;  %v5247_v27 = vunpack.i.h.bf16 %v5245_v24  ;;  %v5246_v28 = vunpack.i.l.bf16 %v5245_v24  ;;  %344 = vperm.xlu0 %5288, %v60_v20  }
 0x118   :  { %v181_v29 = vsel %vm180_vm4, %v6442_v49, %v90_v25  ;;  %v5250_v30 = vpop.permute.xlu1 %5249 }
 0x119   :  { %v99_v31 = vsel %vm8175_vm2, %v5247_v27, %v5246_v28  ;;  %v185_v32 = vsel %vm183_vm5, %v182_v26, %v5246_v28  ;;  %v5252_v33 = vunpack.i.h.bf16 %v5250_v30  ;;  %v5251_v34 = vunpack.i.l.bf16 %v5250_v30 }
 0x11a   :  { %v184_v18 = vsel %vm183_vm5, %v181_v29, %v99_v31  ;;  %v5255_v35 = vpop.permute.xlu0 %5254  ;;  %v59_v29 = vld [vmem:[%s8147_s1] sm:$0xff]  ;;  %v619_v31 = vadd.s32 256, %v6392_v1  ;;  %s6297_s1 = smov 82  }
 0x11b   :  { %v109_v36 = vsel %vm8173_vm6, %v5252_v33, %v5251_v34  ;;  %v188_v50 = vsel %vm186_vm7, %v185_v32, %v5251_v34  ;;  %v5257_v37 = vunpack.i.h.bf16 %v5255_v35  ;;  %v5256_v38 = vunpack.i.l.bf16 %v5255_v35 }
 0x11c   :  { %v187_v39 = vsel %vm186_vm7, %v184_v18, %v109_v36  ;;  %v5260_v21 = vpop.permute.xlu1 %5259  ;;  %v620_v32 = vadd.s32 264, %v6392_v1  ;;  %v6578_v33 = vand.u32 127, %v62_v0  ;;  %v6295_v34 = vmov 0.0|0.0  }
 0x11d   :  { %v119_v49 = vsel %vm8172_vm8, %v5257_v37, %v5256_v38  ;;  %v191_v40 = vsel %vm8171_vm9, %v188_v50, %v5256_v38  ;;  %v5262_v41 = vunpack.i.h.bf16 %v5260_v21  ;;  %v5261_v42 = vunpack.i.l.bf16 %v5260_v21 }
 0x11e   :  { %v190_v43 = vsel %vm8171_vm9, %v187_v39, %v119_v49  ;;  %v5265_v44 = vpop.permute.xlu0 %5264  ;;  %v621_v18 = vadd.s32 272, %v6392_v1  ;;  %v622_v35 = vadd.s32 280, %v6392_v1  ;;  %v6584_v36 = vmul.u32 5, %v6578_v33 }
 0x11f   :  { %v129_v45 = vsel %vm8170_vm10, %v5262_v41, %v5261_v42  ;;  %v194_v46 = vsel %vm192_vm11, %v191_v40, %v5261_v42  ;;  %v5267_v47 = vunpack.i.h.bf16 %v5265_v44  ;;  %v5266_v48 = vunpack.i.l.bf16 %v5265_v44 }
 0x120   :  { %v5270_v53 = vpop.permute.xlu1 %5269  ;;  %v193_v54 = vsel %vm192_vm11, %v190_v43, %v129_v45  ;;  %v623_v50 = vadd.s32 288, %v6392_v1  ;;  %v624_v37 = vadd.s32 296, %v6392_v1  ;;  %vm684_vm11 = vcmp.eq.s32.totalorder %v619_v31, %v6584_v36 }
 0x121   :  { %v139_v55 = vsel %vm8169_vm12, %v5267_v47, %v5266_v48  ;;  %v5272_v56 = vunpack.i.h.bf16 %v5270_v53  ;;  %v5271_v57 = vunpack.i.l.bf16 %v5270_v53  ;;  %v197_v58 = vsel %vm195_vm14, %v194_v46, %v5266_v48 }
 0x122   :  { %v196_v59 = vsel %vm195_vm14, %v193_v54, %v139_v55  ;;  %vm685_vm14 = vcmp.eq.s32.totalorder %v620_v32, %v6584_v36  ;;  %v6296_v38 = vmov 1.0|1.0   ;;  %v625_v39 = vadd.s32 304, %v6392_v1 }
 0x123   :  { %v154_v61 = vsel %vm8168_vm13, %v5271_v57, %v6495_v51  ;;  %v153_v63 = vsel %vm8168_vm13, %v5272_v56, %v5271_v57  ;;  %vm689_vm1 = vcmp.eq.s32.totalorder %v624_v37, %v6584_v36  ;;  %v603_v21 = vadd.s32 128, %v6392_v1 }
 0x124   :  { %v5275_v2 = vpop.permute.xlu1 %5274  ;;  %v200_v3 = vsel %vm198_vm0, %v197_v58, %v154_v61  ;;  %v199_v6 = vsel %vm198_vm0, %v196_v59, %v153_v63  ;;  %vm8165_vm0 = vmmov 1   ;;  %v604_v49 = vadd.s32 136, %v6392_v1 }
 0x125   :  { %v5277_v7 = vunpack.i.h.bf16 %v5275_v2  ;;  %v5276_v8 = vunpack.i.l.bf16 %v5275_v2  ;;  %vm4771_vm7 = vmpackc.low %vm183_vm5, %vm8165_vm0  ;;  %v626_v40 = vadd.s32 312, %v6392_v1  ;;  %v6601_v41 = vadd.s32 8, %v6392_v1 }
 0x126   :  { %v605_v42 = vadd.s32 144, %v6392_v1  ;;  %v606_v43 = vadd.s32 152, %v6392_v1  ;;  %v6620_v45 = vadd.s32 16, %v6392_v1  ;;  %v6623_v46 = vadd.s32 24, %v6392_v1 }
 0x127   :  { %v176_v10 = vsel %vm8166_vm15, %v5277_v7, %v5276_v8  ;;  %v177_v12 = vsel %vm8166_vm15, %v5276_v8, %v6504_v62  ;;  %vm688_vm15 = vcmp.eq.s32.totalorder %v623_v50, %v6584_v36  ;;  %v627_v47 = vadd.s32 320, %v6392_v1 }
 0x128   :  { %v201_v11 = vsel %vm180_vm4, %v164_v9, %v176_v10  ;;  %v202_v20 = vsel %vm180_vm4, %v165_v17, %v177_v12  ;;  %vm8203_vm4 = vcmask 80896   ;;  %vm671_vm10 = vcmp.eq.s32.totalorder %v606_v43, %v6584_v36 }
 0x129   :  { %v4773_v14 = vpack.c.bf16 %v201_v11, %v199_v6  ;;  %vm8204_vm5 = vmmov %vm8203_vm4  ;;  %v628_v48 = vadd.s32 328, %v6392_v1  ;;  %v629_v53 = vadd.s32 336, %v6392_v1  ;;  %v630_v54 = vadd.s32 344, %v6392_v1 }
 0x12a   :  { %v631_v56 = vadd.s32 352, %v6392_v1  ;;  %v632_v57 = vadd.s32 360, %v6392_v1  ;;  %v633_v58 = vadd.s32 368, %v6392_v1  ;;  %v634_v59 = vadd.s32 376, %v6392_v1 }
 0x12b   :  { %v608_v61 = vadd.s32 168, %v6392_v1  ;;  %v635_v63 = vadd.s32 384, %v6392_v1  ;;  %v636_v2 = vadd.s32 392, %v6392_v1  ;;  %v6685_v6 = vadd.s32 40, %v6392_v1 }
 0x12c   :  { %v609_v7 = vadd.s32 176, %v6392_v1  ;;  %v610_v8 = vadd.s32 184, %v6392_v1  ;;  %v637_v9 = vadd.s32 400, %v6392_v1  ;;  %v638_v10 = vadd.s32 408, %v6392_v1 }
 0x12d   :  { %v6709_v12 = vadd.s32 56, %v6392_v1  ;;  %v639_v17 = vadd.s32 416, %v6392_v1  ;;  %v614_v31 = vadd.s32 216, %v6392_v1  ;;  %v641_v32 = vadd.s32 432, %v6392_v1 }
 0x12e   :  { %v642_v50 = vadd.s32 440, %v6392_v1  ;;  %v6772_v37 = vadd.s32 80, %v6392_v1  ;;  %v8217_v43 = vmov 0  ;;  %v615_v44 = vadd.s32 224, %v6392_v1 }
 0x185   :  { %v5280_v51 = vpop.permute.xlu0 %5279 }
 0x186   :  { %v5282_v15 = vunpack.i.h.bf16 %v5280_v51  ;;  %v5281_v16 = vunpack.i.l.bf16 %v5280_v51 }
 0x187   :  { %v5285_v19 = vpop.permute.xlu1 %5284 }
 0x188   :  { %v5287_v22 = vunpack.i.h.bf16 %v5285_v19  ;;  %v5286_v23 = vunpack.i.l.bf16 %v5285_v19  ;;  %v340_v24 = vsel %vm8169_vm12, %v200_v3, %v5281_v16  ;;  %v341_v25 = vsel %vm8169_vm12, %v202_v20, %v5282_v15 }
 0x189   :  { %v4770_v62 = vpack.c.bf16 %v341_v25, %v340_v24  ;;  %v6682_v3 = vadd.s32 32, %v6392_v1  ;;  %v6737_v24 = vadd.s32 72, %v6392_v1 }
 0x18a   :  { %v4776_v26 = vpack.c.bf16 %v5287_v22, %v5286_v23  ;;  %v335_v27 = vsel %vm8169_vm12, %v5282_v15, %v5287_v22  ;;  %v334_v28 = vsel %vm8169_vm12, %v5281_v16, %v5286_v23  ;;  %vm670_vm12 = vcmp.eq.s32.totalorder %v605_v42, %v6584_v36 }
 0x18b   :  { %4772 = vmatprep.subr.msk.bf16.mxu1 %vm4771_vm7, %v4770_v62  ;;  %v4779_v30 = vpack.c.bf16 %v335_v27, %v334_v28  ;;  %vm4786_vm9 = vmpackc.low %vm671_vm10, %vm670_vm12  ;;  %vm694_vm10 = vcmp.eq.s32.totalorder %v629_v53, %v6584_v36  ;;  %vm695_vm12 = vcmp.eq.s32.totalorder %v630_v54, %v6584_v36  ;;  %v611_v15 = vadd.s32 192, %v6392_v1 }
 0x18c   :  { %4775 = vmatpush1.bf16.msk.msra.mxu1 %vm4771_vm7, %v4773_v14  ;;  %v6706_v14 = vadd.s32 48, %v6392_v1  ;;  %v612_v16 = vadd.s32 200, %v6392_v1  ;;  %v640_v22 = vadd.s32 424, %v6392_v1  ;;  %v6734_v23 = vadd.s32 64, %v6392_v1 }
 0x18d   :  { %4778 = vmatprep.subr.msk.bf16.mxu1 %vm4771_vm7, %v4776_v26  ;;  %v644_v53 = vadd.s32 456, %v6392_v1  ;;  %v6813_v54 = vadd.s32 96, %v6392_v1 }
 0x18f   :  { %4322 = vmatmul.mubr.msk.f32.vlgmr.msra.gmra.mrb[0].mxu1 %vm8203_vm4, %v59_v29  ;;  %vm687_vm4 = vcmp.eq.s32.totalorder %v622_v35, %v6584_v36 }
 0x190   :  { %4781 = vmatpush1.bf16.msk.msra.mxu1 %vm4771_vm7, %v4779_v30  ;;  %495 = vmatprep.mubr.f32.mxu1 %v6283_v13  ;;  %vm686_vm7 = vcmp.eq.s32.totalorder %v621_v18, %v6584_v36  ;;  %v613_v30 = vadd.s32 208, %v6392_v1 }
 0x191   :  { %4814 = vmatprep.subr.bf16.mxu1 %v6295_v34  ;;  %vm4818_vm0 = vmpackc.low %vm687_vm4, %vm686_vm7  ;;  %vm652_vm4 = vcmp.eq.s32.totalorder %v6392_v1, %v6584_v36 }
 0x192   :  { %vm6608_vm7 = vmpackc.low %vm689_vm1, %vm688_vm15  ;;  %vm690_vm1 = vcmp.eq.s32.totalorder %v625_v39, %v6584_v36  ;;  %vm691_vm15 = vcmp.eq.s32.totalorder %v626_v40, %v6584_v36  ;;  %v6775_v39 = vadd.s32 88, %v6392_v1 }
 0x193   :  { %4325 = vmatmul.mubr.msk.f32.vlgmr.msra.gmra.mrb[2].mxu1 %vm8204_vm5, %v59_v29  ;;  %vm4815_vm5 = vmpackc.low %vm685_vm14, %vm684_vm11  ;;  %vm668_vm11 = vcmp.eq.s32.totalorder %v603_v21, %v6584_v36  ;;  %vm669_vm14 = vcmp.eq.s32.totalorder %v604_v49, %v6584_v36 }
 0x194   :  { %4816 = vmatpush1.bf16.msk.msra.mxu1 %vm4815_vm5, %v6296_v38  ;;  %vm653_vm5 = vcmp.eq.s32.totalorder %v6601_v41, %v6584_v36  ;;  %vm4782_vm13 = vmpackc.low %vm669_vm14, %vm668_vm11  ;;  %vm654_vm11 = vcmp.eq.s32.totalorder %v6620_v45, %v6584_v36  ;;  %vm655_vm14 = vcmp.eq.s32.totalorder %v6623_v46, %v6584_v36 }
 0x195   :  { %4817 = vmatprep.subr.bf16.mxu1 %v6295_v34  ;;  %4783 = vmatprep.subr.msk.bf16.mxu0 %vm4782_vm13, %v6296_v38  ;;  %vm4824_vm13 = vmpackc.low %vm691_vm15, %vm690_vm1  ;;  %vm696_vm1 = vcmp.eq.s32.totalorder %v631_v56, %v6584_v36  ;;  %vm697_vm15 = vcmp.eq.s32.totalorder %v632_v57, %v6584_v36  ;;  %v600_v56 = vadd.s32 104, %v6392_v1  ;;  %v617_v57 = vadd.s32 240, %v6392_v1 }
 0x196   :  { %vm6650_vm8 = vmpackc.low %vm655_vm14, %vm654_vm11  ;;  %vm698_vm14 = vcmp.eq.s32.totalorder %v633_v58, %v6584_v36  ;;  %v345_v51 = vpop.permute.xlu0 %344  ;;  %v618_v58 = vadd.s32 248, %v6392_v1 }
 0x197   :  { %vm4833_vm11 = vmpackc.low %vm697_vm15, %vm696_vm1  ;;  %vm656_vm1 = vcmp.eq.s32.totalorder %v6682_v3, %v6584_v36  ;;  %vm657_vm15 = vcmp.eq.s32.totalorder %v6685_v6, %v6584_v36  ;;  %vm682_vm6 = vcmp.eq.s32.totalorder %v617_v57, %v6584_v36 }
 0x198   :  { %4819 = vmatpush1.bf16.msk.msra.mxu1 %vm4818_vm0, %v6296_v38  ;;  %vm6630_vm0 = vmpackc.low %vm653_vm5, %vm652_vm4  ;;  %vm692_vm4 = vcmp.eq.s32.totalorder %v627_v47, %v6584_v36  ;;  %vm693_vm5 = vcmp.eq.s32.totalorder %v628_v48, %v6584_v36  ;;  %v616_v47 = vadd.s32 232, %v6392_v1  ;;  %v643_v48 = vadd.s32 448, %v6392_v1 }
 0x199   :  { %4820 = vmatprep.subr.bf16.mxu1 %v6295_v34  ;;  %4785 = vmatpush3.bf16.msk.msra.mxu0 %vm6630_vm0, %v6296_v38  ;;  %vm683_vm2 = vcmp.eq.s32.totalorder %v618_v58, %v6584_v36 }
 0x19a   :  { %4787 = vmatprep.subr.msk.bf16.mxu0 %vm4786_vm9, %v6296_v38  ;;  %vm4827_vm9 = vmpackc.low %vm693_vm5, %vm692_vm4  ;;  %vm672_vm5 = vcmp.eq.s32.totalorder %v607_v60, %v6584_v36  ;;  %v646_v60 = vadd.s32 472, %v6392_v1 }
 0x19c   :  { %4822 = vmatpush1.bf16.msk.msra.mxu1 %vm6608_vm7, %v6296_v38  ;;  %vm4830_vm7 = vmpackc.low %vm695_vm12, %vm694_vm10  ;;  %vm700_vm10 = vcmp.eq.s32.totalorder %v635_v63, %v6584_v36  ;;  %vm701_vm12 = vcmp.eq.s32.totalorder %v636_v2, %v6584_v36  ;;  %v602_v63 = vadd.s32 120, %v6392_v1  ;;  %v647_v2 = vadd.s32 480, %v6392_v1 }
 0x19d   :  { %4823 = vmatprep.subr.bf16.mxu1 %v6295_v34  ;;  %4789 = vmatpush3.bf16.msk.msra.mxu0 %vm6650_vm8, %v6296_v38 }
 0x1a0   :  { %4825 = vmatpush1.bf16.msk.msra.mxu1 %vm4824_vm13, %v6296_v38  ;;  %vm699_vm13 = vcmp.eq.s32.totalorder %v634_v59, %v6584_v36  ;;  %v645_v59 = vadd.s32 464, %v6392_v1 }
 0x1a1   :  { %4826 = vmatprep.subr.bf16.mxu1 %v6295_v34  ;;  %vm4836_vm4 = vmpackc.low %vm699_vm13, %vm698_vm14  ;;  %vm674_vm13 = vcmp.eq.s32.totalorder %v609_v7, %v6584_v36  ;;  %v648_v7 = vadd.s32 488, %v6392_v1 }
 0x1a2   :  { %vm6701_vm14 = vmpackc.low %vm657_vm15, %vm656_vm1 }
 0x1a4   :  { %4828 = vmatpush1.bf16.msk.msra.mxu1 %vm4827_vm9, %v6296_v38  ;;  %vm673_vm9 = vcmp.eq.s32.totalorder %v608_v61, %v6584_v36  ;;  %v601_v61 = vadd.s32 112, %v6392_v1 }
 0x1a5   :  { %4829 = vmatprep.subr.bf16.mxu1 %v6295_v34 }
 0x1a8   :  { %4831 = vmatpush1.bf16.msk.msra.mxu1 %vm4830_vm7, %v6296_v38  ;;  %vm4790_vm7 = vmpackc.low %vm673_vm9, %vm672_vm5  ;;  %vm702_vm5 = vcmp.eq.s32.totalorder %v637_v9, %v6584_v36 }
 0x1a9   :  { %4832 = vmatprep.subr.bf16.mxu1 %v6295_v34  ;;  %4791 = vmatprep.subr.msk.bf16.mxu0 %vm4790_vm7, %v6296_v38  ;;  %vm659_vm7 = vcmp.eq.s32.totalorder %v6709_v12, %v6584_v36 }
 0x1aa   :  { %4793 = vmatpush3.bf16.msk.msra.mxu0 %vm6701_vm14, %v6296_v38 }
 0x1ac   :  { %4834 = vmatpush1.bf16.msk.msra.mxu1 %vm4833_vm11, %v6296_v38  ;;  %vm4839_vm11 = vmpackc.low %vm701_vm12, %vm700_vm10  ;;  %vm703_vm10 = vcmp.eq.s32.totalorder %v638_v10, %v6584_v36  ;;  %vm658_vm12 = vcmp.eq.s32.totalorder %v6706_v14, %v6584_v36 }
 0x1ad   :  { %4835 = vmatprep.subr.bf16.mxu1 %v6295_v34  ;;  %vm4842_vm1 = vmpackc.low %vm703_vm10, %vm702_vm5  ;;  %vm704_vm5 = vcmp.eq.s32.totalorder %v639_v17, %v6584_v36  ;;  %vm660_vm10 = vcmp.eq.s32.totalorder %v6734_v23, %v6584_v36 }
 0x1ae   :  { %vm6728_vm15 = vmpackc.low %vm659_vm7, %vm658_vm12  ;;  %vm661_vm7 = vcmp.eq.s32.totalorder %v6737_v24, %v6584_v36 }
 0x1b0   :  { %4837 = vmatpush1.bf16.msk.msra.mxu1 %vm4836_vm4, %v6296_v38  ;;  %vm675_vm4 = vcmp.eq.s32.totalorder %v610_v8, %v6584_v36 }
 0x1b1   :  { %4838 = vmatprep.subr.bf16.mxu1 %v6295_v34  ;;  %vm4794_vm9 = vmpackc.low %vm675_vm4, %vm674_vm13  ;;  %vm677_vm13 = vcmp.eq.s32.totalorder %v612_v16, %v6584_v36 }
 0x1b2   :  { %4795 = vmatprep.subr.msk.bf16.mxu0 %vm4794_vm9, %v6296_v38  ;;  %vm705_vm9 = vcmp.eq.s32.totalorder %v640_v22, %v6584_v36 }
 0x1b3   :  { %4797 = vmatpush3.bf16.msk.msra.mxu0 %vm6728_vm15, %v6296_v38  ;;  %vm4845_vm12 = vmpackc.low %vm705_vm9, %vm704_vm5  ;;  %vm706_vm5 = vcmp.eq.s32.totalorder %v641_v32, %v6584_v36  ;;  %vm707_vm9 = vcmp.eq.s32.totalorder %v642_v50, %v6584_v36 }
 0x1b4   :  { %4840 = vmatpush1.bf16.msk.msra.mxu1 %vm4839_vm11, %v6296_v38  ;;  %vm676_vm11 = vcmp.eq.s32.totalorder %v611_v15, %v6584_v36 }
 0x1b5   :  { %4841 = vmatprep.subr.bf16.mxu1 %v6295_v34  ;;  %vm4798_vm4 = vmpackc.low %vm677_vm13, %vm676_vm11  ;;  %vm678_vm11 = vcmp.eq.s32.totalorder %v613_v30, %v6584_v36  ;;  %vm679_vm13 = vcmp.eq.s32.totalorder %v614_v31, %v6584_v36 }
 0x1b6   :  { %4799 = vmatprep.subr.msk.bf16.mxu0 %vm4798_vm4, %v6296_v38  ;;  %vm4802_vm4 = vmpackc.low %vm679_vm13, %vm678_vm11  ;;  %vm680_vm13 = vcmp.eq.s32.totalorder %v615_v44, %v6584_v36 }
 0x1b8   :  { %4843 = vmatpush1.bf16.msk.msra.mxu1 %vm4842_vm1, %v6296_v38  ;;  %vm6757_vm1 = vmpackc.low %vm661_vm7, %vm660_vm10  ;;  %vm662_vm10 = vcmp.eq.s32.totalorder %v6772_v37, %v6584_v36  ;;  %vm663_vm7 = vcmp.eq.s32.totalorder %v6775_v39, %v6584_v36 }
 0x1b9   :  { %4844 = vmatprep.subr.bf16.mxu1 %v6295_v34  ;;  %4801 = vmatpush3.bf16.msk.msra.mxu0 %vm6757_vm1, %v6296_v38  ;;  %vm6798_vm11 = vmpackc.low %vm663_vm7, %vm662_vm10  ;;  %vm665_vm7 = vcmp.eq.s32.totalorder %v600_v56, %v6584_v36 }
 0x1ba   :  { %4803 = vmatprep.subr.msk.bf16.mxu0 %vm4802_vm4, %v6296_v38  ;;  %v8218_v43 = vsel %vm6798_vm11, 4294967295, %v8217_v43  ;;  %vm681_vm4 = vcmp.eq.s32.totalorder %v616_v47, %v6584_v36 }
 0x1bb   :  { %vm4806_vm10 = vmpackc.low %vm681_vm4, %vm680_vm13 }
 0x1bc   :  { %4846 = vmatpush1.bf16.msk.msra.mxu1 %vm4845_vm12, %v6296_v38  ;;  %vm4848_vm12 = vmpackc.low %vm707_vm9, %vm706_vm5  ;;  %vm708_vm5 = vcmp.eq.s32.totalorder %v643_v48, %v6584_v36  ;;  %vm709_vm9 = vcmp.eq.s32.totalorder %v644_v53, %v6584_v36 }
 0x1bd   :  { %4847 = vmatprep.subr.bf16.mxu1 %v6295_v34  ;;  %4805 = vmatpush3.bf16.msk.msra.mxu0 %vm6798_vm11, %v6296_v38  ;;  %vm4851_vm3 = vmpackc.low %vm709_vm9, %vm708_vm5  ;;  %vm710_vm5 = vcmp.eq.s32.totalorder %v645_v59, %v6584_v36  ;;  %vm711_vm9 = vcmp.eq.s32.totalorder %v646_v60, %v6584_v36 }
 0x1be   :  { %4807 = vmatprep.subr.msk.bf16.mxu0 %vm4806_vm10, %v6296_v38  ;;  %vm4810_vm4 = vmpackc.low %vm683_vm2, %vm682_vm6  ;;  %vm8219_vm6 = vcmask 1031168  }
 0x1bf   :  { %vm4854_vm10 = vmpackc.low %vm711_vm9, %vm710_vm5 }
 0x1c0   :  { %4849 = vmatpush1.bf16.msk.msra.mxu1 %vm4848_vm12, %v6296_v38  ;;  %vm664_vm12 = vcmp.eq.s32.totalorder %v6813_v54, %v6584_v36  ;;  %vm8222_vm5 = vmmov %vm8219_vm6 }
 0x1c1   :  { %4850 = vmatprep.subr.bf16.mxu1 %v6295_v34  ;;  %vm4808_vm13 = vmpackc.low %vm665_vm7, %vm664_vm12  ;;  %vm667_vm12 = vcmp.eq.s32.totalorder %v602_v63, %v6584_v36  ;;  %vm712_vm7 = vcmp.eq.s32.totalorder %v647_v2, %v6584_v36 }
 0x1c2   :  { %4809 = vmatpush3.bf16.msk.msra.mxu0 %vm4808_vm13, %v6296_v38  ;;  %vm713_vm13 = vcmp.eq.s32.totalorder %v648_v7, %v6584_v36 }
 0x1c3   :  { %4811 = vmatprep.subr.msk.bf16.mxu0 %vm4810_vm4, %v6296_v38  ;;  %vm4857_vm2 = vmpackc.low %vm713_vm13, %vm712_vm7  ;;  %vm8227_vm7 = vcmask 1014784  }
 0x1c4   :  { %4852 = vmatpush1.bf16.msk.msra.mxu1 %vm4851_vm3, %v6296_v38  ;;  %vm666_vm3 = vcmp.eq.s32.totalorder %v601_v61, %v6584_v36  ;;  %vm8228_vm13 = vmmov %vm8227_vm7 }
 0x1c5   :  { %4853 = vmatprep.subr.bf16.mxu1 %v6295_v34  ;;  %vm4812_vm11 = vmpackc.low %vm667_vm12, %vm666_vm3  ;;  %vm8224_vm3 = vcmask 1022976  }
 0x1c6   :  { %4813 = vmatpush3.bf16.msk.msra.mxu0 %vm4812_vm11, %v6296_v38  ;;  %vm8220_vm11 = vcmask 1039360   ;;  %vm8226_vm12 = vmmov %vm8222_vm5 }
 0x1c7   :  { %vm8221_vm4 = vmmov %vm8220_vm11 }
 0x1c8   :  { %4855 = vmatpush1.bf16.msk.msra.mxu1 %vm4854_vm10, %v6296_v38  ;;  %vm8223_vm9 = vmmov %vm8221_vm4 }
 0x1c9   :  { %4856 = vmatprep.subr.bf16.mxu1 %v6295_v34  ;;  %vm8225_vm10 = vmmov %vm8224_vm3 }
 0x1cc   :  { %4858 = vmatpush1.bf16.msk.msra.mxu1 %vm4857_vm2, %v6296_v38  ;;  %vm8229_vm2 = vmmov %vm8224_vm3 }
 0x262   :  { %v426_v19 = vpop.f32.mrb[0].mxu1 }
 0x263   :  { %v427_v25 = vadd.f32 %v426_v19, %v345_v51  ;;  %v428_v62 = vpop.f32.mrb[1].mxu1 }
 0x264   :  { %v6745_v26 = vadd.f32 %v428_v62, %v345_v51 }
 0x265   :  { %v6751_v27 = vmax.f32 %v427_v25, 0.0 }
 0x266   :  { %v497_v28 = vpop.f32.mrb[2].mxu1  ;;  %v503_v21 = vmax.f32 %v6745_v26, 0.0 }
 0x267   :  { %v6764_v18 = vadd.f32 %v497_v28, %v345_v51  ;;  %v499_v35 = vpop.f32.mrb[3].mxu1  ;;  %548 = vrot.lane.b32.xlu0 %v6751_v27, %s6287_s18  ;;  %510 = vrot.lane.b32.xlu1 %v6751_v27, %s6285_s0 }
 0x268   :  { %v500_v40 = vadd.f32 %v499_v35, %v345_v51 }
 0x269   :  { %v504_v49 = vmax.f32 %v6764_v18, 0.0 }
 0x26a   :  { %v505_v8 = vmax.f32 %v500_v40, 0.0 }
 0x26b   :  { %529 = vrot.lane.b32.xlu1 %v6751_v27, %s6286_s30  ;;  %v5294_v42 = vpack.i.bf16 %v504_v49, %v503_v21 }
 0x26d   :  { %5295 = vrot.lane.b32.xlu0 %v5294_v42, %s6286_s30 }
 0x26f   :  { %567 = vrot.lane.b32.xlu1 %v6751_v27, %s6288_s19 }
 0x271   :  { %5305 = vrot.lane.b32.xlu0 %v5294_v42, %s6288_s19 }
 0x273   :  { %5290 = vrot.lane.b32.xlu1 %v5294_v42, %s6285_s0 }
 0x275   :  { %516 = vrot.lane.b32.xlu0 %v505_v8, %s6285_s0 }
 0x277   :  { %5300 = vrot.lane.b32.xlu1 %v5294_v42, %s6287_s18 }
 0x279   :  { %554 = vrot.lane.b32.xlu0 %v505_v8, %s6287_s18 }
 0x27b   :  { %535 = vrot.lane.b32.xlu1 %v505_v8, %s6286_s30 }
 0x27f   :  { %573 = vrot.lane.b32.xlu1 %v505_v8, %s6288_s19 }
 0x2d9   :  { %v511_v36 = vpop.permute.xlu1 %510  ;;  %v549_v9 = vpop.permute.xlu0 %548 }
 0x2dd   :  { %v530_v10 = vpop.permute.xlu1 %529 }
 0x2df   :  { %v5296_v51 = vpop.permute.xlu0 %5295 }
 0x2e0   :  { %v5297_v17 = vunpack.i.l.bf16 %v5296_v51  ;;  %v5298_v19 = vunpack.i.h.bf16 %v5296_v51 }
 0x2e1   :  { %v568_v15 = vpop.permute.xlu1 %567 }
 0x2e2   :  { %v537_v30 = vsel %vm8219_vm6, %v530_v10, %v5297_v17  ;;  %v538_v44 = vsel %vm8222_vm5, %v5297_v17, %v5298_v19  ;;  %vm776_vm6 = vcmask 916480   ;;  %vm8231_vm5 = vcmask 31744  }
 0x2e3   :  { %v5306_v16 = vpop.permute.xlu0 %5305 }
 0x2e4   :  { %v5308_v35 = vunpack.i.h.bf16 %v5306_v16  ;;  %v5307_v47 = vunpack.i.l.bf16 %v5306_v16 }
 0x2e5   :  { %v5291_v22 = vpop.permute.xlu1 %5290 }
 0x2e6   :  { %v5293_v25 = vunpack.i.h.bf16 %v5291_v22  ;;  %v5292_v62 = vunpack.i.l.bf16 %v5291_v22  ;;  %v576_v10 = vsel %vm8227_vm7, %v5307_v47, %v5308_v35  ;;  %v575_v51 = vsel %vm8228_vm13, %v568_v15, %v5307_v47 }
 0x2e7   :  { %v517_v28 = vpop.permute.xlu0 %516 }
 0x2e8   :  { %v518_v31 = vsel %vm8220_vm11, %v511_v36, %v5292_v62  ;;  %v519_v32 = vsel %vm8221_vm4, %v5292_v62, %v5293_v25  ;;  %v520_v48 = vsel %vm8223_vm9, %v5293_v25, %v517_v28  ;;  %v528_v59 = vmax.f32 %v505_v8, %v517_v28  ;;  %vm8230_vm11 = vmmov %vm8227_vm7 }
 0x2e9   :  { %v525_v50 = vmax.f32 %v6751_v27, %v518_v31  ;;  %v5301_v40 = vpop.permute.xlu1 %5300  ;;  %v526_v42 = vmax.f32 %v503_v21, %v519_v32  ;;  %v527_v27 = vmax.f32 %v504_v49, %v520_v48  ;;  %vm929_vm4 = vcmask 441344   ;;  %vm8232_vm9 = vmmov %vm8231_vm5 }
 0x2ea   :  { %v5303_v53 = vunpack.i.h.bf16 %v5301_v40  ;;  %v5302_v56 = vunpack.i.l.bf16 %v5301_v40 }
 0x2eb   :  { %v545_v57 = vmax.f32 %v526_v42, %v538_v44  ;;  %v544_v58 = vmax.f32 %v525_v50, %v537_v30  ;;  %v555_v63 = vpop.permute.xlu0 %554 }
 0x2ec   :  { %v557_v60 = vsel %vm8224_vm3, %v5302_v56, %v5303_v53  ;;  %v556_v61 = vsel %vm8225_vm10, %v549_v9, %v5302_v56  ;;  %v558_v22 = vsel %vm8229_vm2, %v5303_v53, %v555_v63  ;;  %vm8186_vm3 = vcmask 654336  }
 0x2ed   :  { %v536_v26 = vpop.permute.xlu1 %535  ;;  %v564_v21 = vmax.f32 %v545_v57, %v557_v60  ;;  %v563_v2 = vmax.f32 %v544_v58, %v556_v61  ;;  %vm8187_vm10 = vcmask 408576  }
 0x2ee   :  { %v539_v7 = vsel %vm8226_vm12, %v5298_v19, %v536_v26  ;;  %v547_v36 = vmax.f32 %v528_v59, %v536_v26 }
 0x2ef   :  { %v546_v16 = vmax.f32 %v527_v27, %v539_v7  ;;  %v583_v8 = vmax.f32 %v564_v21, %v576_v10  ;;  %v582_v17 = vmax.f32 %v563_v2, %v575_v51  ;;  %v920_v2 = vld [vmem:[%s8148_s3] sm:$0xff]  ;;  %v923_v51 = vld [vmem:[%s8149_s4 + $0x8] sm:$0xff] }
 0x2f0   :  { %v566_v9 = vmax.f32 %v547_v36, %v555_v63 }
 0x2f1   :  { %v574_v25 = vpop.permute.xlu1 %573  ;;  %v565_v18 = vmax.f32 %v546_v16, %v558_v22  ;;  %844 = vmatprep.mubr.f32.mxu0 %v583_v8  ;;  %v922_v16 = vld [vmem:[%s8149_s4] sm:$0xff] }
 0x2f2   :  { %v577_v49 = vsel %vm8230_vm11, %v5308_v35, %v574_v25  ;;  %v585_v62 = vmax.f32 %v566_v9, %v574_v25  ;;  %845 = vmatmul.mubr.f32.vlgmr.msra.gmra.mrb[0].mxu0 %v582_v17 }
 0x2f3   :  { %v584_v19 = vmax.f32 %v565_v18, %v577_v49  ;;  %4665 = vmatprep.mubr.msk.f32.mxu0 %vm8186_vm3, %v920_v2 }
 0x2f4   :  { %4388 = vmatprep.mubr.msk.f32.mxu1 %vm776_vm6, %v585_v62 }
 0x2f5   :  { %915 = vmatmul.mubr.f32.vlgmr.msra.gmra.mrb[4].mxu1 %v584_v19 }
 0x3c5   :  { %v4530_v28 = vpop.f32.mrb[0].mxu0 }
 0x3c6   :  { %v4531_v30 = vpop.f32.mrb[1].mxu0 }
 0x3c7   :  { %v4532_v15 = vadd.f32 %v4531_v30, %v4530_v28 }
 0x3c8   :  { %v916_v31 = vpop.f32.mrb[4].mxu1 }
 0x3c9   :  { %v917_v32 = vadd.f32 %v4532_v15, %v916_v31  ;;  %v918_v50 = vpop.f32.mrb[5].mxu1 }
 0x3cb   :  { %925 = vrot.lane.b32.xlu1 %v917_v32, %s6282_s28  ;;  %959 = vrot.lane.b32.xlu0 %v917_v32, %s6297_s1 }
 0x43d   :  { %v960_v40 = vpop.permute.xlu0 %959  ;;  %v926_v44 = vpop.permute.xlu1 %925 }
 0x43e   :  { %v962_v35 = vsel %vm8231_vm5, 0.0, %v960_v40  ;;  %v928_v47 = vsel %vm8232_vm9, 0.0, %v926_v44 }
 0x43f   :  { %v963_v42 = vsel %vm929_vm4, %v962_v35, 0.0  ;;  %v930_v48 = vsel %vm929_vm4, %v928_v47, 0.0 }
 0x440   :  { %967 = vrot.lane.b32.xlu1 %v963_v42, %s6286_s30  ;;  %965 = vrot.lane.b32.xlu0 %v963_v42, %s6285_s0 }
 0x444   :  { %971 = vrot.lane.b32.xlu1 %v963_v42, %s6288_s19  ;;  %969 = vrot.lane.b32.xlu0 %v963_v42, %s6287_s18 }
 0x448   :  { %975 = vrot.lane.b32.xlu1 %v963_v42, %s6290_s20  ;;  %973 = vrot.lane.b32.xlu0 %v963_v42, %s8180_s2 }
 0x44c   :  { %979 = vrot.lane.b32.xlu1 %v963_v42, %s6284_s29  ;;  %977 = vrot.lane.b32.xlu0 %v963_v42, %s8178_s21 }
 0x450   :  { %932 = vrot.lane.b32.xlu1 %v930_v48, %s6285_s0  ;;  %981 = vrot.lane.b32.xlu0 %v963_v42, %s8182_s22 }
 0x454   :  { %935 = vrot.lane.b32.xlu1 %v930_v48, %s6286_s30  ;;  %938 = vrot.lane.b32.xlu0 %v930_v48, %s6287_s18 }
 0x458   :  { %944 = vrot.lane.b32.xlu1 %v930_v48, %s8180_s2  ;;  %941 = vrot.lane.b32.xlu0 %v930_v48, %s6288_s19 }
 0x4b2   :  { %v968_v53 = vpop.permute.xlu1 %967  ;;  %v966_v56 = vpop.permute.xlu0 %965 }
 0x4b3   :  { %v5309_v57 = vpack.i.bf16 %v966_v56, %v963_v42 }
 0x4b5   :  { %5310 = vrot.lane.b32.xlu0 %v5309_v57, %s8184_s24 }
 0x4b6   :  { %v972_v58 = vpop.permute.xlu1 %971  ;;  %v970_v59 = vpop.permute.xlu0 %969 }
 0x4b7   :  { %v5314_v60 = vpack.i.bf16 %v970_v59, %v968_v53 }
 0x4b9   :  { %950 = vrot.lane.b32.xlu0 %v930_v48, %s8178_s21  ;;  %5315 = vrot.lane.b32.xlu1 %v5314_v60, %s8184_s24 }
 0x4ba   :  { %v974_v61 = vpop.permute.xlu0 %973  ;;  %v976_v63 = vpop.permute.xlu1 %975 }
 0x4bb   :  { %v5319_v27 = vpack.i.bf16 %v974_v61, %v972_v58 }
 0x4bd   :  { %947 = vrot.lane.b32.xlu1 %v930_v48, %s6290_s20  ;;  %5320 = vrot.lane.b32.xlu0 %v5319_v27, %s8184_s24 }
 0x4be   :  { %v978_v26 = vpop.permute.xlu0 %977  ;;  %v980_v7 = vpop.permute.xlu1 %979 }
 0x4bf   :  { %v5324_v21 = vpack.i.bf16 %v978_v26, %v976_v63 }
 0x4c1   :  { %953 = vrot.lane.b32.xlu0 %v930_v48, %s6284_s29  ;;  %5325 = vrot.lane.b32.xlu1 %v5324_v21, %s8184_s24 }
 0x4c2   :  { %v982_v36 = vpop.permute.xlu0 %981  ;;  %v933_v8 = vpop.permute.xlu1 %932 }
 0x4c3   :  { %v5329_v10 = vpack.i.bf16 %v982_v36, %v980_v7 }
 0x4c5   :  { %956 = vrot.lane.b32.xlu1 %v930_v48, %s8182_s22  ;;  %5330 = vrot.lane.b32.xlu0 %v5329_v10, %s8184_s24 }
 0x4c6   :  { %v939_v17 = vpop.permute.xlu0 %938  ;;  %v936_v22 = vpop.permute.xlu1 %935 }
 0x4c9   :  { %1031 = vperm.xlu0 %5288, %v923_v51   ;;  %1026 = vperm.xlu1 %5334, %v922_v16  }
 0x4ca   :  { %v942_v9 = vpop.permute.xlu0 %941  ;;  %v945_v25 = vpop.permute.xlu1 %944 }
 0x527   :  { %v5311_v18 = vpop.permute.xlu0 %5310 }
 0x528   :  { %v5313_v49 = vunpack.i.h.bf16 %v5311_v18  ;;  %v5312_v62 = vunpack.i.l.bf16 %v5311_v18 }
 0x52a   :  { %v1014_v19 = vsel %vm8187_vm10, %v930_v48, %v5312_v62  ;;  %v1015_v28 = vsel %vm8187_vm10, %v933_v8, %v5313_v49 }
 0x52b   :  { %v5316_v30 = vpop.permute.xlu1 %5315  ;;  %v951_v15 = vpop.permute.xlu0 %950  ;;  %v4859_v31 = vpack.c.bf16 %v1015_v28, %v1014_v19 }
 0x52c   :  { %v5318_v32 = vunpack.i.h.bf16 %v5316_v30  ;;  %v5317_v50 = vunpack.i.l.bf16 %v5316_v30 }
 0x52d   :  { %4860 = vmatprep.subr.bf16.mxu0 %v4859_v31 }
 0x52e   :  { %4862 = vmatpush3.bf16.msra.mxu0 %v4859_v31  ;;  %v1016_v40 = vsel %vm8187_vm10, %v936_v22, %v5317_v50  ;;  %v1017_v35 = vsel %vm8187_vm10, %v939_v17, %v5318_v32  ;;  %v921_v17 = vld [vmem:[%s8148_s3 + $0x8] sm:$0xff]  ;;  %s6299_s3 = smov 2  }
 0x52f   :  { %v948_v42 = vpop.permute.xlu1 %947  ;;  %v5321_v44 = vpop.permute.xlu0 %5320  ;;  %v4863_v47 = vpack.c.bf16 %v1017_v35, %v1016_v40 }
 0x530   :  { %v5323_v53 = vunpack.i.h.bf16 %v5321_v44  ;;  %v5322_v56 = vunpack.i.l.bf16 %v5321_v44 }
 0x531   :  { %4864 = vmatprep.subr.bf16.mxu0 %v4863_v47 }
 0x532   :  { %4866 = vmatpush3.bf16.msra.mxu0 %v4863_v47  ;;  %v1018_v48 = vsel %vm8187_vm10, %v942_v9, %v5322_v56  ;;  %v1019_v57 = vsel %vm8187_vm10, %v945_v25, %v5323_v53 }
 0x533   :  { %v5326_v58 = vpop.permute.xlu1 %5325  ;;  %v954_v59 = vpop.permute.xlu0 %953  ;;  %v4867_v60 = vpack.c.bf16 %v1019_v57, %v1018_v48 }
 0x534   :  { %v5328_v61 = vunpack.i.h.bf16 %v5326_v58  ;;  %v5327_v27 = vunpack.i.l.bf16 %v5326_v58 }
 0x535   :  { %4868 = vmatprep.subr.bf16.mxu0 %v4867_v60 }
 0x536   :  { %4870 = vmatpush3.bf16.msra.mxu0 %v4867_v60  ;;  %v1020_v63 = vsel %vm8187_vm10, %v948_v42, %v5327_v27  ;;  %v1021_v26 = vsel %vm8187_vm10, %v951_v15, %v5328_v61 }
 0x537   :  { %v5331_v21 = vpop.permute.xlu0 %5330  ;;  %v4871_v2 = vpack.c.bf16 %v1021_v26, %v1020_v63  ;;  %v957_v10 = vpop.permute.xlu1 %956 }
 0x538   :  { %v5333_v7 = vunpack.i.h.bf16 %v5331_v21  ;;  %v5332_v36 = vunpack.i.l.bf16 %v5331_v21 }
 0x539   :  { %4872 = vmatprep.subr.bf16.mxu0 %v4871_v2 }
 0x53a   :  { %4874 = vmatpush3.bf16.msra.mxu0 %v4871_v2  ;;  %v1022_v51 = vsel %vm8187_vm10, %v954_v59, %v5332_v36  ;;  %v1023_v16 = vsel %vm8187_vm10, %v957_v10, %v5333_v7 }
 0x53b   :  { %v4875_v8 = vpack.c.bf16 %v1023_v16, %v1022_v51 }
 0x53d   :  { %4876 = vmatprep.subr.bf16.mxu0 %v4875_v8 }
 0x53e   :  { %4878 = vmatpush3.bf16.msra.mxu0 %v4875_v8 }
 0x53f   :  { %4880 = vmatprep.subr.msk.bf16.mxu0 %vm6630_vm0, %v6296_v38 }
 0x541   :  { %4666 = vmatmul.mubr.msk.f32.vlgmr.msra.gmra.mrb[2].mxu0 %vm8186_vm3, %v921_v17  ;;  %v1238_v17 = vld [vmem:[%s8150_s6] sm:$0xff] }
 0x542   :  { %4882 = vmatpush3.bf16.msk.msra.mxu0 %vm6630_vm0, %v6296_v38 }
 0x543   :  { %4884 = vmatprep.subr.msk.bf16.mxu0 %vm6650_vm8, %v6296_v38 }
 0x546   :  { %4886 = vmatpush3.bf16.msk.msra.mxu0 %vm6650_vm8, %v6296_v38  ;;  %vm8233_vm8 = vnez %v8218_v43 }
 0x547   :  { %4888 = vmatprep.subr.msk.bf16.mxu0 %vm6701_vm14, %v6296_v38 }
 0x548   :  { %v1027_v55 = vpop.permute.xlu1 %1026  ;;  %v1032_v11 = vpop.permute.xlu0 %1031 }
 0x54a   :  { %4890 = vmatpush3.bf16.msk.msra.mxu0 %vm6701_vm14, %v6296_v38  ;;  %vm1152_vm14 = vcmask 785408  }
 0x54b   :  { %4892 = vmatprep.subr.msk.bf16.mxu0 %vm6728_vm15, %v6296_v38 }
 0x54e   :  { %4894 = vmatpush3.bf16.msk.msra.mxu0 %vm6728_vm15, %v6296_v38  ;;  %vm1250_vm15 = vcmask 15360  }
 0x54f   :  { %4896 = vmatprep.subr.msk.bf16.mxu0 %vm6757_vm1, %v6296_v38 }
 0x552   :  { %4898 = vmatpush3.bf16.msk.msra.mxu0 %vm6757_vm1, %v6296_v38  ;;  %vm1253_vm1 = vcmask 97280  }
 0x553   :  { %4900 = vmatprep.subr.msk.bf16.mxu0 %vm8233_vm8, %v6296_v38 }
 0x556   :  { %4902 = vmatpush3.bf16.msk.msra.mxu0 %vm8233_vm8, %v6296_v38 }
 0x557   :  { %4924 = vmatprep.subr.msk.bf16.mxu0 %vm6630_vm0, %v6296_v38 }
 0x614   :  { %v4667_v20 = vpop.f32.mrb[2].mxu0 }
 0x615   :  { %v1113_v22 = vadd.f32 %v4667_v20, %v1032_v11  ;;  %v1107_v9 = vpop.f32.mrb[3].mxu0 }
 0x616   :  { %v1108_v25 = vadd.f32 %v1107_v9, %v1027_v55  ;;  %v1240_v55 = vld [vmem:[%s8150_s6 + $0x10] sm:$0xff] }
 0x617   :  { %v1117_v29 = vmax.f32 %v1113_v22, 0.0 }
 0x618   :  { %v1116_v18 = vmax.f32 %v1108_v25, 0.0 }
 0x619   :  { %1122 = vrot.lane.b32.xlu0 %v1117_v29, %s6285_s0 }
 0x61a   :  { %1120 = vrot.lane.b32.xlu1 %v1116_v18, %s6285_s0 }
 0x61d   :  { %1130 = vrot.lane.b32.xlu0 %v1117_v29, %s6286_s30 }
 0x61e   :  { %1128 = vrot.lane.b32.xlu1 %v1116_v18, %s6286_s30 }
 0x621   :  { %1138 = vrot.lane.b32.xlu0 %v1117_v29, %s6287_s18 }
 0x622   :  { %1136 = vrot.lane.b32.xlu1 %v1116_v18, %s6287_s18 }
 0x625   :  { %1146 = vrot.lane.b32.xlu0 %v1117_v29, %s6288_s19 }
 0x626   :  { %1144 = vrot.lane.b32.xlu1 %v1116_v18, %s6288_s19 }
 0x68b   :  { %v1123_v43 = vpop.permute.xlu0 %1122 }
 0x68c   :  { %v1121_v49 = vpop.permute.xlu1 %1120  ;;  %v1127_v15 = vmax.f32 %v1117_v29, %v1123_v43 }
 0x68d   :  { %v1126_v28 = vmax.f32 %v1116_v18, %v1121_v49 }
 0x68f   :  { %v1131_v62 = vpop.permute.xlu0 %1130 }
 0x690   :  { %v1129_v19 = vpop.permute.xlu1 %1128  ;;  %v1135_v50 = vmax.f32 %v1127_v15, %v1131_v62  ;;  %v1234_v62 = vld [vmem:[%s8151_s5] sm:$0xff] }
 0x691   :  { %v1134_v32 = vmax.f32 %v1126_v28, %v1129_v19  ;;  %4715 = vmatprep.mubr.msk.f32.mxu1 %vm8186_vm3, %v1234_v62  ;;  %v1239_v28 = vld [vmem:[%s8150_s6 + $0x8] sm:$0xff] }
 0x693   :  { %v1139_v30 = vpop.permute.xlu0 %1138 }
 0x694   :  { %v1137_v31 = vpop.permute.xlu1 %1136  ;;  %v1143_v42 = vmax.f32 %v1135_v50, %v1139_v30  ;;  %v1241_v30 = vld [vmem:[%s8150_s6 + $0x18] sm:$0xff] }
 0x695   :  { %v1142_v40 = vmax.f32 %v1134_v32, %v1137_v31 }
 0x697   :  { %v1147_v35 = vpop.permute.xlu0 %1146 }
 0x698   :  { %v1145_v44 = vpop.permute.xlu1 %1144  ;;  %v1151_v53 = vmax.f32 %v1143_v42, %v1147_v35 }
 0x699   :  { %v1150_v47 = vmax.f32 %v1142_v40, %v1145_v44 }
 0x69b   :  { %4692 = vmatprep.mubr.msk.f32.mxu0 %vm1152_vm14, %v1150_v47 }
 0x69c   :  { %4693 = vmatmul.mubr.msk.f32.vlgmr.msra.gmra.mrb[4].mxu0 %vm1152_vm14, %v1151_v53  ;;  %vm1539_vm14 = vcmask 130048  }
 0x69d   :  { %4926 = vmatpush3.bf16.msk.msra.mxu0 %vm6630_vm0, %v6296_v38  ;;  %vm8234_vm0 = vcmask 80896  }
 0x69e   :  { %4927 = vmatprep.subr.bf16.mxu0 %v6295_v34  ;;  %vm8235_vm12 = vmmov %vm8234_vm0 }
 0x69f   :  { %vm8236_vm7 = vmmov %vm8234_vm0 }
 0x6a0   :  { %vm8237_vm13 = vmmov %vm8234_vm0 }
 0x6a1   :  { %vm8238_vm2 = vmmov %vm8234_vm0 }
 0x6a2   :  { %vm8239_vm6 = vmmov %vm8234_vm0 }
 0x6a3   :  { %vm8240_vm11 = vmmov %vm8234_vm0 }
 0x6a4   :  { %vm8241_vm5 = vmmov %vm8234_vm0 }
 0x6a5   :  { %vm8242_vm9 = vmmov %vm8234_vm0 }
 0x6a6   :  { %vm8243_vm8 = vmmov %vm8234_vm0 }
 0x76f   :  { %v4694_v56 = vpop.f32.mrb[4].mxu0 }
 0x770   :  { %v1225_v48 = vpop.f32.mrb[5].mxu0 }
 0x771   :  { %v5340_v57 = vpack.i.bf16 %v4694_v56, %v1225_v48 }
 0x773   :  { %5341 = vrot.lane.b32.xlu0 %v5340_v57, %s6299_s3  ;;  %5336 = vrot.lane.b32.xlu1 %v5340_v57, %s6284_s29 }
 0x7e5   :  { %v5342_v58 = vpop.permute.xlu0 %5341  ;;  %v5337_v59 = vpop.permute.xlu1 %5336 }
 0x7e6   :  { %v5339_v60 = vunpack.i.h.bf16 %v5337_v59  ;;  %v5338_v61 = vunpack.i.l.bf16 %v5337_v59  ;;  %v5344_v27 = vunpack.i.h.bf16 %v5342_v58  ;;  %v5343_v63 = vunpack.i.l.bf16 %v5342_v58 }
 0x7e8   :  { %v1289_v52 = vsel %vm1250_vm15, 0.0, %v5339_v60  ;;  %v1288_v26 = vsel %vm1250_vm15, 0.0, %v5338_v61  ;;  %v1252_v36 = vsel %vm1250_vm15, 0.0, %v5344_v27  ;;  %v1251_v10 = vsel %vm1250_vm15, 0.0, %v5343_v63 }
 0x7e9   :  { %v1291_v21 = vsel %vm1253_vm1, %v1289_v52, 0.0  ;;  %v1290_v2 = vsel %vm1253_vm1, %v1288_v26, 0.0  ;;  %v1255_v51 = vsel %vm1253_vm1, %v1252_v36, 0.0  ;;  %v1254_v16 = vsel %vm1253_vm1, %v1251_v10, 0.0 }
 0x7ea   :  { %v5350_v7 = vpack.i.bf16 %v1291_v21, %v1290_v2  ;;  %v5370_v8 = vpack.i.bf16 %v1255_v51, %v1254_v16 }
 0x7ec   :  { %5351 = vrot.lane.b32.xlu0 %v5350_v7, %s6286_s30  ;;  %5346 = vrot.lane.b32.xlu1 %v5350_v7, %s6285_s0 }
 0x7f0   :  { %5361 = vrot.lane.b32.xlu0 %v5350_v7, %s6288_s19  ;;  %5356 = vrot.lane.b32.xlu1 %v5350_v7, %s6287_s18 }
 0x7f4   :  { %5371 = vrot.lane.b32.xlu0 %v5370_v8, %s6285_s0  ;;  %5366 = vrot.lane.b32.xlu1 %v5350_v7, %s6281_s27 }
 0x7f8   :  { %5376 = vrot.lane.b32.xlu0 %v5370_v8, %s6286_s30 }
 0x7fc   :  { %5381 = vrot.lane.b32.xlu0 %v5370_v8, %s6287_s18 }
 0x800   :  { %5386 = vrot.lane.b32.xlu0 %v5370_v8, %s6288_s19 }
 0x804   :  { %1352 = vperm.xlu0 %5288, %v1238_v17  }
 0x808   :  { %1362 = vperm.xlu0 %5288, %v1240_v55  }
 0x85e   :  { %v5352_v11 = vpop.permute.xlu0 %5351  ;;  %v5347_v20 = vpop.permute.xlu1 %5346 }
 0x85f   :  { %5391 = vrot.lane.b32.xlu1 %v5347_v20, %s6281_s27 }
 0x862   :  { %v5357_v22 = vpop.permute.xlu1 %5356  ;;  %v5362_v9 = vpop.permute.xlu0 %5361 }
 0x863   :  { %5396 = vrot.lane.b32.xlu1 %v5352_v11, %s6281_s27 }
 0x866   :  { %v5367_v25 = vpop.permute.xlu1 %5366  ;;  %v5372_v15 = vpop.permute.xlu0 %5371 }
 0x867   :  { %v5369_v29 = vunpack.i.h.bf16 %v5367_v25  ;;  %v5368_v18 = vunpack.i.l.bf16 %v5367_v25  ;;  %5401 = vrot.lane.b32.xlu1 %v5357_v22, %s6281_s27  ;;  %v5374_v50 = vunpack.i.h.bf16 %v5372_v15  ;;  %v5373_v40 = vunpack.i.l.bf16 %v5372_v15 }
 0x869   :  { %v1340_v43 = vsel %vm8234_vm0, %v1254_v16, %v5368_v18  ;;  %v1341_v49 = vsel %vm8235_vm12, %v1255_v51, %v5369_v29  ;;  %v1235_v29 = vld [vmem:[%s8151_s5 + $0x8] sm:$0xff]  ;;  %v1236_v18 = vld [vmem:[%s8151_s5 + $0x10] sm:$0xff]  ;;  %vm8244_vm0 = vcmask 31744  }
 0x86a   :  { %v4903_v19 = vpack.c.bf16 %v1341_v49, %v1340_v43  ;;  %v5377_v31 = vpop.permute.xlu0 %5376  ;;  %v1237_v43 = vld [vmem:[%s8151_s5 + $0x18] sm:$0xff]  ;;  %vm8245_vm12 = vmmov %vm8244_vm0 }
 0x86b   :  { %5406 = vrot.lane.b32.xlu1 %v5362_v9, %s6281_s27  ;;  %v5379_v57 = vunpack.i.h.bf16 %v5377_v31  ;;  %v5378_v58 = vunpack.i.l.bf16 %v5377_v31 }
 0x86c   :  { %4904 = vmatprep.subr.bf16.mxu1 %v4903_v19 }
 0x86d   :  { %4906 = vmatpush3.bf16.msra.mxu1 %v4903_v19 }
 0x86e   :  { %v5382_v53 = vpop.permute.xlu0 %5381 }
 0x86f   :  { %1357 = vperm.xlu1 %5334, %v1239_v28   ;;  %v5384_v26 = vunpack.i.h.bf16 %v5382_v53  ;;  %v5383_v21 = vunpack.i.l.bf16 %v5382_v53 }
 0x872   :  { %v5387_v36 = vpop.permute.xlu0 %5386 }
 0x873   :  { %1367 = vperm.xlu1 %5334, %v1241_v30   ;;  %v5389_v17 = vunpack.i.h.bf16 %v5387_v36  ;;  %v5388_v55 = vunpack.i.l.bf16 %v5387_v36 }
 0x883   :  { %v1353_v19 = vpop.permute.xlu0 %1352 }
 0x8d1   :  { %v5392_v32 = vpop.permute.xlu1 %5391 }
 0x8d2   :  { %v5394_v35 = vunpack.i.h.bf16 %v5392_v32  ;;  %v5393_v42 = vunpack.i.l.bf16 %v5392_v32 }
 0x8d4   :  { %v1342_v44 = vsel %vm8236_vm7, %v5373_v40, %v5393_v42  ;;  %v1343_v47 = vsel %vm8237_vm13, %v5374_v50, %v5394_v35  ;;  %vm8246_vm7 = vmmov %vm8244_vm0 }
 0x8d5   :  { %v5397_v56 = vpop.permute.xlu1 %5396  ;;  %v4907_v48 = vpack.c.bf16 %v1343_v47, %v1342_v44  ;;  %v1363_v47 = vpop.permute.xlu0 %1362  ;;  %vm8247_vm13 = vmmov %vm8244_vm0 }
 0x8d6   :  { %v5399_v59 = vunpack.i.h.bf16 %v5397_v56  ;;  %v5398_v60 = vunpack.i.l.bf16 %v5397_v56 }
 0x8d7   :  { %4908 = vmatprep.subr.bf16.mxu1 %v4907_v48 }
 0x8d8   :  { %4910 = vmatpush3.bf16.msra.mxu1 %v4907_v48  ;;  %v1344_v61 = vsel %vm8238_vm2, %v5378_v58, %v5398_v60  ;;  %v1345_v27 = vsel %vm8239_vm6, %v5379_v57, %v5399_v59  ;;  %vm8248_vm2 = vmmov %vm8244_vm0 }
 0x8d9   :  { %v5402_v63 = vpop.permute.xlu1 %5401  ;;  %v4911_v52 = vpack.c.bf16 %v1345_v27, %v1344_v61  ;;  %vm8249_vm6 = vmmov %vm8244_vm0 }
 0x8da   :  { %v5404_v2 = vunpack.i.h.bf16 %v5402_v63  ;;  %v5403_v7 = vunpack.i.l.bf16 %v5402_v63 }
 0x8db   :  { %4912 = vmatprep.subr.bf16.mxu1 %v4911_v52 }
 0x8dc   :  { %4914 = vmatpush3.bf16.msra.mxu1 %v4911_v52  ;;  %v1346_v10 = vsel %vm8240_vm11, %v5383_v21, %v5403_v7  ;;  %v1347_v51 = vsel %vm8241_vm5, %v5384_v26, %v5404_v2  ;;  %vm8250_vm11 = vmmov %vm8244_vm0 }
 0x8dd   :  { %v5407_v16 = vpop.permute.xlu1 %5406  ;;  %v4915_v8 = vpack.c.bf16 %v1347_v51, %v1346_v10  ;;  %vm8251_vm5 = vmmov %vm8244_vm0 }
 0x8de   :  { %v5409_v11 = vunpack.i.h.bf16 %v5407_v16  ;;  %v5408_v20 = vunpack.i.l.bf16 %v5407_v16 }
 0x8df   :  { %4916 = vmatprep.subr.bf16.mxu1 %v4915_v8 }
 0x8e0   :  { %4918 = vmatpush3.bf16.msra.mxu1 %v4915_v8  ;;  %v1348_v22 = vsel %vm8242_vm9, %v5388_v55, %v5408_v20  ;;  %v1349_v9 = vsel %vm8243_vm8, %v5389_v17, %v5409_v11  ;;  %vm1901_vm9 = vcmask 261120   ;;  %vm8252_vm8 = vmmov %vm8244_vm0 }
 0x8e1   :  { %v4919_v25 = vpack.c.bf16 %v1349_v9, %v1348_v22 }
 0x8e3   :  { %4920 = vmatprep.subr.bf16.mxu1 %v4919_v25 }
 0x8e4   :  { %4922 = vmatpush3.bf16.msra.mxu1 %v4919_v25 }
 0x8e7   :  { %4716 = vmatmul.mubr.msk.f32.vlgmr.msra.gmra.mrb[6].mxu1 %vm8186_vm3, %v1235_v29 }
 0x8e8   :  { %4718 = vmatprep.mubr.msk.f32.mxu1 %vm8186_vm3, %v1236_v18 }
 0x8eb   :  { %4719 = vmatmul.mubr.msk.f32.gmra.mrb[8].mxu1 %vm8186_vm3, %v1237_v43 }
 0x8ee   :  { %v1358_v49 = vpop.permute.xlu1 %1357 }
 0x8f2   :  { %v1368_v35 = vpop.permute.xlu1 %1367 }
 0x9ba   :  { %v4717_v62 = vpop.f32.mrb[6].mxu1 }
 0x9bb   :  { %v1454_v28 = vadd.f32 %v4717_v62, %v1358_v49  ;;  %v1448_v30 = vpop.f32.mrb[7].mxu1 }
 0x9bc   :  { %v1449_v15 = vadd.f32 %v1448_v30, %v1353_v19 }
 0x9bd   :  { %v1468_v31 = vmax.f32 %v1454_v28, 0.0 }
 0x9be   :  { %v1467_v32 = vmax.f32 %v1449_v15, 0.0  ;;  %v4720_v50 = vpop.f32.mrb[8].mxu1 }
 0x9bf   :  { %1477 = vrot.lane.b32.xlu1 %v1468_v31, %s6285_s0  ;;  %v1458_v40 = vpop.f32.mrb[9].mxu1  ;;  %v1464_v42 = vadd.f32 %v4720_v50, %v1368_v35 }
 0x9c0   :  { %1475 = vrot.lane.b32.xlu0 %v1467_v32, %s6285_s0  ;;  %v1459_v53 = vadd.f32 %v1458_v40, %v1363_v47 }
 0x9c1   :  { %v1470_v44 = vmax.f32 %v1464_v42, 0.0 }
 0x9c2   :  { %v1469_v56 = vmax.f32 %v1459_v53, 0.0 }
 0x9c3   :  { %1493 = vrot.lane.b32.xlu1 %v1468_v31, %s6286_s30 }
 0x9c4   :  { %1491 = vrot.lane.b32.xlu0 %v1467_v32, %s6286_s30 }
 0x9c7   :  { %1509 = vrot.lane.b32.xlu1 %v1468_v31, %s6287_s18 }
 0x9c8   :  { %1481 = vrot.lane.b32.xlu0 %v1470_v44, %s6285_s0 }
 0x9cb   :  { %1525 = vrot.lane.b32.xlu1 %v1468_v31, %s6288_s19 }
 0x9cc   :  { %1497 = vrot.lane.b32.xlu0 %v1470_v44, %s6286_s30 }
 0x9cf   :  { %1507 = vrot.lane.b32.xlu1 %v1467_v32, %s6287_s18 }
 0x9d0   :  { %1479 = vrot.lane.b32.xlu0 %v1469_v56, %s6285_s0 }
 0x9d3   :  { %1523 = vrot.lane.b32.xlu1 %v1467_v32, %s6288_s19 }
 0x9d4   :  { %1495 = vrot.lane.b32.xlu0 %v1469_v56, %s6286_s30 }
 0x9d7   :  { %1513 = vrot.lane.b32.xlu1 %v1470_v44, %s6287_s18 }
 0x9d8   :  { %1511 = vrot.lane.b32.xlu0 %v1469_v56, %s6287_s18 }
 0x9db   :  { %1529 = vrot.lane.b32.xlu1 %v1470_v44, %s6288_s19 }
 0x9dc   :  { %1527 = vrot.lane.b32.xlu0 %v1469_v56, %s6288_s19 }
 0xa31   :  { %v1478_v48 = vpop.permute.xlu1 %1477 }
 0xa32   :  { %v1476_v57 = vpop.permute.xlu0 %1475  ;;  %v1488_v26 = vmax.f32 %v1468_v31, %v1478_v48 }
 0xa33   :  { %v1487_v52 = vmax.f32 %v1467_v32, %v1476_v57 }
 0xa35   :  { %v1494_v58 = vpop.permute.xlu1 %1493 }
 0xa36   :  { %v1492_v59 = vpop.permute.xlu0 %1491  ;;  %v1504_v36 = vmax.f32 %v1488_v26, %v1494_v58 }
 0xa37   :  { %v1503_v2 = vmax.f32 %v1487_v52, %v1492_v59 }
 0xa39   :  { %v1510_v60 = vpop.permute.xlu1 %1509 }
 0xa3a   :  { %v1482_v61 = vpop.permute.xlu0 %1481  ;;  %v1520_v51 = vmax.f32 %v1504_v36, %v1510_v60 }
 0xa3b   :  { %v1490_v22 = vmax.f32 %v1470_v44, %v1482_v61 }
 0xa3d   :  { %v1526_v27 = vpop.permute.xlu1 %1525 }
 0xa3e   :  { %v1498_v63 = vpop.permute.xlu0 %1497  ;;  %v1536_v55 = vmax.f32 %v1520_v51, %v1526_v27 }
 0xa3f   :  { %v1506_v29 = vmax.f32 %v1490_v22, %v1498_v63 }
 0xa41   :  { %v1508_v21 = vpop.permute.xlu1 %1507 }
 0xa42   :  { %v1480_v7 = vpop.permute.xlu0 %1479  ;;  %v1519_v10 = vmax.f32 %v1503_v2, %v1508_v21 }
 0xa43   :  { %v1489_v11 = vmax.f32 %v1469_v56, %v1480_v7 }
 0xa45   :  { %v1524_v16 = vpop.permute.xlu1 %1523 }
 0xa46   :  { %v1535_v8 = vmax.f32 %v1519_v10, %v1524_v16  ;;  %v1496_v17 = vpop.permute.xlu0 %1495 }
 0xa47   :  { %v1505_v25 = vmax.f32 %v1489_v11, %v1496_v17 }
 0xa48   :  { %4725 = vmatprep.mubr.msk.f32.mxu0 %vm1539_vm14, %v1535_v8 }
 0xa49   :  { %v1514_v20 = vpop.permute.xlu1 %1513  ;;  %4726 = vmatmul.mubr.msk.f32.vlgmr.msra.gmra.mrb[6].mxu0 %vm1539_vm14, %v1536_v55 }
 0xa4a   :  { %v1512_v9 = vpop.permute.xlu0 %1511  ;;  %v1522_v49 = vmax.f32 %v1506_v29, %v1514_v20 }
 0xa4b   :  { %v1521_v18 = vmax.f32 %v1505_v25, %v1512_v9 }
 0xa4d   :  { %v1530_v43 = vpop.permute.xlu1 %1529 }
 0xa4e   :  { %v1528_v62 = vpop.permute.xlu0 %1527  ;;  %v1538_v28 = vmax.f32 %v1522_v49, %v1530_v43 }
 0xa4f   :  { %v1537_v19 = vmax.f32 %v1521_v18, %v1528_v62 }
 0xa51   :  { %4728 = vmatprep.mubr.msk.f32.mxu0 %vm1539_vm14, %v1537_v19 }
 0xa52   :  { %4729 = vmatmul.mubr.msk.f32.gmra.mrb[8].mxu0 %vm1539_vm14, %v1538_v28  ;;  %vm8253_vm14 = vmmov %vm8244_vm0 }
 0xb1c   :  { %v4727_v30 = vpop.f32.mrb[6].mxu0 }
 0xb1d   :  { %v1738_v15 = vsel %vm1250_vm15, 0.0, %v4727_v30  ;;  %v1618_v31 = vpop.f32.mrb[7].mxu0 }
 0xb1e   :  { %v1742_v32 = vsel %vm8244_vm0, %v1738_v15, 0.0  ;;  %v5410_v50 = vpack.i.bf16 %v4727_v30, %v1618_v31  ;;  %v1737_v40 = vsel %vm1250_vm15, 0.0, %v1618_v31 }
 0xb1f   :  { %v1741_v35 = vsel %vm8245_vm12, %v1737_v40, 0.0  ;;  %vm8254_vm12 = vmmov %vm8244_vm0 }
 0xb20   :  { %5411 = vrot.lane.b32.xlu0 %v5410_v50, %s6299_s3  ;;  %v5415_v42 = vpack.i.bf16 %v1742_v32, %v1741_v35 }
 0xb22   :  { %5416 = vrot.lane.b32.xlu1 %v5415_v42, %s6285_s0 }
 0xb25   :  { %v4730_v44 = vpop.f32.mrb[8].mxu0 }
 0xb26   :  { %v1740_v47 = vsel %vm1250_vm15, 0.0, %v4730_v44  ;;  %v1628_v53 = vpop.f32.mrb[9].mxu0 }
 0xb27   :  { %v1744_v56 = vsel %vm8246_vm7, %v1740_v47, 0.0  ;;  %v5420_v48 = vpack.i.bf16 %v4730_v44, %v1628_v53  ;;  %v1739_v57 = vsel %vm1250_vm15, 0.0, %v1628_v53  ;;  %v1638_v44 = vld [vmem:[%s8152_s7 + $0x8] sm:$0xff]  ;;  %v1653_v53 = vld [vmem:[%s8153_s8] sm:$0xff]  ;;  %vm8255_vm7 = vmmov %vm8244_vm0 }
 0xb28   :  { %v1743_v58 = vsel %vm8247_vm13, %v1739_v57, 0.0  ;;  %4415 = vmatprep.mubr.msk.f32.mxu0 %vm1901_vm9, %v1638_v44  ;;  %v1654_v47 = vld [vmem:[%s8153_s8 + $0x8] sm:$0xff]  ;;  %vm8256_vm13 = vmmov %vm8244_vm0 }
 0xb29   :  { %5421 = vrot.lane.b32.xlu0 %v5420_v48, %s6299_s3  ;;  %v5425_v59 = vpack.i.bf16 %v1744_v56, %v1743_v58  ;;  %v1656_v56 = vld [vmem:[%s8153_s8 + $0x18] sm:$0xff]  ;;  %v1655_v48 = vld [vmem:[%s8153_s8 + $0x10] sm:$0xff]  ;;  %v1658_v57 = vld [vmem:[%s8153_s8 + $0x28] sm:$0xff] }
 0xb2a   :  { %v1657_v58 = vld [vmem:[%s8153_s8 + $0x20] sm:$0xff] }
 0xb2b   :  { %5426 = vrot.lane.b32.xlu1 %v5425_v59, %s6285_s0 }
 0xb2d   :  { %5431 = vrot.lane.b32.xlu0 %v5415_v42, %s6286_s30 }
 0xb2f   :  { %5436 = vrot.lane.b32.xlu1 %v5425_v59, %s6286_s30 }
 0xb31   :  { %5441 = vrot.lane.b32.xlu0 %v5415_v42, %s6287_s18 }
 0xb33   :  { %5446 = vrot.lane.b32.xlu1 %v5425_v59, %s6287_s18 }
 0xb35   :  { %5451 = vrot.lane.b32.xlu0 %v5415_v42, %s6288_s19 }
 0xb37   :  { %5456 = vrot.lane.b32.xlu1 %v5425_v59, %s6288_s19 }
 0xb39   :  { %5461 = vrot.lane.b32.xlu0 %v5415_v42, %s6299_s3 }
 0xb3b   :  { %5466 = vrot.lane.b32.xlu1 %v5425_v59, %s6299_s3  ;;  %v1660_v59 = vld [vmem:[%s8153_s8 + $0x38] sm:$0xff] }
 0xb92   :  { %v5412_v60 = vpop.permute.xlu0 %5411 }
 0xb93   :  { %v5414_v61 = vunpack.i.h.bf16 %v5412_v60  ;;  %v5413_v27 = vunpack.i.l.bf16 %v5412_v60  ;;  %v1659_v60 = vld [vmem:[%s8153_s8 + $0x30] sm:$0xff] }
 0xb94   :  { %v5417_v63 = vpop.permute.xlu1 %5416 }
 0xb95   :  { %v1678_v52 = vsel %vm1250_vm15, 0.0, %v5414_v61  ;;  %v1677_v26 = vsel %vm1250_vm15, 0.0, %v5413_v27  ;;  %5476 = vrot.lane.b32.xlu1 %v5417_v63, %s6299_s3 }
 0xb96   :  { %v1682_v21 = vsel %vm8248_vm2, %v1678_v52, 0.0  ;;  %v1681_v2 = vsel %vm8249_vm6, %v1677_v26, 0.0  ;;  %vm8257_vm2 = vmmov %vm8244_vm0 }
 0xb97   :  { %v5470_v7 = vpack.i.bf16 %v1682_v21, %v1681_v2  ;;  %vm8258_vm6 = vmmov %vm8244_vm0 }
 0xb99   :  { %5471 = vrot.lane.b32.xlu0 %v5470_v7, %s6285_s0 }
 0xb9b   :  { %v5422_v36 = vpop.permute.xlu0 %5421 }
 0xb9c   :  { %v5424_v10 = vunpack.i.h.bf16 %v5422_v36  ;;  %v5423_v51 = vunpack.i.l.bf16 %v5422_v36 }
 0xb9d   :  { %v5427_v16 = vpop.permute.xlu1 %5426 }
 0xb9e   :  { %v1680_v8 = vsel %vm1250_vm15, 0.0, %v5424_v10  ;;  %v1679_v17 = vsel %vm1250_vm15, 0.0, %v5423_v51  ;;  %5491 = vrot.lane.b32.xlu1 %v5427_v16, %s6299_s3 }
 0xb9f   :  { %v1684_v55 = vsel %vm8250_vm11, %v1680_v8, 0.0  ;;  %v1683_v11 = vsel %vm8251_vm5, %v1679_v17, 0.0  ;;  %v5432_v20 = vpop.permute.xlu0 %5431  ;;  %vm8259_vm11 = vmmov %vm8244_vm0 }
 0xba0   :  { %v5480_v22 = vpack.i.bf16 %v1684_v55, %v1683_v11  ;;  %vm8260_vm5 = vmmov %vm8244_vm0 }
 0xba1   :  { %v5437_v9 = vpop.permute.xlu1 %5436 }
 0xba2   :  { %5481 = vrot.lane.b32.xlu0 %v5480_v22, %s6285_s0  ;;  %5496 = vrot.lane.b32.xlu1 %v5432_v20, %s6299_s3 }
 0xba3   :  { %v5442_v25 = vpop.permute.xlu0 %5441 }
 0xba5   :  { %v5447_v29 = vpop.permute.xlu1 %5446 }
 0xba6   :  { %5486 = vrot.lane.b32.xlu0 %v5470_v7, %s6286_s30  ;;  %5511 = vrot.lane.b32.xlu1 %v5437_v9, %s6299_s3 }
 0xba7   :  { %v5452_v18 = vpop.permute.xlu0 %5451 }
 0xba9   :  { %v5457_v43 = vpop.permute.xlu1 %5456 }
 0xbaa   :  { %5501 = vrot.lane.b32.xlu0 %v5480_v22, %s6286_s30  ;;  %5516 = vrot.lane.b32.xlu1 %v5442_v25, %s6299_s3 }
 0xbab   :  { %v5462_v49 = vpop.permute.xlu0 %5461 }
 0xbac   :  { %v5464_v62 = vunpack.i.h.bf16 %v5462_v49  ;;  %v5463_v19 = vunpack.i.l.bf16 %v5462_v49 }
 0xbad   :  { %v5467_v28 = vpop.permute.xlu1 %5466 }
 0xbae   :  { %v1841_v30 = vsel %vm1250_vm15, %v1681_v2, %v5463_v19  ;;  %v1842_v15 = vsel %vm1250_vm15, %v1682_v21, %v5464_v62  ;;  %v5469_v31 = vunpack.i.h.bf16 %v5467_v28  ;;  %v5468_v32 = vunpack.i.l.bf16 %v5467_v28  ;;  %5506 = vrot.lane.b32.xlu0 %v5470_v7, %s6287_s18  ;;  %5531 = vrot.lane.b32.xlu1 %v5447_v29, %s6299_s3 }
 0xbaf   :  { %v4928_v50 = vpack.c.bf16 %v1842_v15, %v1841_v30 }
 0xbb0   :  { %v1843_v40 = vsel %vm1250_vm15, %v1683_v11, %v5468_v32  ;;  %v1844_v35 = vsel %vm1250_vm15, %v1684_v55, %v5469_v31 }
 0xbb1   :  { %4929 = vmatpush1.bf16.msra.mxu0 %v4928_v50  ;;  %v4931_v42 = vpack.c.bf16 %v1844_v35, %v1843_v40 }
 0xbb2   :  { %5521 = vrot.lane.b32.xlu0 %v5480_v22, %s6287_s18  ;;  %4930 = vmatprep.subr.bf16.mxu0 %v6295_v34 }
 0xbb3   :  { %5536 = vrot.lane.b32.xlu1 %v5452_v18, %s6299_s3 }
 0xbb5   :  { %4932 = vmatpush1.bf16.msra.mxu0 %v4931_v42 }
 0xbb6   :  { %5526 = vrot.lane.b32.xlu0 %v5470_v7, %s6288_s19  ;;  %4933 = vmatprep.subr.bf16.mxu0 %v6295_v34 }
 0xbb7   :  { %5546 = vrot.lane.b32.xlu1 %v5457_v43, %s6299_s3 }
 0xbba   :  { %5541 = vrot.lane.b32.xlu0 %v5480_v22, %s6288_s19 }
 0xbbb   :  { %1868 = vperm.xlu1 %5334, %v1654_v47  }
 0xbbe   :  { %1863 = vperm.xlu0 %5288, %v1653_v53  }
 0xbbf   :  { %1878 = vperm.xlu1 %5334, %v1656_v56  }
 0xbc2   :  { %1873 = vperm.xlu0 %5288, %v1655_v48  }
 0xbc3   :  { %1888 = vperm.xlu1 %5334, %v1658_v57  }
 0xbc6   :  { %1883 = vperm.xlu0 %5288, %v1657_v58  }
 0xbc7   :  { %1898 = vperm.xlu1 %5334, %v1660_v59  }
 0xbca   :  { %1893 = vperm.xlu0 %5288, %v1659_v60  }
 0xc07   :  { %v5477_v61 = vpop.permute.xlu1 %5476 }
 0xc08   :  { %v5479_v63 = vunpack.i.h.bf16 %v5477_v61  ;;  %v5478_v52 = vunpack.i.l.bf16 %v5477_v61 }
 0xc0b   :  { %v5472_v27 = vpop.permute.xlu0 %5471 }
 0xc0c   :  { %v5474_v26 = vunpack.i.h.bf16 %v5472_v27  ;;  %v5473_v21 = vunpack.i.l.bf16 %v5472_v27 }
 0xc0e   :  { %v1846_v2 = vsel %vm1250_vm15, %v5474_v26, %v5479_v63  ;;  %v1845_v7 = vsel %vm1250_vm15, %v5473_v21, %v5478_v52 }
 0xc0f   :  { %v4934_v36 = vpack.c.bf16 %v1846_v2, %v1845_v7 }
 0xc10   :  { %v5492_v10 = vpop.permute.xlu1 %5491 }
 0xc11   :  { %4935 = vmatpush1.bf16.msra.mxu0 %v4934_v36  ;;  %v5494_v16 = vunpack.i.h.bf16 %v5492_v10  ;;  %v5493_v8 = vunpack.i.l.bf16 %v5492_v10 }
 0xc12   :  { %4936 = vmatprep.subr.bf16.mxu0 %v6295_v34 }
 0xc14   :  { %v5482_v51 = vpop.permute.xlu0 %5481  ;;  %v5497_v22 = vpop.permute.xlu1 %5496 }
 0xc15   :  { %v5484_v17 = vunpack.i.h.bf16 %v5482_v51  ;;  %v5483_v55 = vunpack.i.l.bf16 %v5482_v51  ;;  %v5499_v29 = vunpack.i.h.bf16 %v5497_v22  ;;  %v5498_v18 = vunpack.i.l.bf16 %v5497_v22 }
 0xc17   :  { %v1848_v11 = vsel %vm1250_vm15, %v5484_v17, %v5494_v16  ;;  %v1847_v20 = vsel %vm1250_vm15, %v5483_v55, %v5493_v8 }
 0xc18   :  { %v5487_v9 = vpop.permute.xlu0 %5486  ;;  %v4937_v25 = vpack.c.bf16 %v1848_v11, %v1847_v20  ;;  %v5512_v28 = vpop.permute.xlu1 %5511 }
 0xc19   :  { %v5489_v43 = vunpack.i.h.bf16 %v5487_v9  ;;  %v5488_v49 = vunpack.i.l.bf16 %v5487_v9  ;;  %v5514_v31 = vunpack.i.h.bf16 %v5512_v28  ;;  %v5513_v32 = vunpack.i.l.bf16 %v5512_v28 }
 0xc1a   :  { %4938 = vmatpush1.bf16.msra.mxu0 %v4937_v25 }
 0xc1b   :  { %v1850_v62 = vsel %vm1250_vm15, %v5489_v43, %v5499_v29  ;;  %v1849_v19 = vsel %vm1250_vm15, %v5488_v49, %v5498_v18  ;;  %4939 = vmatprep.subr.bf16.mxu0 %v6295_v34 }
 0xc1c   :  { %v5502_v30 = vpop.permute.xlu0 %5501  ;;  %v4940_v15 = vpack.c.bf16 %v1850_v62, %v1849_v19  ;;  %v5517_v44 = vpop.permute.xlu1 %5516 }
 0xc1d   :  { %v5504_v50 = vunpack.i.h.bf16 %v5502_v30  ;;  %v5503_v40 = vunpack.i.l.bf16 %v5502_v30  ;;  %v5519_v56 = vunpack.i.h.bf16 %v5517_v44  ;;  %v5518_v48 = vunpack.i.l.bf16 %v5517_v44  ;;  %v1646_v44 = vld [vmem:[%s8152_s7 + $0x48] sm:$0xff] }
 0xc1e   :  { %4941 = vmatpush1.bf16.msra.mxu0 %v4940_v15  ;;  %v1637_v15 = vld [vmem:[%s8152_s7] sm:$0xff] }
 0xc1f   :  { %v1852_v35 = vsel %vm1250_vm15, %v5504_v50, %v5514_v31  ;;  %v1851_v42 = vsel %vm1250_vm15, %v5503_v40, %v5513_v32  ;;  %4942 = vmatprep.subr.bf16.mxu0 %v6295_v34  ;;  %v1640_v31 = vld [vmem:[%s8152_s7 + $0x18] sm:$0xff]  ;;  %v1639_v32 = vld [vmem:[%s8152_s7 + $0x10] sm:$0xff]  ;;  %v1642_v50 = vld [vmem:[%s8152_s7 + $0x28] sm:$0xff] }
 0xc20   :  { %v5507_v47 = vpop.permute.xlu0 %5506  ;;  %v4943_v53 = vpack.c.bf16 %v1852_v35, %v1851_v42  ;;  %v5532_v61 = vpop.permute.xlu1 %5531  ;;  %v1641_v40 = vld [vmem:[%s8152_s7 + $0x20] sm:$0xff]  ;;  %v1644_v35 = vld [vmem:[%s8152_s7 + $0x38] sm:$0xff]  ;;  %v1643_v42 = vld [vmem:[%s8152_s7 + $0x30] sm:$0xff] }
 0xc21   :  { %v5509_v57 = vunpack.i.h.bf16 %v5507_v47  ;;  %v5508_v58 = vunpack.i.l.bf16 %v5507_v47  ;;  %v5534_v52 = vunpack.i.h.bf16 %v5532_v61  ;;  %v5533_v26 = vunpack.i.l.bf16 %v5532_v61  ;;  %v1645_v47 = vld [vmem:[%s8152_s7 + $0x40] sm:$0xff] }
 0xc22   :  { %4944 = vmatpush1.bf16.msra.mxu0 %v4943_v53  ;;  %v1648_v53 = vld [vmem:[%s8152_s7 + $0x58] sm:$0xff] }
 0xc23   :  { %v1854_v59 = vsel %vm1250_vm15, %v5509_v57, %v5519_v56  ;;  %v1853_v60 = vsel %vm1250_vm15, %v5508_v58, %v5518_v48  ;;  %4945 = vmatprep.subr.bf16.mxu0 %v6295_v34  ;;  %v1647_v56 = vld [vmem:[%s8152_s7 + $0x50] sm:$0xff]  ;;  %v1650_v48 = vld [vmem:[%s8152_s7 + $0x68] sm:$0xff]  ;;  %v1649_v57 = vld [vmem:[%s8152_s7 + $0x60] sm:$0xff] }
 0xc24   :  { %v5522_v27 = vpop.permute.xlu0 %5521  ;;  %v4946_v63 = vpack.c.bf16 %v1854_v59, %v1853_v60  ;;  %v1652_v58 = vld [vmem:[%s8152_s7 + $0x78] sm:$0xff]  ;;  %v1651_v59 = vld [vmem:[%s8152_s7 + $0x70] sm:$0xff] }
 0xc25   :  { %v5524_v21 = vunpack.i.h.bf16 %v5522_v27  ;;  %v5523_v2 = vunpack.i.l.bf16 %v5522_v27  ;;  %v5537_v10 = vpop.permute.xlu1 %5536 }
 0xc26   :  { %4947 = vmatpush1.bf16.msra.mxu0 %v4946_v63  ;;  %v5539_v8 = vunpack.i.h.bf16 %v5537_v10  ;;  %v5538_v17 = vunpack.i.l.bf16 %v5537_v10 }
 0xc27   :  { %v1856_v7 = vsel %vm1250_vm15, %v5524_v21, %v5534_v52  ;;  %v1855_v36 = vsel %vm1250_vm15, %v5523_v2, %v5533_v26  ;;  %4948 = vmatprep.subr.bf16.mxu0 %v6295_v34 }
 0xc28   :  { %v5527_v51 = vpop.permute.xlu0 %5526  ;;  %v4949_v16 = vpack.c.bf16 %v1856_v7, %v1855_v36 }
 0xc29   :  { %v5529_v55 = vunpack.i.h.bf16 %v5527_v51  ;;  %v5528_v11 = vunpack.i.l.bf16 %v5527_v51  ;;  %v5547_v9 = vpop.permute.xlu1 %5546 }
 0xc2a   :  { %4950 = vmatpush1.bf16.msra.mxu0 %v4949_v16  ;;  %v5549_v18 = vunpack.i.h.bf16 %v5547_v9  ;;  %v5548_v43 = vunpack.i.l.bf16 %v5547_v9 }
 0xc2b   :  { %v1858_v20 = vsel %vm1250_vm15, %v5529_v55, %v5539_v8  ;;  %v1857_v22 = vsel %vm1250_vm15, %v5528_v11, %v5538_v17  ;;  %4951 = vmatprep.subr.bf16.mxu0 %v6295_v34 }
 0xc2c   :  { %v5542_v25 = vpop.permute.xlu0 %5541  ;;  %v4952_v29 = vpack.c.bf16 %v1858_v20, %v1857_v22 }
 0xc2d   :  { %v5544_v49 = vunpack.i.h.bf16 %v5542_v25  ;;  %v5543_v62 = vunpack.i.l.bf16 %v5542_v25 }
 0xc2e   :  { %4953 = vmatpush1.bf16.msra.mxu0 %v4952_v29 }
 0xc2f   :  { %v1860_v19 = vsel %vm1250_vm15, %v5544_v49, %v5549_v18  ;;  %v1859_v28 = vsel %vm1250_vm15, %v5543_v62, %v5548_v43  ;;  %4954 = vmatprep.subr.bf16.mxu0 %v6295_v34 }
 0xc30   :  { %v4955_v30 = vpack.c.bf16 %v1860_v19, %v1859_v28 }
 0xc32   :  { %4956 = vmatpush1.bf16.msra.mxu0 %v4955_v30 }
 0xc33   :  { %5005 = vmatprep.subr.bf16.mxu0 %v6295_v34 }
 0xc35   :  { %1991 = vmatmul.mubr.f32.vlgmr.msra.gmra.mrb[10].mxu0 %v1637_v15 }
 0xc36   :  { %4416 = vmatprep.mubr.msk.f32.mxu0 %vm1901_vm9, %v1640_v31 }
 0xc39   :  { %1996 = vmatmul.mubr.f32.gmra.mrb[12].mxu0 %v1639_v32 }
 0xc3a   :  { %4417 = vmatprep.mubr.msk.f32.mxu0 %vm1901_vm9, %v1642_v50  ;;  %v1869_v26 = vpop.permute.xlu1 %1868 }
 0xc3d   :  { %2001 = vmatmul.mubr.f32.gmra.mrb[14].mxu0 %v1641_v40  ;;  %v1864_v60 = vpop.permute.xlu0 %1863 }
 0xc3e   :  { %4418 = vmatprep.mubr.msk.f32.mxu0 %vm1901_vm9, %v1644_v35  ;;  %v1879_v29 = vpop.permute.xlu1 %1878 }
 0xc41   :  { %2006 = vmatmul.mubr.f32.gmra.mrb[16].mxu0 %v1643_v42  ;;  %v1874_v51 = vpop.permute.xlu0 %1873 }
 0xc42   :  { %4419 = vmatprep.mubr.msk.f32.mxu0 %vm1901_vm9, %v1646_v44 }
 0xc45   :  { %2011 = vmatmul.mubr.f32.gmra.mrb[18].mxu0 %v1645_v47  ;;  %v1884_v28 = vpop.permute.xlu0 %1883  ;;  %v1889_v47 = vpop.permute.xlu1 %1888 }
 0xc46   :  { %4420 = vmatprep.mubr.msk.f32.mxu0 %vm1901_vm9, %v1648_v53 }
 0xc49   :  { %2016 = vmatmul.mubr.f32.gmra.mrb[20].mxu0 %v1647_v56 }
 0xc4a   :  { %4421 = vmatprep.mubr.msk.f32.mxu0 %vm1901_vm9, %v1650_v48 }
 0xc4d   :  { %2021 = vmatmul.mubr.f32.gmra.mrb[22].mxu0 %v1649_v57 }
 0xc4e   :  { %4422 = vmatprep.mubr.msk.f32.mxu0 %vm1901_vm9, %v1652_v58 }
 0xc51   :  { %2026 = vmatmul.mubr.f32.gmra.mrb[24].mxu0 %v1651_v59  ;;  %v1894_v59 = vpop.permute.xlu0 %1893 }
 0xd08   :  { %v1992_v61 = vpop.f32.mrb[10].mxu0 }
 0xd09   :  { %v1993_v27 = vadd.f32 %v1992_v61, %v1864_v60  ;;  %v1994_v63 = vpop.f32.mrb[11].mxu0 }
 0xd0b   :  { %v2031_v52 = vmax.f32 %v1993_v27, 0.0 }
 0xd0c   :  { %v1997_v21 = vpop.f32.mrb[12].mxu0 }
 0xd0d   :  { %v1998_v2 = vadd.f32 %v1997_v21, %v1869_v26  ;;  %v1999_v7 = vpop.f32.mrb[13].mxu0  ;;  %v2207_v36 = vsel %vm1250_vm15, 0.0, %v2031_v52 }
 0xd0e   :  { %v2215_v20 = vsel %vm8252_vm8, %v2207_v36, 0.0  ;;  %v1899_v36 = vpop.permute.xlu1 %1898  ;;  %vm8261_vm8 = vmmov %vm8244_vm0 }
 0xd0f   :  { %v2032_v10 = vmax.f32 %v1998_v2, 0.0 }
 0xd10   :  { %v2002_v16 = vpop.f32.mrb[14].mxu0 }
 0xd11   :  { %v2208_v8 = vsel %vm1250_vm15, 0.0, %v2032_v10  ;;  %v5550_v17 = vpack.i.bf16 %v2032_v10, %v2031_v52  ;;  %v2003_v55 = vadd.f32 %v2002_v16, %v1874_v51  ;;  %v2004_v11 = vpop.f32.mrb[15].mxu0 }
 0xd12   :  { %v2216_v22 = vsel %vm8253_vm14, %v2208_v8, 0.0  ;;  %vm8262_vm14 = vmmov %vm8244_vm0 }
 0xd13   :  { %v2033_v9 = vmax.f32 %v2003_v55, 0.0  ;;  %5551 = vrot.lane.b32.xlu0 %v5550_v17, %s6299_s3  ;;  %v5555_v25 = vpack.i.bf16 %v2216_v22, %v2215_v20 }
 0xd14   :  { %v2007_v18 = vpop.f32.mrb[16].mxu0 }
 0xd15   :  { %v2008_v43 = vadd.f32 %v2007_v18, %v1879_v29  ;;  %v2009_v49 = vpop.f32.mrb[17].mxu0  ;;  %5556 = vrot.lane.b32.xlu1 %v5555_v25, %s6286_s30  ;;  %v2209_v62 = vsel %vm1250_vm15, 0.0, %v2033_v9 }
 0xd16   :  { %v2217_v40 = vsel %vm8244_vm0, %v2209_v62, 0.0 }
 0xd17   :  { %v2034_v19 = vmax.f32 %v2008_v43, 0.0  ;;  %5561 = vrot.lane.b32.xlu0 %v5555_v25, %s6287_s18 }
 0xd18   :  { %v2012_v30 = vpop.f32.mrb[18].mxu0 }
 0xd19   :  { %v2210_v15 = vsel %vm1250_vm15, 0.0, %v2034_v19  ;;  %v5570_v31 = vpack.i.bf16 %v2034_v19, %v2033_v9  ;;  %v2013_v32 = vadd.f32 %v2012_v30, %v1884_v28  ;;  %v2014_v50 = vpop.f32.mrb[19].mxu0  ;;  %5566 = vrot.lane.b32.xlu1 %v5555_v25, %s6285_s0 }
 0xd1a   :  { %v2218_v35 = vsel %vm8254_vm12, %v2210_v15, 0.0  ;;  %vm8263_vm12 = vmmov %vm8244_vm0 }
 0xd1b   :  { %v2035_v42 = vmax.f32 %v2013_v32, 0.0  ;;  %5571 = vrot.lane.b32.xlu0 %v5570_v31, %s6299_s3  ;;  %v5575_v44 = vpack.i.bf16 %v2218_v35, %v2217_v40 }
 0xd1c   :  { %v2017_v53 = vpop.f32.mrb[20].mxu0 }
 0xd1d   :  { %v2018_v56 = vadd.f32 %v2017_v53, %v1889_v47  ;;  %v2019_v48 = vpop.f32.mrb[21].mxu0  ;;  %5576 = vrot.lane.b32.xlu1 %v5575_v44, %s6286_s30  ;;  %v2211_v57 = vsel %vm1250_vm15, 0.0, %v2035_v42 }
 0xd1e   :  { %v2219_v26 = vsel %vm8255_vm7, %v2211_v57, 0.0  ;;  %vm8264_vm7 = vmmov %vm8244_vm0 }
 0xd1f   :  { %v2036_v58 = vmax.f32 %v2018_v56, 0.0 }
 0xd20   :  { %v2022_v60 = vpop.f32.mrb[22].mxu0 }
 0xd21   :  { %v2212_v61 = vsel %vm1250_vm15, 0.0, %v2036_v58  ;;  %v5580_v27 = vpack.i.bf16 %v2036_v58, %v2035_v42  ;;  %v2023_v63 = vadd.f32 %v2022_v60, %v1894_v59  ;;  %v2024_v52 = vpop.f32.mrb[23].mxu0 }
 0xd22   :  { %v2220_v21 = vsel %vm8256_vm13, %v2212_v61, 0.0  ;;  %vm8265_vm13 = vmmov %vm8244_vm0 }
 0xd23   :  { %v2037_v2 = vmax.f32 %v2023_v63, 0.0  ;;  %5581 = vrot.lane.b32.xlu0 %v5580_v27, %s6299_s3  ;;  %v5585_v7 = vpack.i.bf16 %v2220_v21, %v2219_v26 }
 0xd24   :  { %v2027_v10 = vpop.f32.mrb[24].mxu0 }
 0xd25   :  { %v2028_v51 = vadd.f32 %v2027_v10, %v1899_v36  ;;  %v2029_v16 = vpop.f32.mrb[25].mxu0  ;;  %5586 = vrot.lane.b32.xlu1 %v5585_v7, %s6286_s30  ;;  %v2213_v8 = vsel %vm1250_vm15, 0.0, %v2037_v2 }
 0xd26   :  { %v2221_v20 = vsel %vm8257_vm2, %v2213_v8, 0.0  ;;  %vm2475_vm2 = vcmask 523264  }
 0xd27   :  { %v2038_v17 = vmax.f32 %v2028_v51, 0.0 }
 0xd29   :  { %v2214_v55 = vsel %vm1250_vm15, 0.0, %v2038_v17  ;;  %v5590_v11 = vpack.i.bf16 %v2038_v17, %v2037_v2 }
 0xd2a   :  { %v2222_v22 = vsel %vm8258_vm6, %v2214_v55, 0.0 }
 0xd2b   :  { %5591 = vrot.lane.b32.xlu0 %v5590_v11, %s6299_s3  ;;  %v5600_v9 = vpack.i.bf16 %v2222_v22, %v2221_v20 }
 0xd2d   :  { %5601 = vrot.lane.b32.xlu1 %v5600_v9, %s6286_s30 }
 0xd2f   :  { %5596 = vrot.lane.b32.xlu0 %v5575_v44, %s6287_s18 }
 0xd31   :  { %5606 = vrot.lane.b32.xlu1 %v5575_v44, %s6285_s0 }
 0xd33   :  { %5611 = vrot.lane.b32.xlu0 %v5585_v7, %s6287_s18 }
 0xd35   :  { %5616 = vrot.lane.b32.xlu1 %v5585_v7, %s6285_s0 }
 0xd37   :  { %5621 = vrot.lane.b32.xlu0 %v5555_v25, %s6288_s19 }
 0xd39   :  { %5626 = vrot.lane.b32.xlu1 %v5575_v44, %s6288_s19 }
 0xd3b   :  { %5631 = vrot.lane.b32.xlu0 %v5600_v9, %s6287_s18 }
 0xd3d   :  { %5646 = vrot.lane.b32.xlu1 %v5600_v9, %s6285_s0 }
 0xd3f   :  { %5636 = vrot.lane.b32.xlu0 %v5585_v7, %s6288_s19 }
 0xd41   :  { %5651 = vrot.lane.b32.xlu1 %v5575_v44, %s6299_s3 }
 0xd43   :  { %5641 = vrot.lane.b32.xlu0 %v5555_v25, %s6299_s3 }
 0xd45   :  { %5661 = vrot.lane.b32.xlu1 %v5600_v9, %s6288_s19 }
 0xd47   :  { %5656 = vrot.lane.b32.xlu0 %v5585_v7, %s6299_s3 }
 0xd49   :  { %5666 = vrot.lane.b32.xlu1 %v5600_v9, %s6299_s3 }
 0xd85   :  { %v5552_v29 = vpop.permute.xlu0 %5551 }
 0xd86   :  { %v5554_v18 = vunpack.i.h.bf16 %v5552_v29  ;;  %v5553_v43 = vunpack.i.l.bf16 %v5552_v29 }
 0xd87   :  { %v5557_v49 = vpop.permute.xlu1 %5556 }
 0xd88   :  { %v2088_v62 = vsel %vm1250_vm15, 0.0, %v5554_v18  ;;  %v2087_v19 = vsel %vm1250_vm15, 0.0, %v5553_v43  ;;  %5676 = vrot.lane.b32.xlu1 %v5557_v49, %s6299_s3 }
 0xd89   :  { %v7258_v28 = vsel %vm8259_vm11, %v2088_v62, 0.0  ;;  %v7261_v30 = vsel %vm8260_vm5, %v2087_v19, 0.0  ;;  %v5562_v25 = vpop.permute.xlu0 %5561 }
 0xd8a   :  { %v7265_v15 = vpack.i.bf16 %v7258_v28, %v7261_v30 }
 0xd8b   :  { %v5567_v31 = vpop.permute.xlu1 %5566 }
 0xd8c   :  { %5671 = vrot.lane.b32.xlu0 %v7265_v15, %s6286_s30  ;;  %5686 = vrot.lane.b32.xlu1 %v5562_v25, %s6299_s3 }
 0xd8d   :  { %v5572_v32 = vpop.permute.xlu0 %5571 }
 0xd8e   :  { %v5574_v50 = vunpack.i.h.bf16 %v5572_v32  ;;  %v5573_v40 = vunpack.i.l.bf16 %v5572_v32 }
 0xd8f   :  { %v5577_v35 = vpop.permute.xlu1 %5576 }
 0xd90   :  { %v2090_v42 = vsel %vm1250_vm15, 0.0, %v5574_v50  ;;  %v2089_v44 = vsel %vm1250_vm15, 0.0, %v5573_v40  ;;  %5681 = vrot.lane.b32.xlu0 %v7265_v15, %s6287_s18  ;;  %5696 = vrot.lane.b32.xlu1 %v5567_v31, %s6299_s3 }
 0xd91   :  { %v2098_v47 = vsel %vm8261_vm8, %v2090_v42, 0.0  ;;  %v2097_v53 = vsel %vm8262_vm14, %v2089_v44, 0.0  ;;  %vm8268_vm8 = vcmask 1043456  }
 0xd92   :  { %v7280_v48 = vpack.i.bf16 %v2098_v47, %v2097_v53  ;;  %vm8269_vm14 = vmmov %vm8268_vm8 }
 0xd94   :  { %5691 = vrot.lane.b32.xlu0 %v7265_v15, %s6285_s0  ;;  %5701 = vrot.lane.b32.xlu1 %v7280_v48, %s6286_s30 }
 0xd95   :  { %v5582_v56 = vpop.permute.xlu0 %5581 }
 0xd96   :  { %v5584_v57 = vunpack.i.h.bf16 %v5582_v56  ;;  %v5583_v58 = vunpack.i.l.bf16 %v5582_v56 }
 0xd97   :  { %v5587_v61 = vpop.permute.xlu1 %5586 }
 0xd98   :  { %5706 = vrot.lane.b32.xlu0 %v5577_v35, %s6299_s3  ;;  %v2092_v59 = vsel %vm1250_vm15, 0.0, %v5584_v57  ;;  %v2091_v60 = vsel %vm1250_vm15, 0.0, %v5583_v58 }
 0xd99   :  { %v2100_v63 = vsel %vm8244_vm0, %v2092_v59, 0.0  ;;  %v2099_v52 = vsel %vm8263_vm12, %v2091_v60, 0.0  ;;  %vm8270_vm12 = vmmov %vm8244_vm0 }
 0xd9a   :  { %v5730_v2 = vpack.i.bf16 %v2100_v63, %v2099_v52 }
 0xd9c   :  { %5711 = vrot.lane.b32.xlu0 %v7280_v48, %s6287_s18 }
 0xd9d   :  { %v5592_v27 = vpop.permute.xlu0 %5591 }
 0xd9e   :  { %v5594_v10 = vunpack.i.h.bf16 %v5592_v27  ;;  %v5593_v51 = vunpack.i.l.bf16 %v5592_v27 }
 0xd9f   :  { %v5602_v26 = vpop.permute.xlu1 %5601 }
 0xda0   :  { %5721 = vrot.lane.b32.xlu0 %v7280_v48, %s6285_s0  ;;  %v2094_v17 = vsel %vm1250_vm15, 0.0, %v5594_v10  ;;  %v2093_v55 = vsel %vm1250_vm15, 0.0, %v5593_v51 }
 0xda1   :  { %v5597_v21 = vpop.permute.xlu0 %5596  ;;  %v2102_v20 = vsel %vm8264_vm7, %v2094_v17, 0.0  ;;  %v2101_v22 = vsel %vm8265_vm13, %v2093_v55, 0.0  ;;  %vm8271_vm7 = vmmov %vm8244_vm0 }
 0xda2   :  { %5716 = vrot.lane.b32.xlu1 %v5597_v21, %s6299_s3  ;;  %v5740_v18 = vpack.i.bf16 %v2102_v20, %v2101_v22  ;;  %vm8272_vm13 = vmmov %vm8244_vm0 }
 0xda3   :  { %v5607_v7 = vpop.permute.xlu1 %5606 }
 0xda4   :  { %5731 = vrot.lane.b32.xlu0 %v5730_v2, %s6286_s30 }
 0xda5   :  { %v5612_v36 = vpop.permute.xlu0 %5611 }
 0xda6   :  { %5726 = vrot.lane.b32.xlu1 %v5607_v7, %s6299_s3  ;;  %v2053_v7 = vld [vmem:[%s8155_s10 + $0x10] sm:$0xff] }
 0xda7   :  { %v5617_v16 = vpop.permute.xlu1 %5616 }
 0xda8   :  { %5746 = vrot.lane.b32.xlu0 %v5602_v26, %s6299_s3 }
 0xda9   :  { %v5622_v8 = vpop.permute.xlu0 %5621 }
 0xdaa   :  { %5736 = vrot.lane.b32.xlu1 %v5587_v61, %s6299_s3 }
 0xdab   :  { %v5627_v11 = vpop.permute.xlu1 %5626 }
 0xdac   :  { %5751 = vrot.lane.b32.xlu0 %v5730_v2, %s6287_s18 }
 0xdad   :  { %v5632_v9 = vpop.permute.xlu0 %5631 }
 0xdae   :  { %5741 = vrot.lane.b32.xlu1 %v5740_v18, %s6286_s30 }
 0xdaf   :  { %v5647_v29 = vpop.permute.xlu1 %5646 }
 0xdb0   :  { %5761 = vrot.lane.b32.xlu0 %v5730_v2, %s6285_s0 }
 0xdb1   :  { %v5637_v43 = vpop.permute.xlu0 %5636 }
 0xdb2   :  { %5756 = vrot.lane.b32.xlu1 %v5612_v36, %s6299_s3 }
 0xdb3   :  { %v5652_v49 = vpop.permute.xlu1 %5651 }
 0xdb4   :  { %v5654_v62 = vunpack.i.h.bf16 %v5652_v49  ;;  %v5653_v19 = vunpack.i.l.bf16 %v5652_v49  ;;  %5771 = vrot.lane.b32.xlu0 %v5740_v18, %s6287_s18 }
 0xdb5   :  { %v5642_v25 = vpop.permute.xlu0 %5641 }
 0xdb6   :  { %v7307_v31 = vsel %vm1250_vm15, %v2098_v47, %v5654_v62  ;;  %v7310_v32 = vsel %vm1250_vm15, %v2097_v53, %v5653_v19  ;;  %v5644_v50 = vunpack.i.h.bf16 %v5642_v25  ;;  %v5643_v40 = vunpack.i.l.bf16 %v5642_v25  ;;  %5766 = vrot.lane.b32.xlu1 %v5617_v16, %s6299_s3 }
 0xdb7   :  { %v5662_v35 = vpop.permute.xlu1 %5661  ;;  %v4963_v42 = vpack.c.bf16 %v7307_v31, %v7310_v32 }
 0xdb8   :  { %v2416_v44 = vsel %vm1250_vm15, %v7258_v28, %v5644_v50  ;;  %v2415_v56 = vsel %vm1250_vm15, %v7261_v30, %v5643_v40  ;;  %5781 = vrot.lane.b32.xlu0 %v5740_v18, %s6285_s0 }
 0xdb9   :  { %v5657_v47 = vpop.permute.xlu0 %5656  ;;  %v4959_v57 = vpack.c.bf16 %v2416_v44, %v2415_v56 }
 0xdba   :  { %v5659_v53 = vunpack.i.h.bf16 %v5657_v47  ;;  %v5658_v58 = vunpack.i.l.bf16 %v5657_v47  ;;  %5776 = vrot.lane.b32.xlu1 %v5632_v9, %s6299_s3 }
 0xdbb   :  { %v5667_v59 = vpop.permute.xlu1 %5666 }
 0xdbc   :  { %v7322_v60 = vsel %vm1250_vm15, %v2099_v52, %v5658_v58  ;;  %v7325_v61 = vsel %vm1250_vm15, %v2100_v63, %v5659_v53  ;;  %v5669_v27 = vunpack.i.h.bf16 %v5667_v59  ;;  %v5668_v28 = vunpack.i.l.bf16 %v5667_v59  ;;  %5786 = vrot.lane.b32.xlu0 %v7265_v15, %s6288_s19  ;;  %v2040_v63 = vld [vmem:[%s8154_s9 + $0x8] sm:$0xff]  ;;  %v2051_v15 = vld [vmem:[%s8155_s10] sm:$0xff] }
 0xdbd   :  { %v4967_v30 = vpack.c.bf16 %v7325_v61, %v7322_v60  ;;  %2552 = vmatprep.mubr.f32.mxu1 %v2040_v63 }
 0xdbe   :  { %v7332_v26 = vsel %vm1250_vm15, %v2102_v20, %v5669_v27  ;;  %v7335_v21 = vsel %vm1250_vm15, %v2101_v22, %v5668_v28  ;;  %5791 = vrot.lane.b32.xlu1 %v5647_v29, %s6299_s3 }
 0xdbf   :  { %v4971_v52 = vpack.c.bf16 %v7332_v26, %v7335_v21 }
 0xdc0   :  { %5801 = vrot.lane.b32.xlu0 %v7280_v48, %s6288_s19  ;;  %v2052_v48 = vld [vmem:[%s8155_s10 + $0x8] sm:$0xff] }
 0xdc2   :  { %5796 = vrot.lane.b32.xlu1 %v5622_v8, %s6299_s3 }
 0xdc4   :  { %5811 = vrot.lane.b32.xlu0 %v5730_v2, %s6288_s19  ;;  %v2054_v2 = vld [vmem:[%s8155_s10 + $0x18] sm:$0xff] }
 0xdc6   :  { %5806 = vrot.lane.b32.xlu1 %v5627_v11, %s6299_s3 }
 0xdc8   :  { %5821 = vrot.lane.b32.xlu0 %v5740_v18, %s6288_s19 }
 0xdca   :  { %5816 = vrot.lane.b32.xlu1 %v5637_v43, %s6299_s3 }
 0xdcc   :  { %2457 = vperm.xlu0 %5288, %v2051_v15  }
 0xdce   :  { %5826 = vrot.lane.b32.xlu1 %v5662_v35, %s6299_s3 }
 0xdd0   :  { %2467 = vperm.xlu0 %5288, %v2053_v7  }
 0xdd2   :  { %2462 = vperm.xlu1 %5334, %v2052_v48  }
 0xdd6   :  { %2472 = vperm.xlu1 %5334, %v2054_v2  }
 0xdfa   :  { %v5677_v10 = vpop.permute.xlu1 %5676 }
 0xdfb   :  { %v5679_v8 = vunpack.i.h.bf16 %v5677_v10  ;;  %v5678_v17 = vunpack.i.l.bf16 %v5677_v10 }
 0xdfe   :  { %v5672_v36 = vpop.permute.xlu0 %5671  ;;  %v5687_v22 = vpop.permute.xlu1 %5686 }
 0xdff   :  { %v5674_v51 = vunpack.i.h.bf16 %v5672_v36  ;;  %v5673_v16 = vunpack.i.l.bf16 %v5672_v36  ;;  %v5689_v10 = vunpack.i.h.bf16 %v5687_v22 }
 0xe01   :  { %v2431_v55 = vsel %vm1250_vm15, %v5673_v16, %v5678_v17  ;;  %v2432_v11 = vsel %vm1250_vm15, %v5674_v51, %v5679_v8  ;;  %v5688_v51 = vunpack.i.l.bf16 %v5687_v22 }
 0xe02   :  { %v5682_v20 = vpop.permute.xlu0 %5681  ;;  %v4957_v9 = vpack.c.bf16 %v2432_v11, %v2431_v55  ;;  %v5697_v18 = vpop.permute.xlu1 %5696 }
 0xe03   :  { %v5684_v2 = vunpack.i.h.bf16 %v5682_v20  ;;  %v5683_v36 = vunpack.i.l.bf16 %v5682_v20  ;;  %v5699_v17 = vunpack.i.h.bf16 %v5697_v18  ;;  %v5698_v55 = vunpack.i.l.bf16 %v5697_v18 }
 0xe04   :  { %4958 = vmatprep.subr.bf16.mxu1 %v4957_v9 }
 0xe05   :  { %4960 = vmatpush3.bf16.msra.mxu1 %v4959_v57  ;;  %v2439_v20 = vsel %vm1250_vm15, %v5683_v36, %v5688_v51  ;;  %v2440_v22 = vsel %vm1250_vm15, %v5684_v2, %v5689_v10 }
 0xe06   :  { %v5692_v29 = vpop.permute.xlu0 %5691  ;;  %v5702_v49 = vpop.permute.xlu1 %5701  ;;  %v4973_v60 = vpack.c.bf16 %v2440_v22, %v2439_v20 }
 0xe07   :  { %v5704_v25 = vunpack.i.h.bf16 %v5702_v49  ;;  %v5703_v50 = vunpack.i.l.bf16 %v5702_v49  ;;  %v5694_v31 = vunpack.i.h.bf16 %v5692_v29  ;;  %v5693_v8 = vunpack.i.l.bf16 %v5692_v29 }
 0xe0a   :  { %v5707_v43 = vpop.permute.xlu0 %5706 }
 0xe0b   :  { %v5709_v62 = vunpack.i.h.bf16 %v5707_v43  ;;  %v5708_v19 = vunpack.i.l.bf16 %v5707_v43 }
 0xe0d   :  { %v2433_v40 = vsel %vm1250_vm15, %v5703_v50, %v5708_v19  ;;  %v2434_v35 = vsel %vm1250_vm15, %v5704_v25, %v5709_v62 }
 0xe0e   :  { %v5712_v44 = vpop.permute.xlu0 %5711  ;;  %v4961_v56 = vpack.c.bf16 %v2434_v35, %v2433_v40  ;;  %v2424_v35 = vsel %vm1250_vm15, %v5694_v31, %v5699_v17 }
 0xe10   :  { %4962 = vmatprep.subr.bf16.mxu1 %v4961_v56  ;;  %v2423_v56 = vsel %vm1250_vm15, %v5693_v8, %v5698_v55 }
 0xe11   :  { %4964 = vmatpush3.bf16.msra.mxu1 %v4963_v42 }
 0xe12   :  { %v5722_v47 = vpop.permute.xlu0 %5721 }
 0xe14   :  { %v5717_v53 = vpop.permute.xlu1 %5716 }
 0xe15   :  { %v5719_v50 = vunpack.i.h.bf16 %v5717_v53  ;;  %v5718_v40 = vunpack.i.l.bf16 %v5717_v53  ;;  %v5723_v53 = vunpack.i.l.bf16 %v5722_v47 }
 0xe16   :  { %v5732_v57 = vpop.permute.xlu0 %5731 }
 0xe17   :  { %v5734_v63 = vunpack.i.h.bf16 %v5732_v57  ;;  %v5733_v15 = vunpack.i.l.bf16 %v5732_v57 }
 0xe18   :  { %v5727_v59 = vpop.permute.xlu1 %5726 }
 0xe1a   :  { %v5747_v58 = vpop.permute.xlu0 %5746 }
 0xe1b   :  { %v5749_v43 = vunpack.i.h.bf16 %v5747_v58  ;;  %v5748_v49 = vunpack.i.l.bf16 %v5747_v58 }
 0xe1c   :  { %v5737_v28 = vpop.permute.xlu1 %5736 }
 0xe1d   :  { %v5739_v7 = vunpack.i.h.bf16 %v5737_v28  ;;  %v5738_v48 = vunpack.i.l.bf16 %v5737_v28  ;;  %v5714_v28 = vunpack.i.h.bf16 %v5712_v44 }
 0xe1e   :  { %v7371_v27 = vpop.permute.xlu0 %5751 }
 0xe1f   :  { %v2435_v32 = vsel %vm1250_vm15, %v5733_v15, %v5738_v48  ;;  %v2436_v42 = vsel %vm1250_vm15, %v5734_v63, %v5739_v7  ;;  %v5713_v63 = vunpack.i.l.bf16 %v5712_v44  ;;  %v5729_v15 = vunpack.i.h.bf16 %v5727_v59 }
 0xe20   :  { %v5742_v11 = vpop.permute.xlu1 %5741  ;;  %v4965_v9 = vpack.c.bf16 %v2436_v42, %v2435_v32  ;;  %v5728_v7 = vunpack.i.l.bf16 %v5727_v59  ;;  %v5724_v48 = vunpack.i.h.bf16 %v5722_v47  ;;  %v2442_v10 = vsel %vm1250_vm15, %v5714_v28, %v5719_v50 }
 0xe21   :  { %v5744_v62 = vunpack.i.h.bf16 %v5742_v11  ;;  %v5743_v19 = vunpack.i.l.bf16 %v5742_v11  ;;  %v2441_v36 = vsel %vm1250_vm15, %v5713_v63, %v5718_v40  ;;  %v4975_v44 = vpack.c.bf16 %v2424_v35, %v2423_v56 }
 0xe22   :  { %v7373_v16 = vpop.permute.xlu0 %5761  ;;  %4966 = vmatprep.subr.bf16.mxu1 %v4965_v9  ;;  %v2426_v59 = vsel %vm1250_vm15, %v5724_v48, %v5729_v15  ;;  %v2425_v47 = vsel %vm1250_vm15, %v5723_v53, %v5728_v7  ;;  %v5754_v31 = vunpack.i.h.bf16 %v7371_v27  ;;  %v5753_v32 = vunpack.i.l.bf16 %v7371_v27 }
 0xe23   :  { %4968 = vmatpush3.bf16.msra.mxu1 %v4967_v30  ;;  %v2437_v29 = vsel %vm1250_vm15, %v5743_v19, %v5748_v49  ;;  %v2438_v18 = vsel %vm1250_vm15, %v5744_v62, %v5749_v43  ;;  %v4977_v17 = vpack.c.bf16 %v2442_v10, %v2441_v36  ;;  %v5763_v55 = vunpack.i.l.bf16 %v7373_v16 }
 0xe24   :  { %v5757_v57 = vpop.permute.xlu1 %5756  ;;  %v4969_v58 = vpack.c.bf16 %v2438_v18, %v2437_v29  ;;  %v4979_v43 = vpack.c.bf16 %v2426_v59, %v2425_v47  ;;  %v2043_v47 = vld [vmem:[%s8154_s9 + $0x20] sm:$0xff] }
 0xe25   :  { %v5759_v61 = vunpack.i.h.bf16 %v5757_v57  ;;  %v5758_v30 = vunpack.i.l.bf16 %v5757_v57 }
 0xe26   :  { %v5772_v25 = vpop.permute.xlu0 %5771  ;;  %4970 = vmatprep.subr.bf16.mxu1 %v4969_v58 }
 0xe27   :  { %4972 = vmatpush3.bf16.msra.mxu1 %v4971_v52  ;;  %v2443_v26 = vsel %vm1250_vm15, %v5753_v32, %v5758_v30  ;;  %v2444_v21 = vsel %vm1250_vm15, %v5754_v31, %v5759_v61  ;;  %v5764_v52 = vunpack.i.h.bf16 %v7373_v16  ;;  %v5774_v49 = vunpack.i.h.bf16 %v5772_v25 }
 0xe28   :  { %v5767_v51 = vpop.permute.xlu1 %5766  ;;  %4974 = vmatprep.subr.bf16.mxu1 %v4973_v60  ;;  %v5773_v62 = vunpack.i.l.bf16 %v5772_v25  ;;  %v4981_v50 = vpack.c.bf16 %v2444_v21, %v2443_v26 }
 0xe29   :  { %v5769_v42 = vunpack.i.h.bf16 %v5767_v51  ;;  %v5768_v8 = vunpack.i.l.bf16 %v5767_v51 }
 0xe2a   :  { %v5782_v2 = vpop.permute.xlu0 %5781 }
 0xe2b   :  { %4976 = vmatpush3.bf16.msra.mxu1 %v4975_v44  ;;  %v2428_v20 = vsel %vm1250_vm15, %v5764_v52, %v5769_v42  ;;  %v2427_v22 = vsel %vm1250_vm15, %v5763_v55, %v5768_v8  ;;  %v5784_v18 = vunpack.i.h.bf16 %v5782_v2  ;;  %v5783_v35 = vunpack.i.l.bf16 %v5782_v2  ;;  %v2039_v2 = vld [vmem:[%s8154_s9] sm:$0xff] }
 0xe2c   :  { %v5777_v9 = vpop.permute.xlu1 %5776  ;;  %4978 = vmatprep.subr.bf16.mxu1 %v4977_v17  ;;  %v4983_v58 = vpack.c.bf16 %v2428_v20, %v2427_v22  ;;  %v2042_v17 = vld [vmem:[%s8154_s9 + $0x18] sm:$0xff] }
 0xe2d   :  { %v5779_v19 = vunpack.i.h.bf16 %v5777_v9  ;;  %v5778_v27 = vunpack.i.l.bf16 %v5777_v9 }
 0xe2e   :  { %v5787_v11 = vpop.permute.xlu0 %5786 }
 0xe2f   :  { %4980 = vmatpush3.bf16.msra.mxu1 %v4979_v43  ;;  %v2445_v40 = vsel %vm1250_vm15, %v5773_v62, %v5778_v27  ;;  %v2446_v29 = vsel %vm1250_vm15, %v5774_v49, %v5779_v19  ;;  %v5789_v53 = vunpack.i.h.bf16 %v5787_v11  ;;  %v5788_v60 = vunpack.i.l.bf16 %v5787_v11  ;;  %v2046_v11 = vld [vmem:[%s8154_s9 + $0x38] sm:$0xff]  ;;  %v2045_v27 = vld [vmem:[%s8154_s9 + $0x30] sm:$0xff] }
 0xe30   :  { %v5792_v16 = vpop.permute.xlu1 %5791  ;;  %4982 = vmatprep.subr.bf16.mxu1 %v4981_v50  ;;  %v4985_v28 = vpack.c.bf16 %v2446_v29, %v2445_v40  ;;  %v2049_v29 = vld [vmem:[%s8154_s9 + $0x50] sm:$0xff] }
 0xe31   :  { %v5794_v56 = vunpack.i.h.bf16 %v5792_v16  ;;  %v5793_v57 = vunpack.i.l.bf16 %v5792_v16 }
 0xe32   :  { %v5802_v25 = vpop.permute.xlu0 %5801 }
 0xe33   :  { %v2430_v63 = vsel %vm1250_vm15, %v5784_v18, %v5794_v56  ;;  %v2429_v15 = vsel %vm1250_vm15, %v5783_v35, %v5793_v57  ;;  %4984 = vmatpush3.bf16.msra.mxu1 %v4983_v58  ;;  %v5804_v31 = vunpack.i.h.bf16 %v5802_v25  ;;  %v5803_v32 = vunpack.i.l.bf16 %v5802_v25  ;;  %v2048_v57 = vld [vmem:[%s8154_s9 + $0x48] sm:$0xff] }
 0xe34   :  { %v5797_v7 = vpop.permute.xlu1 %5796  ;;  %4986 = vmatprep.subr.bf16.mxu1 %v4985_v28  ;;  %v4987_v48 = vpack.c.bf16 %v2430_v63, %v2429_v15  ;;  %v2041_v63 = vld [vmem:[%s8154_s9 + $0x10] sm:$0xff]  ;;  %v2044_v15 = vld [vmem:[%s8154_s9 + $0x28] sm:$0xff] }
 0xe35   :  { %v5799_v61 = vunpack.i.h.bf16 %v5797_v7  ;;  %v5798_v30 = vunpack.i.l.bf16 %v5797_v7  ;;  %v2047_v7 = vld [vmem:[%s8154_s9 + $0x40] sm:$0xff] }
 0xe36   :  { %v5812_v51 = vpop.permute.xlu0 %5811 }
 0xe37   :  { %4988 = vmatpush3.bf16.msra.mxu1 %v4987_v48  ;;  %v2447_v36 = vsel %vm1250_vm15, %v5788_v60, %v5798_v30  ;;  %v2448_v10 = vsel %vm1250_vm15, %v5789_v53, %v5799_v61  ;;  %v5814_v9 = vunpack.i.h.bf16 %v5812_v51  ;;  %v5813_v43 = vunpack.i.l.bf16 %v5812_v51  ;;  %v2050_v48 = vld [vmem:[%s8154_s9 + $0x58] sm:$0xff] }
 0xe38   :  { %v5807_v44 = vpop.permute.xlu1 %5806  ;;  %v4989_v59 = vpack.c.bf16 %v2448_v10, %v2447_v36  ;;  %v7447_v53 = vmul.u32 5, %v6392_v1 }
 0xe39   :  { %v5809_v42 = vunpack.i.h.bf16 %v5807_v44  ;;  %v5808_v8 = vunpack.i.l.bf16 %v5807_v44 }
 0xe3a   :  { %2553 = vmatmul.mubr.f32.vlgmr.msra.gmra.mrb[10].mxu1 %v2039_v2  ;;  %4990 = vmatprep.subr.bf16.mxu1 %v4989_v59  ;;  %v5822_v19 = vpop.permute.xlu0 %5821  ;;  %v2663_v60 = vsub.s32 %v6578_v33, %v7447_v53 }
 0xe3b   :  { %4992 = vmatpush3.bf16.msra.mxu1 %v4989_v59  ;;  %2557 = vmatprep.mubr.f32.mxu1 %v2043_v47  ;;  %v2449_v26 = vsel %vm1250_vm15, %v5803_v32, %v5808_v8  ;;  %v2450_v21 = vsel %vm1250_vm15, %v5804_v31, %v5809_v42  ;;  %v5824_v18 = vunpack.i.h.bf16 %v5822_v19  ;;  %v5823_v16 = vunpack.i.l.bf16 %v5822_v19 }
 0xe3c   :  { %v5817_v52 = vpop.permute.xlu1 %5816  ;;  %v4993_v55 = vpack.c.bf16 %v2450_v21, %v2449_v26  ;;  %vm2664_vm6 = vcmp.ge.s32.totalorder %v2663_v60, 0  ;;  %vm2665_vm11 = vcmp.lt.s32.totalorder %v2663_v60, 5 }
 0xe3d   :  { %v5819_v49 = vunpack.i.h.bf16 %v5817_v52  ;;  %v5818_v62 = vunpack.i.l.bf16 %v5817_v52  ;;  %vm7451_vm5 = vmand %vm2664_vm6, %vm2665_vm11 }
 0xe3e   :  { %2558 = vmatmul.mubr.f32.gmra.mrb[12].mxu1 %v2042_v17  ;;  %4994 = vmatprep.subr.bf16.mxu1 %v4993_v55  ;;  %v2667_v30 = vsel %vm7451_vm5, 1.0, %v6283_v13 }
 0xe3f   :  { %4996 = vmatpush3.bf16.msra.mxu1 %v4993_v55  ;;  %2562 = vmatprep.mubr.f32.mxu1 %v2046_v11  ;;  %v2451_v20 = vsel %vm1250_vm15, %v5813_v43, %v5818_v62  ;;  %v2452_v22 = vsel %vm1250_vm15, %v5814_v9, %v5819_v49 }
 0xe40   :  { %v5827_v50 = vpop.permute.xlu1 %5826  ;;  %v4997_v40 = vpack.c.bf16 %v2452_v22, %v2451_v20 }
 0xe41   :  { %v5829_v35 = vunpack.i.h.bf16 %v5827_v50  ;;  %v5828_v56 = vunpack.i.l.bf16 %v5827_v50 }
 0xe42   :  { %2563 = vmatmul.mubr.f32.gmra.mrb[14].mxu1 %v2045_v27  ;;  %4998 = vmatprep.subr.bf16.mxu1 %v4997_v40 }
 0xe43   :  { %5000 = vmatpush3.bf16.msra.mxu1 %v4997_v40  ;;  %2567 = vmatprep.mubr.f32.mxu1 %v2049_v29  ;;  %v2453_v58 = vsel %vm1250_vm15, %v5823_v16, %v5828_v56  ;;  %v2454_v25 = vsel %vm1250_vm15, %v5824_v18, %v5829_v35 }
 0xe44   :  { %v5001_v28 = vpack.c.bf16 %v2454_v25, %v2453_v58 }
 0xe46   :  { %2568 = vmatmul.mubr.f32.gmra.mrb[16].mxu1 %v2048_v57  ;;  %5002 = vmatprep.subr.bf16.mxu1 %v5001_v28 }
 0xe47   :  { %5004 = vmatpush3.bf16.msra.mxu1 %v5001_v28  ;;  %4747 = vmatprep.mubr.msk.f32.mxu1 %vm2475_vm2, %v2041_v63 }
 0xe48   :  { %4753 = vmatprep.subr.msk.mxu1 %vm8268_vm8, %v2667_v30 }
 0xe4a   :  { %4748 = vmatmul.mubr.msk.f32.vlgmr.msra.gmra.mrb[18].mxu1 %vm2475_vm2, %v2044_v15 }
 0xe4b   :  { %4750 = vmatprep.mubr.msk.f32.mxu1 %vm2475_vm2, %v2047_v7  ;;  %4754 = vmatpush3.msk.msra.mxu1 %vm8269_vm14, %v2667_v30  ;;  %v2458_v17 = vpop.permute.xlu0 %2457 }
 0xe4e   :  { %4751 = vmatmul.mubr.msk.f32.gmra.mrb[20].mxu1 %vm2475_vm2, %v2050_v48 }
 0xe4f   :  { %v2468_v19 = vpop.permute.xlu0 %2467 }
 0xe51   :  { %v2463_v42 = vpop.permute.xlu1 %2462 }
 0xe55   :  { %v2473_v49 = vpop.permute.xlu1 %2472 }
 0xf0d   :  { %v4611_v2 = vpop.f32.mrb[10].mxu1 }
 0xf0e   :  { %v4612_v36 = vpop.f32.mrb[11].mxu1 }
 0xf0f   :  { %v4613_v10 = vadd.f32 %v4612_v36, %v4611_v2 }
 0xf11   :  { %v4614_v51 = vpop.f32.mrb[12].mxu1  ;;  %v2555_v11 = vadd.f32 %v4613_v10, %v2458_v17 }
 0xf12   :  { %v4615_v44 = vpop.f32.mrb[13].mxu1 }
 0xf13   :  { %v4616_v59 = vadd.f32 %v4615_v44, %v4614_v51 }
 0xf15   :  { %v4617_v47 = vpop.f32.mrb[14].mxu1  ;;  %v2560_v52 = vadd.f32 %v4616_v59, %v2463_v42 }
 0xf16   :  { %v4618_v31 = vpop.f32.mrb[15].mxu1 }
 0xf17   :  { %v4619_v32 = vadd.f32 %v4618_v31, %v4617_v47 }
 0xf19   :  { %v4620_v8 = vpop.f32.mrb[16].mxu1  ;;  %v2565_v50 = vadd.f32 %v4619_v32, %v2468_v19 }
 0xf1a   :  { %v4621_v26 = vpop.f32.mrb[17].mxu1 }
 0xf1b   :  { %v4622_v21 = vadd.f32 %v4621_v26, %v4620_v8 }
 0xf1d   :  { %v4749_v55 = vpop.f32.mrb[18].mxu1  ;;  %v2570_v27 = vadd.f32 %v4622_v21, %v2473_v49 }
 0xf1e   :  { %v2645_v9 = vadd.f32 %v4749_v55, %v2560_v52  ;;  %v2639_v43 = vpop.f32.mrb[19].mxu1 }
 0xf1f   :  { %v2640_v62 = vadd.f32 %v2639_v43, %v2555_v11 }
 0xf20   :  { %v2659_v40 = vmax.f32 %v2645_v9, 0.0 }
 0xf21   :  { %v2658_v20 = vmax.f32 %v2640_v62, 0.0  ;;  %v4752_v22 = vpop.f32.mrb[20].mxu1 }
 0xf22   :  { %v2655_v29 = vadd.f32 %v4752_v22, %v2570_v27  ;;  %v2649_v18 = vpop.f32.mrb[21].mxu1 }
 0xf23   :  { %v2650_v16 = vadd.f32 %v2649_v18, %v2565_v50  ;;  %4755 = vmatprep.mubr.msk.f32.mxu1 %vm8244_vm0, %v2658_v20  ;;  %v2772_v18 = vld [vmem:[%s8156_s12] sm:$0xff] }
 0xf24   :  { %4756 = vmatmul.mubr.msk.f32.vlgmr.msra.gmra.mrb[22].mxu1 %vm8270_vm12, %v2659_v40  ;;  %v2661_v56 = vmax.f32 %v2655_v29, 0.0 }
 0xf25   :  { %v2660_v35 = vmax.f32 %v2650_v16, 0.0 }
 0xf27   :  { %4758 = vmatprep.mubr.msk.f32.mxu1 %vm8271_vm7, %v2660_v35 }
 0xf28   :  { %4759 = vmatmul.mubr.msk.f32.gmra.mrb[24].mxu1 %vm8272_vm13, %v2661_v56 }
 0xff7   :  { %v4757_v57 = vpop.f32.mrb[22].mxu1 }
 0xff8   :  { %v2749_v58 = vpop.f32.mrb[23].mxu1 }
 0xff9   :  { %v5840_v25 = vpack.i.bf16 %v4757_v57, %v2749_v58 }
 0xffb   :  { %5831 = vrot.lane.b32.xlu0 %v5840_v25, %s6284_s29  ;;  %v4760_v28 = vpop.f32.mrb[24].mxu1 }
 0xffc   :  { %v2759_v63 = vpop.f32.mrb[25].mxu1 }
 0xffd   :  { %v5845_v15 = vpack.i.bf16 %v4760_v28, %v2759_v63 }
 0xfff   :  { %5841 = vrot.lane.b32.xlu0 %v5840_v25, %s6299_s3  ;;  %5836 = vrot.lane.b32.xlu1 %v5845_v15, %s6284_s29 }
0x1003   :  { %5846 = vrot.lane.b32.xlu0 %v5845_v15, %s6299_s3 }
0x106d   :  { %v5832_v7 = vpop.permute.xlu0 %5831 }
0x106e   :  { %v5834_v48 = vunpack.i.h.bf16 %v5832_v7  ;;  %v5833_v60 = vunpack.i.l.bf16 %v5832_v7 }
0x1070   :  { %v2863_v30 = vsel %vm1250_vm15, 0.0, %v5834_v48  ;;  %v2862_v2 = vsel %vm1250_vm15, 0.0, %v5833_v60 }
0x1071   :  { %v2867_v36 = vsel %vm1253_vm1, %v2863_v30, 0.0  ;;  %v2866_v10 = vsel %vm1253_vm1, %v2862_v2, 0.0  ;;  %v5837_v51 = vpop.permute.xlu1 %5836  ;;  %v5842_v31 = vpop.permute.xlu0 %5841 }
0x1072   :  { %v5839_v44 = vunpack.i.h.bf16 %v5837_v51  ;;  %v5838_v59 = vunpack.i.l.bf16 %v5837_v51  ;;  %v5860_v47 = vpack.i.bf16 %v2867_v36, %v2866_v10  ;;  %v5844_v21 = vunpack.i.h.bf16 %v5842_v31 }
0x1073   :  { %v5843_v52 = vunpack.i.l.bf16 %v5842_v31  ;;  %v2769_v31 = vld [vmem:[%s8157_s11 + $0x8] sm:$0xff] }
0x1074   :  { %v2865_v32 = vsel %vm1250_vm15, 0.0, %v5839_v44  ;;  %v2864_v42 = vsel %vm1250_vm15, 0.0, %v5838_v59  ;;  %5861 = vrot.lane.b32.xlu0 %v5860_v47, %s6286_s30  ;;  %5851 = vrot.lane.b32.xlu1 %v5860_v47, %s6285_s0  ;;  %v2791_v11 = vsel %vm1250_vm15, 0.0, %v5844_v21 }
0x1075   :  { %v2869_v8 = vsel %vm1253_vm1, %v2865_v32, 0.0  ;;  %v2868_v17 = vsel %vm1253_vm1, %v2864_v42, 0.0  ;;  %v5847_v55 = vpop.permute.xlu0 %5846  ;;  %v2790_v9 = vsel %vm1250_vm15, 0.0, %v5843_v52  ;;  %v2795_v62 = vsel %vm1253_vm1, %v2791_v11, 0.0  ;;  %4432 = vmatprep.mubr.msk.f32.mxu0 %vm1901_vm9, %v2769_v31  ;;  %v2773_v32 = vld [vmem:[%s8156_s12 + $0x8] sm:$0xff] }
0x1076   :  { %v5855_v26 = vpack.i.bf16 %v2869_v8, %v2868_v17  ;;  %v5849_v43 = vunpack.i.h.bf16 %v5847_v55  ;;  %v5848_v49 = vunpack.i.l.bf16 %v5847_v55  ;;  %v2794_v19 = vsel %vm1253_vm1, %v2790_v9, 0.0 }
0x1077   :  { %v5895_v22 = vpack.i.bf16 %v2795_v62, %v2794_v19 }
0x1078   :  { %5871 = vrot.lane.b32.xlu0 %v5860_v47, %s6287_s18  ;;  %5856 = vrot.lane.b32.xlu1 %v5855_v26, %s6285_s0  ;;  %v2793_v27 = vsel %vm1250_vm15, 0.0, %v5849_v43  ;;  %v2792_v20 = vsel %vm1250_vm15, 0.0, %v5848_v49  ;;  %vm8273_vm15 = vcmask 80896  }
0x1079   :  { %v2797_v50 = vsel %vm1253_vm1, %v2793_v27, 0.0  ;;  %v2796_v40 = vsel %vm1253_vm1, %v2792_v20, 0.0  ;;  %vm8274_vm1 = vmmov %vm8273_vm15 }
0x107a   :  { %v5905_v29 = vpack.i.bf16 %v2797_v50, %v2796_v40  ;;  %vm8275_vm2 = vmmov %vm8274_vm1 }
0x107b   :  { %vm8276_vm6 = vmmov %vm8274_vm1 }
0x107c   :  { %5881 = vrot.lane.b32.xlu0 %v5860_v47, %s6288_s19  ;;  %5866 = vrot.lane.b32.xlu1 %v5855_v26, %s6286_s30  ;;  %vm8277_vm11 = vmmov %vm8274_vm1 }
0x107d   :  { %vm8278_vm8 = vmmov %vm8274_vm1 }
0x107e   :  { %vm8279_vm14 = vmmov %vm8274_vm1 }
0x107f   :  { %vm8280_vm0 = vmmov %vm8274_vm1 }
0x1080   :  { %5891 = vrot.lane.b32.xlu0 %v5860_v47, %s6281_s27  ;;  %5876 = vrot.lane.b32.xlu1 %v5855_v26, %s6287_s18  ;;  %vm8281_vm12 = vmmov %vm8280_vm0 }
0x1081   :  { %vm8282_vm7 = vmmov %vm8280_vm0 }
0x1082   :  { %vm8283_vm13 = vmmov %vm8280_vm0 }
0x1084   :  { %5896 = vrot.lane.b32.xlu0 %v5895_v22, %s6285_s0  ;;  %5886 = vrot.lane.b32.xlu1 %v5855_v26, %s6288_s19 }
0x1088   :  { %5906 = vrot.lane.b32.xlu0 %v5905_v29, %s6285_s0  ;;  %5901 = vrot.lane.b32.xlu1 %v5855_v26, %s6281_s27 }
0x108c   :  { %5911 = vrot.lane.b32.xlu0 %v5895_v22, %s6286_s30 }
0x1090   :  { %5931 = vrot.lane.b32.xlu0 %v5905_v29, %s6286_s30 }
0x1094   :  { %5936 = vrot.lane.b32.xlu0 %v5895_v22, %s6287_s18 }
0x1098   :  { %5951 = vrot.lane.b32.xlu0 %v5905_v29, %s6287_s18 }
0x109c   :  { %5956 = vrot.lane.b32.xlu0 %v5895_v22, %s6288_s19 }
0x10a0   :  { %5971 = vrot.lane.b32.xlu0 %v5905_v29, %s6288_s19 }
0x10a4   :  { %2988 = vperm.xlu0 %5288, %v2772_v18  }
0x10e6   :  { %v5862_v16 = vpop.permute.xlu0 %5861  ;;  %v5852_v35 = vpop.permute.xlu1 %5851 }
0x10e7   :  { %5916 = vrot.lane.b32.xlu1 %v5852_v35, %s6281_s27 }
0x10ea   :  { %v5872_v56 = vpop.permute.xlu0 %5871  ;;  %v5857_v57 = vpop.permute.xlu1 %5856 }
0x10eb   :  { %5921 = vrot.lane.b32.xlu1 %v5857_v57, %s6281_s27 }
0x10ee   :  { %v5882_v58 = vpop.permute.xlu0 %5881  ;;  %v5867_v25 = vpop.permute.xlu1 %5866 }
0x10ef   :  { %5926 = vrot.lane.b32.xlu1 %v5862_v16, %s6281_s27 }
0x10f2   :  { %v5892_v28 = vpop.permute.xlu0 %5891  ;;  %v5877_v63 = vpop.permute.xlu1 %5876 }
0x10f3   :  { %v5894_v15 = vunpack.i.h.bf16 %v5892_v28  ;;  %v5893_v7 = vunpack.i.l.bf16 %v5892_v28  ;;  %5941 = vrot.lane.b32.xlu1 %v5867_v25, %s6281_s27 }
0x10f5   :  { %v2967_v48 = vsel %vm8273_vm15, %v2795_v62, %v5894_v15  ;;  %v2966_v60 = vsel %vm8274_vm1, %v2794_v19, %v5893_v7  ;;  %vm8284_vm15 = vmmov %vm8280_vm0 }
0x10f6   :  { %v5006_v30 = vpack.c.bf16 %v2967_v48, %v2966_v60  ;;  %v5887_v2 = vpop.permute.xlu1 %5886  ;;  %v5897_v42 = vpop.permute.xlu0 %5896  ;;  %vm8285_vm1 = vmmov %vm8280_vm0 }
0x10f7   :  { %5946 = vrot.lane.b32.xlu1 %v5872_v56, %s6281_s27  ;;  %v5899_v21 = vunpack.i.h.bf16 %v5897_v42  ;;  %v5898_v52 = vunpack.i.l.bf16 %v5897_v42 }
0x10f8   :  { %5007 = vmatpush1.bf16.msra.mxu0 %v5006_v30 }
0x10f9   :  { %5008 = vmatprep.subr.bf16.mxu0 %v6295_v34 }
0x10fa   :  { %v5902_v36 = vpop.permute.xlu1 %5901  ;;  %v5907_v8 = vpop.permute.xlu0 %5906 }
0x10fb   :  { %v5904_v10 = vunpack.i.h.bf16 %v5902_v36  ;;  %v5903_v51 = vunpack.i.l.bf16 %v5902_v36  ;;  %5961 = vrot.lane.b32.xlu1 %v5877_v63, %s6281_s27  ;;  %v5909_v27 = vunpack.i.h.bf16 %v5907_v8  ;;  %v5908_v20 = vunpack.i.l.bf16 %v5907_v8 }
0x10fd   :  { %v2969_v44 = vsel %vm8275_vm2, %v2797_v50, %v5904_v10  ;;  %v2968_v59 = vsel %vm8276_vm6, %v2796_v40, %v5903_v51  ;;  %vm8286_vm2 = vmmov %vm8280_vm0 }
0x10fe   :  { %v5009_v47 = vpack.c.bf16 %v2969_v44, %v2968_v59  ;;  %v5912_v17 = vpop.permute.xlu0 %5911  ;;  %vm8287_vm6 = vmmov %vm8280_vm0 }
0x10ff   :  { %5966 = vrot.lane.b32.xlu1 %v5882_v58, %s6281_s27  ;;  %v5914_v56 = vunpack.i.h.bf16 %v5912_v17  ;;  %v5913_v57 = vunpack.i.l.bf16 %v5912_v17 }
0x1100   :  { %5010 = vmatpush1.bf16.msra.mxu0 %v5009_v47 }
0x1101   :  { %5011 = vmatprep.subr.bf16.mxu0 %v6295_v34 }
0x1102   :  { %v5932_v9 = vpop.permute.xlu0 %5931 }
0x1103   :  { %5976 = vrot.lane.b32.xlu1 %v5887_v2, %s6281_s27  ;;  %v5934_v48 = vunpack.i.h.bf16 %v5932_v9  ;;  %v5933_v60 = vunpack.i.l.bf16 %v5932_v9 }
0x1106   :  { %v5937_v18 = vpop.permute.xlu0 %5936 }
0x1107   :  { %2993 = vperm.xlu1 %5334, %v2773_v32   ;;  %v5939_v47 = vunpack.i.h.bf16 %v5937_v18  ;;  %v5938_v31 = vunpack.i.l.bf16 %v5937_v18 }
0x110a   :  { %v5952_v36 = vpop.permute.xlu0 %5951 }
0x1159   :  { %v5917_v26 = vpop.permute.xlu1 %5916 }
0x115a   :  { %v5919_v55 = vunpack.i.h.bf16 %v5917_v26  ;;  %v5918_v11 = vunpack.i.l.bf16 %v5917_v26  ;;  %v5957_v26 = vpop.permute.xlu0 %5956 }
0x115c   :  { %v2971_v43 = vsel %vm8277_vm11, %v5899_v21, %v5919_v55  ;;  %v2970_v49 = vsel %vm8278_vm8, %v5898_v52, %v5918_v11  ;;  %v5954_v55 = vunpack.i.h.bf16 %v5952_v36  ;;  %v5953_v11 = vunpack.i.l.bf16 %v5952_v36  ;;  %vm8288_vm11 = vmmov %vm8280_vm0 }
0x115d   :  { %v5012_v62 = vpack.c.bf16 %v2971_v43, %v2970_v49  ;;  %v5922_v19 = vpop.permute.xlu1 %5921  ;;  %vm8289_vm8 = vmmov %vm8280_vm0  ;;  %v7564_v36 = vmul.u32 5, %v6620_v45 }
0x115e   :  { %v5924_v22 = vunpack.i.h.bf16 %v5922_v19  ;;  %v5923_v50 = vunpack.i.l.bf16 %v5922_v19 }
0x115f   :  { %5013 = vmatpush1.bf16.msra.mxu0 %v5012_v62 }
0x1160   :  { %v2973_v40 = vsel %vm8279_vm14, %v5909_v27, %v5924_v22  ;;  %v2972_v29 = vsel %vm8280_vm0, %v5908_v20, %v5923_v50  ;;  %5014 = vmatprep.subr.bf16.mxu0 %v6295_v34  ;;  %v5959_v20 = vunpack.i.h.bf16 %v5957_v26  ;;  %v5958_v22 = vunpack.i.l.bf16 %v5957_v26  ;;  %vm8290_vm14 = vmmov %vm8280_vm0 }
0x1161   :  { %v5015_v16 = vpack.c.bf16 %v2973_v40, %v2972_v29  ;;  %v5927_v35 = vpop.permute.xlu1 %5926  ;;  %v5972_v29 = vpop.permute.xlu0 %5971 }
0x1162   :  { %v5929_v58 = vunpack.i.h.bf16 %v5927_v35  ;;  %v5928_v25 = vunpack.i.l.bf16 %v5927_v35 }
0x1163   :  { %5016 = vmatpush1.bf16.msra.mxu0 %v5015_v16 }
0x1164   :  { %v2975_v28 = vsel %vm8281_vm12, %v5914_v56, %v5929_v58  ;;  %v2974_v63 = vsel %vm8282_vm7, %v5913_v57, %v5928_v25  ;;  %5017 = vmatprep.subr.bf16.mxu0 %v6295_v34  ;;  %v5974_v57 = vunpack.i.h.bf16 %v5972_v29  ;;  %v5973_v58 = vunpack.i.l.bf16 %v5972_v29  ;;  %vm8291_vm12 = vmmov %vm8280_vm0 }
0x1165   :  { %v5018_v15 = vpack.c.bf16 %v2975_v28, %v2974_v63  ;;  %v5942_v7 = vpop.permute.xlu1 %5941  ;;  %v2989_v61 = vpop.permute.xlu0 %2988 }
0x1166   :  { %v5944_v30 = vunpack.i.h.bf16 %v5942_v7  ;;  %v5943_v2 = vunpack.i.l.bf16 %v5942_v7 }
0x1167   :  { %5019 = vmatpush1.bf16.msra.mxu0 %v5018_v15 }
0x1168   :  { %v2977_v10 = vsel %vm8283_vm13, %v5934_v48, %v5944_v30  ;;  %v2976_v51 = vsel %vm8284_vm15, %v5933_v60, %v5943_v2  ;;  %5020 = vmatprep.subr.bf16.mxu0 %v6295_v34  ;;  %v2768_v48 = vld [vmem:[%s8157_s11] sm:$0xff]  ;;  %v2771_v60 = vld [vmem:[%s8157_s11 + $0x18] sm:$0xff]  ;;  %v2770_v30 = vld [vmem:[%s8157_s11 + $0x10] sm:$0xff]  ;;  %v7561_v2 = vmul.u32 5, %v6601_v41  ;;  %s8300_s11 = smov 123  }
0x1169   :  { %v5021_v44 = vpack.c.bf16 %v2977_v10, %v2976_v51  ;;  %v5947_v59 = vpop.permute.xlu1 %5946 }
0x116a   :  { %v5949_v32 = vunpack.i.h.bf16 %v5947_v59  ;;  %v5948_v42 = vunpack.i.l.bf16 %v5947_v59  ;;  %v3081_v10 = vsub.s32 %v6578_v33, %v7561_v2 }
0x116b   :  { %5022 = vmatpush1.bf16.msra.mxu0 %v5021_v44  ;;  %v3082_v44 = vsub.s32 %v6578_v33, %v7564_v36 }
0x116c   :  { %v2979_v8 = vsel %vm8285_vm1, %v5939_v47, %v5949_v32  ;;  %v2978_v17 = vsel %vm8286_vm2, %v5938_v31, %v5948_v42  ;;  %5023 = vmatprep.subr.bf16.mxu0 %v6295_v34  ;;  %vm3083_vm7 = vcmp.ge.s32.totalorder %v3081_v10, 0  ;;  %vm3085_vm13 = vcmp.lt.s32.totalorder %v3081_v10, 5 }
0x116d   :  { %v5024_v21 = vpack.c.bf16 %v2979_v8, %v2978_v17  ;;  %v5962_v52 = vpop.permute.xlu1 %5961  ;;  %vm3087_vm15 = vmand %vm3083_vm7, %vm3085_vm13  ;;  %vm3084_vm2 = vcmp.ge.s32.totalorder %v3082_v44, 0 }
0x116e   :  { %v5964_v9 = vunpack.i.h.bf16 %v5962_v52  ;;  %v5963_v43 = vunpack.i.l.bf16 %v5962_v52  ;;  %vm7570_vm1 = vmpackc.low %vm3087_vm15, %vm7451_vm5  ;;  %vm8296_vm5 = vcmask 1043456  }
0x116f   :  { %5025 = vmatpush1.bf16.msra.mxu0 %v5024_v21  ;;  %5036 = vmatprep.subr.msk.bf16.mxu1 %vm7570_vm1, %v6296_v38 }
0x1170   :  { %v2981_v49 = vsel %vm8287_vm6, %v5954_v55, %v5964_v9  ;;  %v2980_v62 = vsel %vm8288_vm11, %v5953_v11, %v5963_v43  ;;  %5026 = vmatprep.subr.bf16.mxu0 %v6295_v34  ;;  %5038 = vmatpush3.bf16.msk.msra.mxu1 %vm7570_vm1, %v6296_v38  ;;  %vm3086_vm6 = vcmp.lt.s32.totalorder %v3082_v44, 5 }
0x1171   :  { %v5027_v19 = vpack.c.bf16 %v2981_v49, %v2980_v62  ;;  %v5967_v27 = vpop.permute.xlu1 %5966  ;;  %vm7582_vm11 = vmand %vm3084_vm2, %vm3086_vm6 }
0x1172   :  { %v5969_v50 = vunpack.i.h.bf16 %v5967_v27  ;;  %v5968_v40 = vunpack.i.l.bf16 %v5967_v27  ;;  %v3090_v45 = vsel %vm7582_vm11, 1.0, %v6283_v13 }
0x1173   :  { %5028 = vmatpush1.bf16.msra.mxu0 %v5027_v19  ;;  %4765 = vmatprep.subr.msk.mxu1 %vm8296_vm5, %v3090_v45 }
0x1174   :  { %v2983_v18 = vsel %vm8289_vm8, %v5959_v20, %v5969_v50  ;;  %v2982_v16 = vsel %vm8290_vm14, %v5958_v22, %v5968_v40  ;;  %5029 = vmatprep.subr.bf16.mxu0 %v6295_v34  ;;  %vm8297_vm8 = vmmov %vm8296_vm5  ;;  %vm3091_vm14 = vcmask 162816  }
0x1175   :  { %v5030_v35 = vpack.c.bf16 %v2983_v18, %v2982_v16  ;;  %v5977_v56 = vpop.permute.xlu1 %5976  ;;  %4766 = vmatpush3.msk.msra.mxu1 %vm8297_vm8, %v3090_v45 }
0x1176   :  { %v5979_v25 = vunpack.i.h.bf16 %v5977_v56  ;;  %v5978_v28 = vunpack.i.l.bf16 %v5977_v56  ;;  %5039 = vmatprep.subr.bf16.mxu1 %v6295_v34 }
0x1177   :  { %5031 = vmatpush1.bf16.msra.mxu0 %v5030_v35 }
0x1178   :  { %v2985_v63 = vsel %vm8280_vm0, %v5974_v57, %v5979_v25  ;;  %v2984_v15 = vsel %vm8291_vm12, %v5973_v58, %v5978_v28  ;;  %5032 = vmatprep.subr.bf16.mxu0 %v6295_v34  ;;  %vm8298_vm0 = vcmask 31744   ;;  %v3178_v58 = vld [vmem:[%s8158_s14] sm:$0xff] }
0x1179   :  { %v5033_v7 = vpack.c.bf16 %v2985_v63, %v2984_v15  ;;  %vm8299_vm12 = vmmov %vm8298_vm0 }
0x117a   :  { %vm8301_vm7 = vmmov %vm8298_vm0 }
0x117b   :  { %5034 = vmatpush1.bf16.msra.mxu0 %v5033_v7  ;;  %vm8302_vm13 = vmmov %vm8298_vm0 }
0x117e   :  { %3067 = vmatmul.mubr.f32.vlgmr.msra.gmra.mrb[26].mxu0 %v2768_v48 }
0x117f   :  { %4433 = vmatprep.mubr.msk.f32.mxu0 %vm1901_vm9, %v2771_v60 }
0x1182   :  { %3072 = vmatmul.mubr.f32.gmra.mrb[28].mxu0 %v2770_v30 }
0x1183   :  { %3792 = vmatprep.mubr.f32.mxu0 %v6283_v13 }
0x1186   :  { %v2994_v42 = vpop.permute.xlu1 %2993 }
0x1251   :  { %v3068_v59 = vpop.f32.mrb[26].mxu0 }
0x1252   :  { %v3069_v47 = vadd.f32 %v3068_v59, %v2989_v61  ;;  %v3070_v31 = vpop.f32.mrb[27].mxu0 }
0x1254   :  { %v3077_v32 = vmax.f32 %v3069_v47, 0.0 }
0x1255   :  { %v3073_v8 = vpop.f32.mrb[28].mxu0 }
0x1256   :  { %v3074_v17 = vadd.f32 %v3073_v8, %v2994_v42  ;;  %v3075_v26 = vpop.f32.mrb[29].mxu0  ;;  %4767 = vmatprep.mubr.msk.f32.mxu1 %vm3091_vm14, %v3077_v32  ;;  %v3177_v32 = vld [vmem:[%s8159_s13 + $0x8] sm:$0xff]  ;;  %v7638_v42 = vmul.u32 5, %v6623_v46  ;;  %v7642_v8 = vadd.s32 128, %v6578_v33 }
0x1258   :  { %v3078_v21 = vmax.f32 %v3074_v17, 0.0  ;;  %v3467_v17 = vsub.s32 %v7642_v8, %v7447_v53  ;;  %v3470_v26 = vsub.s32 %v7642_v8, %v7561_v2  ;;  %v3473_v46 = vsub.s32 %v7642_v8, %v7564_v36 }
0x125a   :  { %4768 = vmatmul.mubr.msk.f32.vlgmr.msra.gmra.mrb[26].mxu1 %vm3091_vm14, %v3078_v21  ;;  %v3476_v21 = vsub.s32 %v6578_v33, %v7638_v42  ;;  %vm3519_vm15 = vcmp.ge.s32.totalorder %v3470_v26, 0  ;;  %vm3565_vm2 = vcmp.lt.s32.totalorder %v3467_v17, 5  ;;  %vm3568_vm6 = vcmp.lt.s32.totalorder %v3470_v26, 5 }
0x125b   :  { %4439 = vmatprep.mubr.msk.f32.mxu1 %vm1901_vm9, %v3177_v32  ;;  %vm3617_vm5 = vmand %vm3519_vm15, %vm3568_vm6  ;;  %v8324_v32 = vmov 0 }
0x125c   :  { %vm3525_vm8 = vcmp.ge.s32.totalorder %v3476_v21, 0  ;;  %vm3574_vm14 = vcmp.lt.s32.totalorder %v3476_v21, 5  ;;  %v8328_v21 = vmov 0 }
0x132d   :  { %v4769_v52 = vpop.f32.mrb[26].mxu1 }
0x132e   :  { %v3167_v55 = vpop.f32.mrb[27].mxu1 }
0x132f   :  { %v5985_v11 = vpack.i.bf16 %v4769_v52, %v3167_v55  ;;  %v3477_v52 = vsub.s32 %v7642_v8, %v7638_v42 }
0x1331   :  { %5986 = vrot.lane.b32.xlu1 %v5985_v11, %s6282_s28  ;;  %5981 = vrot.lane.b32.xlu0 %v5985_v11, %s6297_s1  ;;  %s8303_s1 = smov 121   ;;  %v3458_v11 = vmul.u32 5, %v6682_v3  ;;  %vm3575_vm15 = vcmp.lt.s32.totalorder %v3477_v52, 5 }
0x1333   :  { %v3481_v51 = vsub.s32 %v7642_v8, %v3458_v11 }
0x13a3   :  { %v5982_v9 = vpop.permute.xlu0 %5981  ;;  %v5987_v50 = vpop.permute.xlu1 %5986 }
0x13a4   :  { %v5984_v43 = vunpack.i.h.bf16 %v5982_v9  ;;  %v5983_v49 = vunpack.i.l.bf16 %v5982_v9  ;;  %v5989_v40 = vunpack.i.h.bf16 %v5987_v50  ;;  %v5988_v29 = vunpack.i.l.bf16 %v5987_v50 }
0x13a5   :  { %v3459_v9 = vmul.u32 5, %v6685_v6  ;;  %v8308_v50 = vmov 0 }
0x13a6   :  { %v3254_v62 = vsel %vm8298_vm0, 0.0, %v5984_v43  ;;  %v3253_v19 = vsel %vm8299_vm12, 0.0, %v5983_v49  ;;  %v3188_v18 = vsel %vm8301_vm7, 0.0, %v5989_v40  ;;  %v3187_v16 = vsel %vm8302_vm13, 0.0, %v5988_v29  ;;  %vm7660_vm12 = vmand %vm3525_vm8, %vm3574_vm14 }
0x13a7   :  { %v3256_v27 = vsel %vm929_vm4, %v3254_v62, 0.0  ;;  %v3255_v20 = vsel %vm929_vm4, %v3253_v19, 0.0  ;;  %v3190_v35 = vsel %vm929_vm4, %v3188_v18, 0.0  ;;  %v3189_v56 = vsel %vm929_vm4, %v3187_v16, 0.0 }
0x13a8   :  { %v5995_v22 = vpack.i.bf16 %v3256_v27, %v3255_v20  ;;  %v6040_v57 = vpack.i.bf16 %v3190_v35, %v3189_v56  ;;  %vm3516_vm4 = vcmp.ge.s32.totalorder %v3467_v17, 0  ;;  %vm3522_vm7 = vcmp.ge.s32.totalorder %v3473_v46, 0 }
0x13a9   :  { %vm3614_vm9 = vmand %vm3516_vm4, %vm3565_vm2  ;;  %vm3571_vm13 = vcmp.lt.s32.totalorder %v3473_v46, 5  ;;  %vm3526_vm4 = vcmp.ge.s32.totalorder %v3477_v52, 0  ;;  %v7672_v43 = vadd.s32 384, %v6578_v33  ;;  %v3485_v3 = vsub.s32 %v7642_v8, %v3459_v9 }
0x13aa   :  { %5996 = vrot.lane.b32.xlu1 %v5995_v22, %s6286_s30  ;;  %5991 = vrot.lane.b32.xlu0 %v5995_v22, %s6285_s0  ;;  %vm5069_vm0 = vmpackc.low %vm3617_vm5, %vm3614_vm9  ;;  %vm3530_vm5 = vcmp.ge.s32.totalorder %v3481_v51, 0  ;;  %vm3579_vm8 = vcmp.lt.s32.totalorder %v3481_v51, 5  ;;  %v3480_v49 = vsub.s32 %v6578_v33, %v3458_v11  ;;  %v7681_v62 = vadd.s32 256, %v6578_v33 }
0x13ab   :  { %5070 = vmatprep.subr.msk.bf16.mxu0 %vm5069_vm0, %v6296_v38  ;;  %vm5075_vm2 = vmpackc.low %vm7660_vm12, %vm7582_vm11  ;;  %v3483_v6 = vsub.s32 %v7672_v43, %v3458_v11  ;;  %v3487_v41 = vsub.s32 %v7672_v43, %v3459_v9  ;;  %vm3534_vm11 = vcmp.ge.s32.totalorder %v3485_v3, 0  ;;  %vm3583_vm14 = vcmp.lt.s32.totalorder %v3485_v3, 5 }
0x13ac   :  { %5072 = vmatpush1.bf16.msk.msra.mxu0 %vm7570_vm1, %v6296_v38  ;;  %vm3620_vm6 = vmand %vm3522_vm7, %vm3571_vm13  ;;  %v3484_v19 = vsub.s32 %v6578_v33, %v3459_v9  ;;  %v3460_v27 = vmul.u32 5, %v6706_v14  ;;  %v3461_v20 = vmul.u32 5, %v6709_v12  ;;  %v3486_v40 = vsub.s32 %v7681_v62, %v3459_v9 }
0x13ad   :  { %vm3624_vm9 = vmand %vm3526_vm4, %vm3575_vm15  ;;  %vm3532_vm12 = vcmp.ge.s32.totalorder %v3483_v6, 0  ;;  %vm3581_vm7 = vcmp.lt.s32.totalorder %v3483_v6, 5  ;;  %vm3536_vm4 = vcmp.ge.s32.totalorder %v3487_v41, 0  ;;  %vm3585_vm15 = vcmp.lt.s32.totalorder %v3487_v41, 5 }
0x13ae   :  { %6006 = vrot.lane.b32.xlu1 %v5995_v22, %s6288_s19  ;;  %6001 = vrot.lane.b32.xlu0 %v5995_v22, %s6287_s18  ;;  %vm5073_vm1 = vmpackc.low %vm3624_vm9, %vm3620_vm6  ;;  %vm3529_vm9 = vcmp.ge.s32.totalorder %v3480_v49, 0  ;;  %v3489_v12 = vsub.s32 %v7642_v8, %v3460_v27  ;;  %v3493_v29 = vsub.s32 %v7642_v8, %v3461_v20  ;;  %v3491_v18 = vsub.s32 %v7672_v43, %v3460_v27 }
0x13af   :  { %5074 = vmatprep.subr.msk.bf16.mxu0 %vm5073_vm1, %v6296_v38  ;;  %vm3628_vm0 = vmand %vm3530_vm5, %vm3579_vm8  ;;  %vm3578_vm1 = vcmp.lt.s32.totalorder %v3480_v49, 5  ;;  %vm3533_vm8 = vcmp.ge.s32.totalorder %v3484_v19, 0  ;;  %v8312_v16 = vmov 0  ;;  %v8326_v17 = vmov 0 }
0x13b0   :  { %5076 = vmatpush1.bf16.msk.msra.mxu0 %vm5075_vm2, %v6296_v38  ;;  %vm3632_vm13 = vmand %vm3534_vm11, %vm3583_vm14  ;;  %vm3582_vm11 = vcmp.lt.s32.totalorder %v3484_v19, 5  ;;  %vm3538_vm14 = vcmp.ge.s32.totalorder %v3489_v12, 0  ;;  %v8330_v46 = vmov 0 }
0x13b1   :  { %vm5077_vm2 = vmpackc.low %vm3632_vm13, %vm3628_vm0 }
0x13b2   :  { %6016 = vrot.lane.b32.xlu1 %v5995_v22, %s6290_s20  ;;  %6011 = vrot.lane.b32.xlu0 %v5995_v22, %s8300_s11  ;;  %vm7688_vm6 = vmand %vm3532_vm12, %vm3581_vm7 }
0x13b3   :  { %5078 = vmatprep.subr.msk.bf16.mxu0 %vm5077_vm2, %v6296_v38  ;;  %v8309_v50 = vsel %vm7688_vm6, 4294967295, %v8308_v50  ;;  %vm7693_vm5 = vmand %vm3536_vm4, %vm3585_vm15  ;;  %vm3535_vm2 = vcmp.ge.s32.totalorder %v3486_v40, 0  ;;  %vm3584_vm4 = vcmp.lt.s32.totalorder %v3486_v40, 5 }
0x13b4   :  { %vm3627_vm0 = vmand %vm3529_vm9, %vm3578_vm1  ;;  %vm3542_vm1 = vcmp.ge.s32.totalorder %v3493_v29, 0 }
0x13b5   :  { %vm3631_vm13 = vmand %vm3533_vm8, %vm3582_vm11  ;;  %vm3591_vm8 = vcmp.lt.s32.totalorder %v3493_v29, 5 }
0x13b6   :  { %6026 = vrot.lane.b32.xlu1 %v5995_v22, %s6284_s29  ;;  %6021 = vrot.lane.b32.xlu0 %v5995_v22, %s8303_s1  ;;  %vm5079_vm15 = vmpackc.low %vm3631_vm13, %vm3627_vm0 }
0x13b7   :  { %5080 = vmatpush1.bf16.msk.msra.mxu0 %vm5079_vm15, %v6296_v38  ;;  %vm7710_vm9 = vmand %vm3535_vm2, %vm3584_vm4 }
0x13b8   :  { %vm3640_vm13 = vmand %vm3542_vm1, %vm3591_vm8 }
0x13ba   :  { %6036 = vrot.lane.b32.xlu1 %v5995_v22, %s8304_s26  ;;  %6031 = vrot.lane.b32.xlu0 %v5995_v22, %s8305_s23  ;;  %v3482_v22 = vsub.s32 %v7681_v62, %v3458_v11 }
0x13bc   :  { %vm3531_vm12 = vcmp.ge.s32.totalorder %v3482_v22, 0  ;;  %vm3580_vm7 = vcmp.lt.s32.totalorder %v3482_v22, 5 }
0x13bd   :  { %vm7705_vm3 = vmand %vm3531_vm12, %vm3580_vm7  ;;  %vm3540_vm12 = vcmp.ge.s32.totalorder %v3491_v18, 0  ;;  %vm3589_vm7 = vcmp.lt.s32.totalorder %v3491_v18, 5 }
0x13be   :  { %6041 = vrot.lane.b32.xlu0 %v6040_v57, %s6285_s0  ;;  %v8313_v16 = vsel %vm7705_vm3, 4294967295, %v8312_v16  ;;  %vm7724_vm11 = vmand %vm3540_vm12, %vm3589_vm7 }
0x13c2   :  { %6046 = vrot.lane.b32.xlu0 %v6040_v57, %s6286_s30 }
0x13c6   :  { %6051 = vrot.lane.b32.xlu0 %v6040_v57, %s6287_s18 }
0x13ca   :  { %6056 = vrot.lane.b32.xlu0 %v6040_v57, %s6288_s19 }
0x13ce   :  { %6061 = vrot.lane.b32.xlu0 %v6040_v57, %s8300_s11 }
0x13d2   :  { %6066 = vrot.lane.b32.xlu0 %v6040_v57, %s6290_s20 }
0x13d6   :  { %6071 = vrot.lane.b32.xlu0 %v6040_v57, %s8303_s1 }
0x13da   :  { %6076 = vrot.lane.b32.xlu0 %v6040_v57, %s6284_s29 }
0x13de   :  { %6081 = vrot.lane.b32.xlu0 %v6040_v57, %s8305_s23  ;;  %v3488_v57 = vsub.s32 %v6578_v33, %v3460_v27 }
0x13e2   :  { %3377 = vperm.xlu0 %5288, %v3178_v58   ;;  %v3492_v58 = vsub.s32 %v6578_v33, %v3461_v20 }
0x13e4   :  { %vm3541_vm1 = vcmp.ge.s32.totalorder %v3492_v58, 0  ;;  %vm3590_vm8 = vcmp.lt.s32.totalorder %v3492_v58, 5 }
0x141c   :  { %v5997_v25 = vpop.permute.xlu1 %5996  ;;  %v5992_v28 = vpop.permute.xlu0 %5991 }
0x141d   :  { %6086 = vrot.lane.b32.xlu1 %v5992_v28, %s8304_s26  ;;  %v3463_v28 = vmul.u32 5, %v6737_v24 }
0x1420   :  { %v6007_v63 = vpop.permute.xlu1 %6006  ;;  %v6002_v15 = vpop.permute.xlu0 %6001 }
0x1421   :  { %6091 = vrot.lane.b32.xlu1 %v5997_v25, %s8304_s26  ;;  %v3462_v25 = vmul.u32 5, %v6734_v23  ;;  %v8318_v23 = vmov 0 }
0x1423   :  { %v3497_v24 = vsub.s32 %v7642_v8, %v3462_v25 }
0x1424   :  { %v6017_v7 = vpop.permute.xlu1 %6016  ;;  %v6012_v48 = vpop.permute.xlu0 %6011 }
0x1425   :  { %6096 = vrot.lane.b32.xlu1 %v6002_v15, %s8304_s26  ;;  %v8316_v15 = vmov 0 }
0x1426   :  { %v8317_v15 = vsel %vm7724_vm11, 4294967295, %v8316_v15  ;;  %vm3595_vm11 = vcmp.lt.s32.totalorder %v3497_v24, 5 }
0x1428   :  { %v6027_v60 = vpop.permute.xlu1 %6026  ;;  %v6022_v59 = vpop.permute.xlu0 %6021 }
0x1429   :  { %6101 = vrot.lane.b32.xlu1 %v6007_v63, %s8304_s26  ;;  %v3490_v63 = vsub.s32 %v7681_v62, %v3460_v27 }
0x142b   :  { %vm3539_vm7 = vcmp.ge.s32.totalorder %v3490_v63, 0 }
0x142c   :  { %v6037_v30 = vpop.permute.xlu1 %6036  ;;  %v6032_v31 = vpop.permute.xlu0 %6031 }
0x142d   :  { %v6039_v10 = vunpack.i.h.bf16 %v6037_v30  ;;  %v6038_v44 = vunpack.i.l.bf16 %v6037_v30  ;;  %6106 = vrot.lane.b32.xlu1 %v6012_v48, %s8304_s26  ;;  %v3501_v48 = vsub.s32 %v7642_v8, %v3463_v28  ;;  %v8320_v30 = vmov 0 }
0x142f   :  { %v3356_v45 = vsel %vm8187_vm10, %v3190_v35, %v6039_v10  ;;  %v3355_v61 = vsel %vm8187_vm10, %v3189_v56, %v6038_v44  ;;  %vm3587_vm10 = vcmp.lt.s32.totalorder %v3489_v12, 5  ;;  %v3495_v35 = vsub.s32 %v7672_v43, %v3461_v20 }
0x1430   :  { %v5040_v47 = vpack.c.bf16 %v3356_v45, %v3355_v61  ;;  %v8314_v56 = vmov 0  ;;  %vm3636_vm0 = vmand %vm3538_vm14, %vm3587_vm10  ;;  %vm3537_vm10 = vcmp.ge.s32.totalorder %v3488_v57, 0  ;;  %vm3586_vm14 = vcmp.lt.s32.totalorder %v3488_v57, 5  ;;  %v6042_v52 = vpop.permute.xlu0 %6041 }
0x1431   :  { %6111 = vrot.lane.b32.xlu1 %v6017_v7, %s8304_s26  ;;  %v8315_v56 = vsel %vm7710_vm9, 4294967295, %v8314_v56  ;;  %vm3544_vm2 = vcmp.ge.s32.totalorder %v3495_v35, 0  ;;  %vm3593_vm4 = vcmp.lt.s32.totalorder %v3495_v35, 5  ;;  %vm5081_vm15 = vmpackc.low %vm3640_vm13, %vm3636_vm0  ;;  %v3494_v7 = vsub.s32 %v7681_v62, %v3461_v20 }
0x1432   :  { %5041 = vmatpush1.bf16.msra.mxu1 %v5040_v47  ;;  %5082 = vmatprep.subr.msk.bf16.mxu0 %vm5081_vm15, %v6296_v38  ;;  %vm7729_vm3 = vmand %vm3544_vm2, %vm3593_vm4  ;;  %vm3588_vm13 = vcmp.lt.s32.totalorder %v3490_v63, 5  ;;  %vm3546_vm0 = vcmp.ge.s32.totalorder %v3497_v24, 0  ;;  %v3503_v10 = vsub.s32 %v7672_v43, %v3463_v28  ;;  %v8322_v44 = vmov 0 }
0x1433   :  { %5042 = vmatprep.subr.bf16.mxu1 %v6295_v34  ;;  %v8319_v23 = vsel %vm7729_vm3, 4294967295, %v8318_v23  ;;  %vm3635_vm12 = vmand %vm3537_vm10, %vm3586_vm14  ;;  %vm3543_vm9 = vcmp.ge.s32.totalorder %v3494_v7, 0  ;;  %vm3592_vm2 = vcmp.lt.s32.totalorder %v3494_v7, 5  ;;  %vm3550_vm14 = vcmp.ge.s32.totalorder %v3501_v48, 0 }
0x1434   :  { %vm3639_vm15 = vmand %vm3541_vm1, %vm3590_vm8  ;;  %vm3599_vm1 = vcmp.lt.s32.totalorder %v3501_v48, 5  ;;  %v3496_v45 = vsub.s32 %v6578_v33, %v3462_v25  ;;  %v3500_v61 = vsub.s32 %v6578_v33, %v3463_v28  ;;  %v7760_v47 = vmul.u32 5, %v6775_v39  ;;  %v6047_v55 = vpop.permute.xlu0 %6046 }
0x1435   :  { %6116 = vrot.lane.b32.xlu1 %v6022_v59, %s8304_s26  ;;  %vm5083_vm4 = vmpackc.low %vm3639_vm15, %vm3635_vm12  ;;  %v7757_v59 = vmul.u32 5, %v6772_v37  ;;  %vm3552_vm15 = vcmp.ge.s32.totalorder %v3503_v10, 0  ;;  %v3502_v37 = vsub.s32 %v7681_v62, %v3463_v28  ;;  %v6044_v3 = vunpack.i.h.bf16 %v6042_v52 }
0x1436   :  { %5084 = vmatpush1.bf16.msk.msra.mxu0 %vm5083_vm4, %v6296_v38  ;;  %vm7741_vm6 = vmand %vm3539_vm7, %vm3588_vm13  ;;  %v3509_v26 = vsub.s32 %v7642_v8, %v7760_v47  ;;  %v6043_v6 = vunpack.i.l.bf16 %v6042_v52  ;;  %v6049_v40 = vunpack.i.h.bf16 %v6047_v55  ;;  %v6048_v12 = vunpack.i.l.bf16 %v6047_v55 }
0x1437   :  { %v8321_v30 = vsel %vm7741_vm6, 4294967295, %v8320_v30  ;;  %vm7746_vm10 = vmand %vm3543_vm9, %vm3592_vm2  ;;  %vm3601_vm2 = vcmp.lt.s32.totalorder %v3503_v10, 5  ;;  %v3505_v39 = vsub.s32 %v7642_v8, %v7757_v59  ;;  %v3504_v14 = vsub.s32 %v6578_v33, %v7757_v59 }
0x1438   :  { %v8323_v44 = vsel %vm7746_vm10, 4294967295, %v8322_v44  ;;  %vm3644_vm12 = vmand %vm3546_vm0, %vm3595_vm11  ;;  %vm3545_vm11 = vcmp.ge.s32.totalorder %v3496_v45, 0  ;;  %vm3594_vm0 = vcmp.lt.s32.totalorder %v3496_v45, 5  ;;  %v6052_v11 = vpop.permute.xlu0 %6051 }
0x1439   :  { %6121 = vrot.lane.b32.xlu1 %v6027_v60, %s8304_s26  ;;  %v3499_v60 = vsub.s32 %v7672_v43, %v3462_v25  ;;  %vm3648_vm9 = vmand %vm3550_vm14, %vm3599_vm1  ;;  %vm3549_vm14 = vcmp.ge.s32.totalorder %v3500_v61, 0  ;;  %vm3598_vm1 = vcmp.lt.s32.totalorder %v3500_v61, 5  ;;  %v6054_v63 = vunpack.i.h.bf16 %v6052_v11 }
0x143a   :  { %vm5085_vm4 = vmpackc.low %vm3648_vm9, %vm3644_vm12  ;;  %vm3554_vm12 = vcmp.ge.s32.totalorder %v3505_v39, 0  ;;  %v6053_v7 = vunpack.i.l.bf16 %v6052_v11 }
0x143b   :  { %vm3548_vm7 = vcmp.ge.s32.totalorder %v3499_v60, 0  ;;  %vm3597_vm13 = vcmp.lt.s32.totalorder %v3499_v60, 5  ;;  %5086 = vmatprep.subr.msk.bf16.mxu0 %vm5085_vm4, %v6296_v38  ;;  %vm7769_vm6 = vmand %vm3552_vm15, %vm3601_vm2  ;;  %vm3551_vm2 = vcmp.ge.s32.totalorder %v3502_v37, 0  ;;  %vm3600_vm4 = vcmp.lt.s32.totalorder %v3502_v37, 5 }
0x143c   :  { %vm7764_vm8 = vmand %vm3548_vm7, %vm3597_vm13  ;;  %v8327_v17 = vsel %vm7769_vm6, 4294967295, %v8326_v17  ;;  %v6057_v9 = vpop.permute.xlu0 %6056 }
0x143d   :  { %6126 = vrot.lane.b32.xlu1 %v6032_v31, %s8304_s26  ;;  %v3498_v31 = vsub.s32 %v7681_v62, %v3462_v25  ;;  %v8325_v32 = vsel %vm7764_vm8, 4294967295, %v8324_v32  ;;  %vm3643_vm7 = vmand %vm3545_vm11, %vm3594_vm0  ;;  %vm3603_vm8 = vcmp.lt.s32.totalorder %v3505_v39, 5  ;;  %vm3558_vm11 = vcmp.ge.s32.totalorder %v3509_v26, 0 }
0x143e   :  { %vm3647_vm15 = vmand %vm3549_vm14, %vm3598_vm1  ;;  %vm3607_vm0 = vcmp.lt.s32.totalorder %v3509_v26, 5  ;;  %v6059_v37 = vunpack.i.h.bf16 %v6057_v9  ;;  %v6058_v39 = vunpack.i.l.bf16 %v6057_v9 }
0x143f   :  { %vm3547_vm13 = vcmp.ge.s32.totalorder %v3498_v31, 0  ;;  %vm3596_vm9 = vcmp.lt.s32.totalorder %v3498_v31, 5  ;;  %vm5087_vm10 = vmpackc.low %vm3647_vm15, %vm3643_vm7 }
0x1440   :  { %5088 = vmatpush1.bf16.msk.msra.mxu0 %vm5087_vm10, %v6296_v38  ;;  %vm7782_vm3 = vmand %vm3547_vm13, %vm3596_vm9  ;;  %vm8332_vm13 = vcmask 408576   ;;  %v6062_v35 = vpop.permute.xlu0 %6061 }
0x1441   :  { %v8329_v21 = vsel %vm7782_vm3, 4294967295, %v8328_v21  ;;  %vm7786_vm6 = vmand %vm3551_vm2, %vm3600_vm4 }
0x1442   :  { %v8331_v46 = vsel %vm7786_vm6, 4294967295, %v8330_v46  ;;  %vm3652_vm1 = vmand %vm3554_vm12, %vm3603_vm8 }
0x1443   :  { %vm3656_vm7 = vmand %vm3558_vm11, %vm3607_vm0 }
0x1444   :  { %vm5089_vm10 = vmpackc.low %vm3656_vm7, %vm3652_vm1  ;;  %v6067_v45 = vpop.permute.xlu0 %6066 }
0x1445   :  { %5090 = vmatprep.subr.msk.bf16.mxu0 %vm5089_vm10, %v6296_v38  ;;  %vm8333_vm9 = vmmov %vm8332_vm13 }
0x1446   :  { %vm8334_vm8 = vmmov %vm8333_vm9 }
0x1447   :  { %vm8335_vm12 = vmmov %vm8334_vm8 }
0x1448   :  { %vm8336_vm15 = vmmov %vm8334_vm8 }
0x1449   :  { %vm8337_vm2 = vmmov %vm8334_vm8 }
0x144a   :  { %vm8338_vm4 = vmmov %vm8337_vm2 }
0x144b   :  { %vm8339_vm11 = vmmov %vm8337_vm2 }
0x144c   :  { %vm8340_vm0 = vmmov %vm8337_vm2 }
0x144d   :  { %vm8341_vm1 = vmmov %vm8340_vm0 }
0x144e   :  { %vm8342_vm7 = vmmov %vm8340_vm0 }
0x144f   :  { %vm8343_vm10 = vmmov %vm8340_vm0 }
0x148f   :  { %v6087_v51 = vpop.permute.xlu1 %6086 }
0x1490   :  { %v6089_v41 = vunpack.i.h.bf16 %v6087_v51  ;;  %v6088_v49 = vunpack.i.l.bf16 %v6087_v51 }
0x1492   :  { %v3358_v19 = vsel %vm8332_vm13, %v6044_v3, %v6089_v41  ;;  %v3357_v27 = vsel %vm8333_vm9, %v6043_v6, %v6088_v49  ;;  %v6064_v6 = vunpack.i.h.bf16 %v6062_v35  ;;  %v6063_v41 = vunpack.i.l.bf16 %v6062_v35 }
0x1493   :  { %v5043_v20 = vpack.c.bf16 %v3358_v19, %v3357_v27  ;;  %v6092_v22 = vpop.permute.xlu1 %6091  ;;  %v6072_v27 = vpop.permute.xlu0 %6071  ;;  %v3469_v35 = vsub.s32 %v7672_v43, %v7447_v53 }
0x1494   :  { %v6094_v29 = vunpack.i.h.bf16 %v6092_v22  ;;  %v6093_v18 = vunpack.i.l.bf16 %v6092_v22 }
0x1495   :  { %5044 = vmatpush1.bf16.msra.mxu1 %v5043_v20  ;;  %vm3518_vm13 = vcmp.ge.s32.totalorder %v3469_v35, 0 }
0x1496   :  { %v3360_v57 = vsel %vm8334_vm8, %v6049_v40, %v6094_v29  ;;  %v3359_v58 = vsel %vm8335_vm12, %v6048_v12, %v6093_v18  ;;  %5045 = vmatprep.subr.bf16.mxu1 %v6295_v34  ;;  %v6069_v12 = vunpack.i.h.bf16 %v6067_v45  ;;  %v6068_v29 = vunpack.i.l.bf16 %v6067_v45  ;;  %vm8344_vm12 = vmmov %vm8340_vm0 }
0x1497   :  { %v5046_v25 = vpack.c.bf16 %v3360_v57, %v3359_v58  ;;  %v6097_v28 = vpop.permute.xlu1 %6096  ;;  %v3472_v58 = vsub.s32 %v7672_v43, %v7561_v2  ;;  %vm3567_vm8 = vcmp.lt.s32.totalorder %v3469_v35, 5 }
0x1498   :  { %v6099_v24 = vunpack.i.h.bf16 %v6097_v28  ;;  %v6098_v48 = vunpack.i.l.bf16 %v6097_v28 }
0x1499   :  { %5047 = vmatpush1.bf16.msra.mxu1 %v5046_v25  ;;  %vm3521_vm9 = vcmp.ge.s32.totalorder %v3472_v58, 0 }
0x149a   :  { %v3362_v60 = vsel %vm8336_vm15, %v6054_v63, %v6099_v24  ;;  %v3361_v10 = vsel %vm8337_vm2, %v6053_v7, %v6098_v48  ;;  %5048 = vmatprep.subr.bf16.mxu1 %v6295_v34  ;;  %v6077_v63 = vpop.permute.xlu0 %6076  ;;  %v3468_v48 = vsub.s32 %v7681_v62, %v7447_v53  ;;  %vm8345_vm15 = vmmov %vm8340_vm0  ;;  %vm3570_vm2 = vcmp.lt.s32.totalorder %v3472_v58, 5 }
0x149b   :  { %v5049_v61 = vpack.c.bf16 %v3362_v60, %v3361_v10  ;;  %v6102_v31 = vpop.permute.xlu1 %6101  ;;  %v6074_v60 = vunpack.i.h.bf16 %v6072_v27  ;;  %v6073_v10 = vunpack.i.l.bf16 %v6072_v27  ;;  %v3475_v53 = vsub.s32 %v7672_v43, %v7564_v36 }
0x149c   :  { %v6104_v26 = vunpack.i.h.bf16 %v6102_v31  ;;  %v6103_v52 = vunpack.i.l.bf16 %v6102_v31  ;;  %v3471_v31 = vsub.s32 %v7681_v62, %v7561_v2 }
0x149d   :  { %5050 = vmatpush1.bf16.msra.mxu1 %v5049_v61 }
0x149e   :  { %v3364_v55 = vsel %vm8338_vm4, %v6059_v37, %v6104_v26  ;;  %v3363_v11 = vsel %vm8339_vm11, %v6058_v39, %v6103_v52  ;;  %5051 = vmatprep.subr.bf16.mxu1 %v6295_v34  ;;  %vm3517_vm4 = vcmp.ge.s32.totalorder %v3468_v48, 0  ;;  %vm3566_vm11 = vcmp.lt.s32.totalorder %v3468_v48, 5 }
0x149f   :  { %v5052_v51 = vpack.c.bf16 %v3364_v55, %v3363_v11  ;;  %v6107_v3 = vpop.permute.xlu1 %6106  ;;  %v3479_v55 = vsub.s32 %v7672_v43, %v7638_v42  ;;  %v6079_v11 = vunpack.i.h.bf16 %v6077_v63  ;;  %vm7846_vm14 = vmand %vm3517_vm4, %vm3566_vm11  ;;  %vm8357_vm4 = vcmask 408576  }
0x14a0   :  { %v6109_v49 = vunpack.i.h.bf16 %v6107_v3  ;;  %v6108_v19 = vunpack.i.l.bf16 %v6107_v3  ;;  %vm8358_vm11 = vmmov %vm8357_vm4 }
0x14a1   :  { %5053 = vmatpush1.bf16.msra.mxu1 %v5052_v51  ;;  %v6078_v51 = vunpack.i.l.bf16 %v6077_v63 }
0x14a2   :  { %v3366_v20 = vsel %vm8340_vm0, %v6064_v6, %v6109_v49  ;;  %v3365_v9 = vsel %vm8341_vm1, %v6063_v41, %v6108_v19  ;;  %5054 = vmatprep.subr.bf16.mxu1 %v6295_v34  ;;  %v6082_v6 = vpop.permute.xlu0 %6081  ;;  %vm7829_vm0 = vmand %vm3518_vm13, %vm3567_vm8  ;;  %vm3520_vm1 = vcmp.ge.s32.totalorder %v3471_v31, 0  ;;  %v3474_v49 = vsub.s32 %v7681_v62, %v7564_v36 }
0x14a3   :  { %v5055_v22 = vpack.c.bf16 %v3366_v20, %v3365_v9  ;;  %v6112_v40 = vpop.permute.xlu1 %6111  ;;  %vm3524_vm13 = vcmp.ge.s32.totalorder %v3475_v53, 0  ;;  %vm3573_vm8 = vcmp.lt.s32.totalorder %v3475_v53, 5 }
0x14a4   :  { %v6114_v18 = vunpack.i.h.bf16 %v6112_v40  ;;  %v6113_v57 = vunpack.i.l.bf16 %v6112_v40  ;;  %v3478_v40 = vsub.s32 %v7681_v62, %v7638_v42 }
0x14a5   :  { %5056 = vmatpush1.bf16.msra.mxu1 %v5055_v22 }
0x14a6   :  { %v3368_v25 = vsel %vm8342_vm7, %v6069_v12, %v6114_v18  ;;  %v3367_v28 = vsel %vm8343_vm10, %v6068_v29, %v6113_v57  ;;  %5057 = vmatprep.subr.bf16.mxu1 %v6295_v34  ;;  %vm3569_vm7 = vcmp.lt.s32.totalorder %v3471_v31, 5  ;;  %v6084_v12 = vunpack.i.h.bf16 %v6082_v6 }
0x14a7   :  { %v5058_v7 = vpack.c.bf16 %v3368_v25, %v3367_v28  ;;  %v6117_v24 = vpop.permute.xlu1 %6116  ;;  %v6083_v29 = vunpack.i.l.bf16 %v6082_v6 }
0x14a8   :  { %v6119_v45 = vunpack.i.h.bf16 %v6117_v24  ;;  %v6118_v61 = vunpack.i.l.bf16 %v6117_v24  ;;  %v3511_v24 = vsub.s32 %v7672_v43, %v7760_v47 }
0x14a9   :  { %5059 = vmatpush1.bf16.msra.mxu1 %v5058_v7  ;;  %v3507_v7 = vsub.s32 %v7672_v43, %v7757_v59 }
0x14aa   :  { %v3370_v37 = vsel %vm8344_vm12, %v6074_v60, %v6119_v45  ;;  %v3369_v39 = vsel %vm8345_vm15, %v6073_v10, %v6118_v61  ;;  %5060 = vmatprep.subr.bf16.mxu1 %v6295_v34  ;;  %vm8348_vm12 = vmmov %vm8343_vm10 }
0x14ab   :  { %v5061_v26 = vpack.c.bf16 %v3370_v37, %v3369_v39  ;;  %v6122_v52 = vpop.permute.xlu1 %6121  ;;  %vm7840_vm15 = vmand %vm3521_vm9, %vm3570_vm2 }
0x14ac   :  { %v6124_v2 = vunpack.i.h.bf16 %v6122_v52  ;;  %v6123_v3 = vunpack.i.l.bf16 %v6122_v52  ;;  %vm7854_vm9 = vmand %vm3520_vm1, %vm3569_vm7  ;;  %vm3523_vm7 = vcmp.ge.s32.totalorder %v3474_v49, 0 }
0x14ad   :  { %5062 = vmatpush1.bf16.msra.mxu1 %v5061_v26  ;;  %vm7858_vm2 = vmand %vm3524_vm13, %vm3573_vm8  ;;  %vm3572_vm13 = vcmp.lt.s32.totalorder %v3474_v49, 5 }
0x14ae   :  { %v3372_v19 = vsel %vm8343_vm10, %v6079_v11, %v6124_v2  ;;  %v3371_v27 = vsel %vm8348_vm12, %v6078_v51, %v6123_v3  ;;  %5063 = vmatprep.subr.bf16.mxu1 %v6295_v34  ;;  %vm3528_vm10 = vcmp.ge.s32.totalorder %v3479_v55, 0  ;;  %vm3577_vm12 = vcmp.lt.s32.totalorder %v3479_v55, 5  ;;  %vm5093_vm1 = vmpackc.low %vm7840_vm15, %vm7829_vm0 }
0x14af   :  { %v5064_v9 = vpack.c.bf16 %v3372_v19, %v3371_v27  ;;  %v6127_v22 = vpop.permute.xlu1 %6126  ;;  %vm7865_vm3 = vmand %vm3528_vm10, %vm3577_vm12  ;;  %v22_v27 = vstv %s8160_s16 }
0x14b0   :  { %v6129_v18 = vunpack.i.h.bf16 %v6127_v22  ;;  %v6128_v57 = vunpack.i.l.bf16 %v6127_v22  ;;  %vm5095_vm8 = vmpackc.low %vm7854_vm9, %vm7846_vm14  ;;  %vm3556_vm9 = vcmp.ge.s32.totalorder %v3507_v7, 0  ;;  %23 = vst [vmem:[#allocation2] sm:$0x1] %v22_v27 }
0x14b1   :  { %5065 = vmatpush1.bf16.msra.mxu1 %v5064_v9  ;;  %vm5097_vm10 = vmpackc.low %vm7865_vm3, %vm7858_vm2  ;;  %vm8361_vm3 = vnez %v8309_v50  ;;  %vm3605_vm2 = vcmp.lt.s32.totalorder %v3507_v7, 5  ;;  %v3466_v50 = vmul.u32 5, %v6813_v54 }
0x14b2   :  { %v3374_v25 = vsel %vm8357_vm4, %v6084_v12, %v6129_v18  ;;  %v3373_v28 = vsel %vm8358_vm11, %v6083_v29, %v6128_v57  ;;  %5066 = vmatprep.subr.bf16.mxu1 %v6295_v34  ;;  %vm3527_vm4 = vcmp.ge.s32.totalorder %v3478_v40, 0  ;;  %vm3576_vm11 = vcmp.lt.s32.totalorder %v3478_v40, 5  ;;  %v3176_v34 = vld [vmem:[%s8159_s13] sm:$0xff]  ;;  %vm3621_vm0 = vmand %vm3523_vm7, %vm3572_vm13 }
0x14b3   :  { %v5067_v63 = vpack.c.bf16 %v3374_v25, %v3373_v28  ;;  %vm3625_vm15 = vmand %vm3527_vm4, %vm3576_vm11  ;;  %vm8364_vm7 = vnez %v8313_v16  ;;  %vm3609_vm4 = vcmp.lt.s32.totalorder %v3511_v24, 5  ;;  %vm8366_vm11 = vnez %v8319_v23 }
0x14b4   :  { %vm5099_vm14 = vmpackc.low %vm3625_vm15, %vm3621_vm0  ;;  %v3508_v16 = vsub.s32 %v6578_v33, %v7760_v47  ;;  %v3513_v54 = vsub.s32 %v7642_v8, %v3466_v50  ;;  %v3515_v23 = vsub.s32 %v7672_v43, %v3466_v50 }
0x14b5   :  { %5068 = vmatpush1.bf16.msra.mxu1 %v5067_v63  ;;  %vm8362_vm12 = vmpackc.low %vm7693_vm5, %vm8361_vm3  ;;  %vm8370_vm3 = vnez %v8321_v30  ;;  %v3512_v30 = vsub.s32 %v6578_v33, %v3466_v50 }
0x14b6   :  { %5094 = vmatprep.subr.msk.bf16.mxu1 %vm5093_vm1, %v6296_v38  ;;  %vm8363_vm1 = vnez %v8315_v56  ;;  %vm3654_vm5 = vmand %vm3556_vm9, %vm3605_vm2  ;;  %vm8376_vm9 = vnez %v8329_v21  ;;  %v3506_v56 = vsub.s32 %v7681_v62, %v7757_v59 }
0x14b7   :  { %vm8365_vm13 = vmpackc.low %vm8363_vm1, %vm8364_vm7  ;;  %vm8372_vm1 = vnez %v8327_v17  ;;  %vm8373_vm7 = vnez %v8325_v32 }
0x14b8   :  { %3448 = vmatmul.mubr.f32.vlgmr.msra.gmra.mrb[28].mxu1 %v3176_v34 }
0x14b9   :  { %5096 = vmatpush1.bf16.msk.msra.mxu1 %vm5095_vm8, %v6296_v38  ;;  %3863 = vmatprep.mubr.f32.mxu1 %v6283_v13  ;;  %vm3560_vm8 = vcmp.ge.s32.totalorder %v3511_v24, 0 }
0x14ba   :  { %5098 = vmatprep.subr.msk.bf16.mxu1 %vm5097_vm10, %v6296_v38  ;;  %vm8367_vm10 = vnez %v8317_v15  ;;  %vm3658_vm15 = vmand %vm3560_vm8, %vm3609_vm4  ;;  %v3510_v15 = vsub.s32 %v7681_v62, %v7760_v47  ;;  %vm3553_vm8 = vcmp.ge.s32.totalorder %v3504_v14, 0  ;;  %vm3557_vm4 = vcmp.ge.s32.totalorder %v3508_v16, 0 }
0x14bb   :  { %vm8368_vm0 = vmpackc.low %vm8366_vm11, %vm8367_vm10  ;;  %vm8375_vm11 = vnez %v8331_v46  ;;  %vm3602_vm10 = vcmp.lt.s32.totalorder %v3504_v14, 5 }
0x14bc   :  { %vm5113_vm6 = vmpackc.low %vm3658_vm15, %vm3654_vm5  ;;  %vm3559_vm15 = vcmp.ge.s32.totalorder %v3510_v15, 0 }
0x14bd   :  { %5100 = vmatpush1.bf16.msk.msra.mxu1 %vm5099_vm14, %v6296_v38  ;;  %vm8369_vm14 = vnez %v8323_v44  ;;  %vm8377_vm2 = vmpackc.low %vm8375_vm11, %vm8376_vm9  ;;  %v3514_v44 = vsub.s32 %v7681_v62, %v3466_v50  ;;  %vm3611_vm11 = vcmp.lt.s32.totalorder %v3513_v54, 5  ;;  %v3378_v62 = vpop.permute.xlu0 %3377 }
0x14be   :  { %5102 = vmatprep.subr.msk.bf16.mxu1 %vm8362_vm12, %v6296_v38  ;;  %vm8371_vm12 = vmpackc.low %vm8369_vm14, %vm8370_vm3  ;;  %vm3604_vm14 = vcmp.lt.s32.totalorder %v3506_v56, 5 }
0x14bf   :  { %vm3651_vm5 = vmand %vm3553_vm8, %vm3602_vm10  ;;  %vm3613_vm8 = vcmp.lt.s32.totalorder %v3515_v23, 5 }
0x14c1   :  { %5104 = vmatpush1.bf16.msk.msra.mxu1 %vm8365_vm13, %v6296_v38  ;;  %vm8374_vm13 = vmpackc.low %vm8372_vm1, %vm8373_vm7 }
0x14c2   :  { %5106 = vmatprep.subr.msk.bf16.mxu1 %vm8368_vm0, %v6296_v38  ;;  %vm3606_vm0 = vcmp.lt.s32.totalorder %v3508_v16, 5 }
0x14c3   :  { %vm3655_vm3 = vmand %vm3557_vm4, %vm3606_vm0  ;;  %vm3561_vm4 = vcmp.ge.s32.totalorder %v3512_v30, 0  ;;  %vm3610_vm0 = vcmp.lt.s32.totalorder %v3512_v30, 5 }
0x14c4   :  { %vm5091_vm1 = vmpackc.low %vm3655_vm3, %vm3651_vm5  ;;  %vm3563_vm5 = vcmp.ge.s32.totalorder %v3514_v44, 0 }
0x14c5   :  { %5108 = vmatpush1.bf16.msk.msra.mxu1 %vm8371_vm12, %v6296_v38  ;;  %vm3608_vm12 = vcmp.lt.s32.totalorder %v3510_v15, 5  ;;  %5092 = vmatpush1.bf16.msk.msra.mxu0 %vm5091_vm1, %v6296_v38  ;;  %vm3612_vm1 = vcmp.lt.s32.totalorder %v3514_v44, 5 }
0x14c6   :  { %5110 = vmatprep.subr.msk.bf16.mxu1 %vm8374_vm13, %v6296_v38  ;;  %vm3562_vm13 = vcmp.ge.s32.totalorder %v3513_v54, 0  ;;  %vm3657_vm9 = vmand %vm3559_vm15, %vm3608_vm12 }
0x14c7   :  { %vm3660_vm3 = vmand %vm3562_vm13, %vm3611_vm11  ;;  %vm3712_vm11 = vcmask 818176  }
0x14c8   :  { %v3709_v33 = vsel %vm3660_vm3, 1.0, %v6283_v13  ;;  %vm3659_vm12 = vmand %vm3561_vm4, %vm3610_vm0  ;;  %vm8385_vm4 = vcmask 31744  }
0x14c9   :  { %5112 = vmatpush1.bf16.msk.msra.mxu1 %vm8377_vm2, %v6296_v38  ;;  %vm3564_vm2 = vcmp.ge.s32.totalorder %v3515_v23, 0  ;;  %v3708_v43 = vsel %vm3659_vm12, 1.0, %v6283_v13  ;;  %vm8386_vm0 = vmmov %vm8385_vm4  ;;  %vm8392_vm12 = vcmask 1022976  }
0x14ca   :  { %5114 = vmatprep.subr.msk.bf16.mxu1 %vm5113_vm6, %v6296_v38  ;;  %vm3555_vm6 = vcmp.ge.s32.totalorder %v3506_v56, 0  ;;  %vm8387_vm3 = vmmov %vm8386_vm0 }
0x14cb   :  { %vm3653_vm7 = vmand %vm3555_vm6, %vm3604_vm14  ;;  %vm8378_vm14 = vcmask 1043456  }
0x14cc   :  { %vm5115_vm10 = vmpackc.low %vm3657_vm9, %vm3653_vm7  ;;  %4464 = vmatprep.subr.msk.mxu0 %vm8378_vm14, %v3709_v33 }
0x14cd   :  { %5116 = vmatpush1.bf16.msk.msra.mxu1 %vm5115_vm10, %v6296_v38  ;;  %vm3662_vm6 = vmand %vm3564_vm2, %vm3613_vm8  ;;  %vm8382_vm2 = vcmask 80896   ;;  %vm8384_vm10 = vcmask 1031168  }
0x14ce   :  { %v3711_v8 = vsel %vm3662_vm6, 1.0, %v6283_v13  ;;  %vm8379_vm15 = vmmov %vm8378_vm14  ;;  %vm8390_vm6 = vcmask 1039360  }
0x14cf   :  { %4491 = vmatprep.subr.msk.mxu1 %vm8379_vm15, %v3711_v8  ;;  %vm3661_vm7 = vmand %vm3563_vm5, %vm3612_vm1  ;;  %vm8393_vm15 = vcmask 1006592  }
0x14d0   :  { %vm8380_vm9 = vmmov %vm8378_vm14  ;;  %v3710_v38 = vsel %vm3661_vm7, 1.0, %v6283_v13  ;;  %vm8391_vm14 = vcmask 1014784   ;;  %vm8394_vm7 = vcmask 998400  }
0x14d1   :  { %4465 = vmatpush1.msk.msra.mxu0 %vm8380_vm9, %v3708_v43  ;;  %vm8381_vm13 = vmmov %vm8380_vm9  ;;  %vm8395_vm9 = vcmask 990208  }
0x14d2   :  { %4492 = vmatpush1.msk.msra.mxu1 %vm8381_vm13, %v3710_v38  ;;  %vm8383_vm8 = vmmov %vm8382_vm2  ;;  %vm8396_vm13 = vcmask 982016  }
0x14d3   :  { %vm8388_vm5 = vmmov %vm8384_vm10 }
0x14d4   :  { %vm8389_vm1 = vmmov %vm8388_vm5 }
0x158b   :  { %v3449_v59 = vpop.f32.mrb[28].mxu1 }
0x158c   :  { %v3450_v47 = vadd.f32 %v3449_v59, %v3378_v62  ;;  %v3451_v32 = vpop.f32.mrb[29].mxu1 }
0x158e   :  { %v3453_v17 = vmax.f32 %v3450_v47, 0.0 }
0x1590   :  { %4466 = vmatmul.mubr.msk.f32.vlgmr.msra.gmra.mrb[30].mxu0 %vm3712_vm11, %v3453_v17  ;;  %4493 = vmatmul.mubr.msk.f32.vlgmr.msra.gmra.mrb[30].mxu1 %vm3712_vm11, %v3453_v17  ;;  %vm8397_vm11 = vcmask 973824  }
0x1591   :  { %4180 = vmatprep.mubr.f32.mxu0 %v6283_v13 }
0x1663   :  { %v3794_v21 = vpop.f32.mrb[30].mxu0  ;;  %v3865_v46 = vpop.f32.mrb[30].mxu1 }
0x1664   :  { %v3796_v48 = vpop.f32.mrb[31].mxu0  ;;  %v3867_v60 = vpop.f32.mrb[31].mxu1 }
0x1665   :  { %v6135_v10 = vpack.i.bf16 %v3796_v48, %v3794_v21  ;;  %v6130_v45 = vpack.i.bf16 %v3865_v46, %v3796_v48  ;;  %3961 = vrot.lane.b32.xlu0 %v3867_v60, %s6281_s27 }
0x1667   :  { %6131 = vrot.lane.b32.xlu1 %v6130_v45, %s6281_s27 }
0x166b   :  { %6136 = vrot.lane.b32.xlu1 %v6135_v10, %s6282_s28 }
0x16d7   :  { %v3962_v39 = vpop.permute.xlu0 %3961 }
0x16d9   :  { %v6132_v61 = vpop.permute.xlu1 %6131 }
0x16da   :  { %v6134_v31 = vunpack.i.h.bf16 %v6132_v61  ;;  %v6133_v37 = vunpack.i.l.bf16 %v6132_v61 }
0x16dc   :  { %v3964_v53 = vsel %vm8382_vm2, %v6134_v31, %v3962_v39  ;;  %v3963_v26 = vsel %vm8383_vm8, %v6133_v37, %v6134_v31  ;;  %vm8398_vm2 = vmmov %vm8395_vm9 }
0x16dd   :  { %v3968_v52 = vsel %vm8384_vm10, %v3964_v53, 0.0  ;;  %v3967_v55 = vsel %vm8385_vm4, 0.0, %v3963_v26  ;;  %v6137_v51 = vpop.permute.xlu1 %6136  ;;  %vm8399_vm8 = vmmov %vm8397_vm11 }
0x16de   :  { %v6145_v11 = vpack.i.bf16 %v3968_v52, %v3967_v55  ;;  %v6139_v2 = vunpack.i.h.bf16 %v6137_v51  ;;  %v7965_v3 = vunpack.i.l.bf16 %v6137_v51  ;;  %vm8400_vm10 = vmmov %vm8396_vm13 }
0x16df   :  { %vm8401_vm4 = vmmov %vm8386_vm0 }
0x16e0   :  { %6146 = vrot.lane.b32.xlu1 %v6145_v11, %s6286_s30  ;;  %6141 = vrot.lane.b32.xlu0 %v6145_v11, %s6285_s0  ;;  %v3878_v6 = vsel %vm8386_vm0, %v7965_v3, %v6139_v2  ;;  %v7975_v41 = vsel %vm8387_vm3, 0.0, %v7965_v3  ;;  %vm4494_vm0 = vmneg %vm8401_vm4 }
0x16e1   :  { %v7978_v49 = vsel %vm8388_vm5, %v3878_v6, 0.0  ;;  %vm8402_vm3 = vmmov %vm8390_vm6 }
0x16e2   :  { %v6185_v19 = vpack.i.bf16 %v7975_v41, %v7978_v49  ;;  %vm8403_vm5 = vmmov %vm8394_vm7 }
0x16e4   :  { %6156 = vrot.lane.b32.xlu1 %v6145_v11, %s6288_s19  ;;  %6151 = vrot.lane.b32.xlu0 %v6145_v11, %s6287_s18 }
0x16e8   :  { %6166 = vrot.lane.b32.xlu1 %v6145_v11, %s6290_s20  ;;  %6161 = vrot.lane.b32.xlu0 %v6145_v11, %s8300_s11 }
0x16ec   :  { %6176 = vrot.lane.b32.xlu1 %v6145_v11, %s6284_s29  ;;  %6171 = vrot.lane.b32.xlu0 %v6145_v11, %s8303_s1 }
0x16f0   :  { %3931 = vrot.lane.b32.xlu1 %v6283_v13, %s8303_s1  ;;  %6181 = vrot.lane.b32.xlu0 %v6145_v11, %s8305_s23  ;;  %v3871_v11 = vld [vmem:[#allocation2] sm:$0x1] }
0x16f4   :  { %6186 = vrot.lane.b32.xlu1 %v6185_v19, %s6285_s0  ;;  %3949 = vrot.lane.b32.xlu0 %v6283_v13, %s8305_s23 }
0x16f8   :  { %6191 = vrot.lane.b32.xlu1 %v6185_v19, %s6286_s30  ;;  %6196 = vrot.lane.b32.xlu0 %v6185_v19, %s6287_s18 }
0x16fc   :  { %6206 = vrot.lane.b32.xlu1 %v6185_v19, %s8300_s11  ;;  %6201 = vrot.lane.b32.xlu0 %v6185_v19, %s6288_s19 }
0x1752   :  { %v6147_v20 = vpop.permute.xlu1 %6146  ;;  %v6142_v9 = vpop.permute.xlu0 %6141 }
0x1753   :  { %v6149_v22 = vunpack.i.h.bf16 %v6147_v20  ;;  %v6148_v36 = vunpack.i.l.bf16 %v6147_v20  ;;  %v6144_v40 = vunpack.i.h.bf16 %v6142_v9  ;;  %v6143_v12 = vunpack.i.l.bf16 %v6142_v9 }
0x1755   :  { %v3980_v29 = vsel %vm8389_vm1, %v6148_v36, %v6149_v22  ;;  %v3975_v18 = vsel %vm8390_vm6, %v6143_v12, %v6144_v40  ;;  %vm8404_vm1 = vmmov %vm8403_vm5  ;;  %vm8405_vm6 = vmmov 1  }
0x1756   :  { %v6210_v57 = vpack.i.bf16 %v3980_v29, %v3975_v18  ;;  %v6157_v35 = vpop.permute.xlu1 %6156  ;;  %v6152_v58 = vpop.permute.xlu0 %6151  ;;  %vm8415_vm4 = vmmov %vm8404_vm1 }
0x1757   :  { %v6159_v25 = vunpack.i.h.bf16 %v6157_v35  ;;  %v6158_v28 = vunpack.i.l.bf16 %v6157_v35  ;;  %v6154_v42 = vunpack.i.h.bf16 %v6152_v58  ;;  %v6153_v63 = vunpack.i.l.bf16 %v6152_v58 }
0x1758   :  { %6211 = vrot.lane.b32.xlu0 %v6210_v57, %s6290_s20 }
0x1759   :  { %v3990_v34 = vsel %vm8391_vm14, %v6158_v28, %v6159_v25  ;;  %v3985_v7 = vsel %vm8392_vm12, %v6153_v63, %v6154_v42  ;;  %v6245_v31 = vpack.i.bf16 %v6154_v42, %v6149_v22  ;;  %vm5120_vm14 = vmpackc.low %vm8405_vm6, %vm4494_vm0  ;;  %vm8406_vm12 = vcmask 1031168  }
0x175a   :  { %v6215_v24 = vpack.i.bf16 %v3990_v34, %v3985_v7  ;;  %v8000_v50 = vpop.permute.xlu1 %6166  ;;  %v6162_v14 = vpop.permute.xlu0 %6161  ;;  %vm8416_vm0 = vmmov %vm8404_vm1 }
0x175b   :  { %v6164_v16 = vunpack.i.h.bf16 %v6162_v14  ;;  %v6163_v56 = vunpack.i.l.bf16 %v6162_v14  ;;  %v8005_v15 = vunpack.i.h.bf16 %v8000_v50  ;;  %v6168_v54 = vunpack.i.l.bf16 %v8000_v50  ;;  %vm8420_vm6 = vmmov %vm8416_vm0 }
0x175c   :  { %6216 = vrot.lane.b32.xlu1 %v6215_v24, %s6290_s20  ;;  %6226 = vrot.lane.b32.xlu0 %v6185_v19, %s6284_s29 }
0x175d   :  { %v3995_v23 = vsel %vm8393_vm15, %v6163_v56, %v6164_v16  ;;  %v8014_v59 = vsel %vm8394_vm7, %v6168_v54, %v8005_v15  ;;  %v6250_v37 = vpack.i.bf16 %v6164_v16, %v6159_v25  ;;  %v4094_v35 = vsel %vm8403_vm5, %v7978_v49, %v6168_v54  ;;  %vm8408_vm7 = vmmov %vm8404_vm1 }
0x175e   :  { %v6230_v30 = vpack.i.bf16 %v7978_v49, %v3995_v23  ;;  %v6177_v44 = vpop.permute.xlu1 %6176  ;;  %v6172_v33 = vpop.permute.xlu0 %6171  ;;  %vm8407_vm15 = vcmask 1022976   ;;  %vm8418_vm5 = vcmask 982016  }
0x175f   :  { %v6179_v8 = vunpack.i.h.bf16 %v6177_v44  ;;  %v6178_v43 = vunpack.i.l.bf16 %v6177_v44  ;;  %v6174_v38 = vunpack.i.h.bf16 %v6172_v33  ;;  %v6173_v62 = vunpack.i.l.bf16 %v6172_v33 }
0x1760   :  { %6221 = vrot.lane.b32.xlu1 %v6185_v19, %s8303_s1  ;;  %6231 = vrot.lane.b32.xlu0 %v6230_v30, %s6290_s20 }
0x1761   :  { %v4005_v47 = vsel %vm8395_vm9, %v6173_v62, %v6174_v38  ;;  %v4011_v21 = vsel %vm8396_vm13, %v6178_v43, %v6179_v8  ;;  %v4012_v26 = vsel %vm8400_vm10, %v6179_v8, %v6510_v4  ;;  %vm8409_vm9 = vmmov %vm8404_vm1  ;;  %vm8410_vm13 = vcmask 1006592  }
0x1762   :  { %v6235_v32 = vpack.i.bf16 %v4005_v47, %v8014_v59  ;;  %v6182_v17 = vpop.permute.xlu0 %6181  ;;  %v6240_v60 = vpack.i.bf16 %v4011_v21, %v7975_v41  ;;  %v8026_v45 = vpop.permute.xlu1 %3931  ;;  %vm8414_vm10 = vcmask 990208  }
0x1763   :  { %v6184_v46 = vunpack.i.h.bf16 %v6182_v17  ;;  %v6183_v48 = vunpack.i.l.bf16 %v6182_v17  ;;  %v4006_v39 = vsel %vm8398_vm2, %v6174_v38, %v8026_v45  ;;  %vm8412_vm2 = vmmov %vm8404_vm1 }
0x1764   :  { %3947 = vrot.lane.b32.xlu1 %v7978_v49, %s8305_s23  ;;  %6236 = vrot.lane.b32.xlu0 %v6235_v32, %s6290_s20  ;;  %v6255_v52 = vpack.i.bf16 %v4006_v39, %v8005_v15 }
0x1765   :  { %v4017_v10 = vsel %vm8397_vm11, %v6183_v48, %v6184_v46  ;;  %vm8411_vm11 = vcmask 1014784  }
0x1766   :  { %v8028_v61 = vpop.permute.xlu0 %3949  ;;  %v6187_v51 = vpop.permute.xlu1 %6186 }
0x1767   :  { %v4018_v53 = vsel %vm8399_vm8, %v6184_v46, %v8028_v61  ;;  %v6189_v19 = vunpack.i.h.bf16 %v6187_v51  ;;  %v6188_v27 = vunpack.i.l.bf16 %v6187_v51  ;;  %vm8413_vm8 = vmmov %vm8404_vm1 }
0x1768   :  { %6241 = vrot.lane.b32.xlu1 %v6240_v60, %s6290_s20  ;;  %4051 = vrot.lane.b32.xlu0 %v4017_v10, %s6290_s20  ;;  %v6260_v55 = vpack.i.bf16 %v4018_v53, %v4012_v26 }
0x1769   :  { %v3889_v18 = vsel %vm8402_vm3, %v6189_v19, %v6188_v27  ;;  %vm8417_vm3 = vcmask 973824  }
0x176a   :  { %v6197_v2 = vpop.permute.xlu0 %6196  ;;  %v6192_v6 = vpop.permute.xlu1 %6191  ;;  %v5119_v63 = vpack.c.bf16 %v3889_v18, %v7965_v3 }
0x176b   :  { %v6194_v20 = vunpack.i.h.bf16 %v6192_v6  ;;  %v6193_v36 = vunpack.i.l.bf16 %v6192_v6  ;;  %v6198_v12 = vunpack.i.l.bf16 %v6197_v2 }
0x176c   :  { %3945 = vrot.lane.b32.xlu1 %v7975_v41, %s8305_s23  ;;  %4021 = vrot.lane.b32.xlu0 %v6144_v40, %s6290_s20  ;;  %v6199_v40 = vunpack.i.h.bf16 %v6197_v2 }
0x176d   :  { %v3896_v34 = vsel %vm8406_vm12, %v6194_v20, %v6193_v36  ;;  %vm8422_vm12 = vmmov %vm8416_vm0 }
0x176e   :  { %v6202_v41 = vpop.permute.xlu0 %6201  ;;  %v6207_v9 = vpop.permute.xlu1 %6206  ;;  %v3903_v7 = vsel %vm8407_vm15, %v6199_v40, %v6198_v12  ;;  %vm8423_vm15 = vmmov %vm8417_vm3 }
0x176f   :  { %v6209_v50 = vunpack.i.h.bf16 %v6207_v9  ;;  %v6208_v49 = vunpack.i.l.bf16 %v6207_v9  ;;  %v6204_v14 = vunpack.i.h.bf16 %v6202_v41  ;;  %v6203_v16 = vunpack.i.l.bf16 %v6202_v41 }
0x1770   :  { %6246 = vrot.lane.b32.xlu1 %v6245_v31, %s6290_s20  ;;  %6251 = vrot.lane.b32.xlu0 %v6250_v37, %s6290_s20  ;;  %v5124_v33 = vpack.c.bf16 %v3903_v7, %v3896_v34 }
0x1771   :  { %v3917_v43 = vsel %vm8410_vm13, %v6209_v50, %v6208_v49  ;;  %v3910_v38 = vsel %vm8411_vm11, %v6204_v14, %v6203_v16  ;;  %vm8426_vm13 = vmmov %vm8416_vm0 }
0x1772   :  { %v5128_v48 = vpack.c.bf16 %v3917_v43, %v3910_v38  ;;  %vm8427_vm11 = vmmov %vm8416_vm0 }
0x1774   :  { %6256 = vrot.lane.b32.xlu1 %v6255_v52, %s6290_s20  ;;  %6261 = vrot.lane.b32.xlu0 %v6260_v55, %s6290_s20 }
0x1778   :  { %4106 = vperm.xlu1 %5334, %v3871_v11  }
0x17ca   :  { %v8044_v22 = vpop.permute.xlu0 %6211 }
0x17cb   :  { %v6213_v29 = vunpack.i.l.bf16 %v8044_v22  ;;  %v6214_v57 = vunpack.i.h.bf16 %v8044_v22 }
0x17cd   :  { %v4095_v58 = vsel %vm8404_vm1, %v6188_v27, %v6213_v29  ;;  %v4096_v54 = vsel %vm8408_vm7, %v6193_v36, %v6214_v57  ;;  %vm8419_vm1 = vmmov %vm8414_vm10 }
0x17ce   :  { %v8056_v25 = vpop.permute.xlu1 %6216  ;;  %v6227_v28 = vpop.permute.xlu0 %6226  ;;  %v5117_v42 = vpack.c.bf16 %v4095_v58, %v4094_v35  ;;  %vm8424_vm7 = vmmov %vm8418_vm5 }
0x17cf   :  { %v6218_v24 = vunpack.i.l.bf16 %v8056_v25  ;;  %v6219_v56 = vunpack.i.h.bf16 %v8056_v25  ;;  %v6228_v37 = vunpack.i.l.bf16 %v6227_v28 }
0x17d0   :  { %5118 = vmatprep.subr.bf16.mxu0 %v5117_v42 }
0x17d1   :  { %5121 = vmatpush1.bf16.msk.msra.mxu0 %vm5120_vm14, %v5119_v63  ;;  %v4097_v3 = vsel %vm8409_vm9, %v6198_v12, %v6218_v24  ;;  %v4098_v47 = vsel %vm8412_vm2, %v6203_v16, %v6219_v56  ;;  %v3942_v19 = vsel %vm8418_vm5, %v6228_v37, %v6510_v4  ;;  %vm8421_vm14 = vmmov %vm8416_vm0  ;;  %vm8428_vm2 = vcmask 654336  }
0x17d2   :  { %v6222_v23 = vpop.permute.xlu1 %6221  ;;  %v8069_v30 = vpop.permute.xlu0 %6231  ;;  %v5122_v44 = vpack.c.bf16 %v4097_v3, %v4096_v54  ;;  %vm8425_vm9 = vmmov %vm8416_vm0 }
0x17d3   :  { %v6233_v8 = vunpack.i.l.bf16 %v8069_v30  ;;  %v6223_v62 = vunpack.i.l.bf16 %v6222_v23  ;;  %v6234_v60 = vunpack.i.h.bf16 %v8069_v30  ;;  %v6224_v53 = vunpack.i.h.bf16 %v6222_v23  ;;  %vm8433_vm5 = vmmov %vm8416_vm0 }
0x17d4   :  { %5123 = vmatprep.subr.bf16.mxu0 %v5122_v44 }
0x17d5   :  { %5125 = vmatpush1.bf16.msra.mxu0 %v5124_v33  ;;  %v4099_v32 = vsel %vm8413_vm8, %v6208_v49, %v6233_v8  ;;  %v3934_v39 = vsel %vm8414_vm10, %v6223_v62, %v8026_v45  ;;  %v6229_v45 = vunpack.i.h.bf16 %v6227_v28  ;;  %v3933_v27 = vsel %vm8419_vm1, %v6224_v53, %v6223_v62  ;;  %v3870_v49 = vld [vmem:[%s8161_s15] sm:$0x1]  ;;  %vm8429_vm8 = vmmov %vm8416_vm0 }
0x17d6   :  { %v3948_v17 = vpop.permute.xlu1 %3947  ;;  %v8080_v21 = vpop.permute.xlu0 %6236  ;;  %v5126_v46 = vpack.c.bf16 %v4099_v32, %v4098_v47  ;;  %vm8430_vm10 = vmmov %vm8416_vm0 }
0x17d7   :  { %v6239_v10 = vunpack.i.h.bf16 %v8080_v21  ;;  %v6238_v31 = vunpack.i.l.bf16 %v8080_v21  ;;  %v3952_v41 = vsel %vm8417_vm3, %v3948_v17, %v8028_v61  ;;  %v3941_v61 = vsel %vm8424_vm7, %v6229_v45, %v6228_v37  ;;  %vm8432_vm3 = vmmov %vm8416_vm0 }
0x17d8   :  { %5127 = vmatprep.subr.bf16.mxu0 %v5126_v46  ;;  %vm8434_vm1 = vmmov %vm8428_vm2 }
0x17d9   :  { %5129 = vmatpush1.bf16.msra.mxu0 %v5128_v48  ;;  %v4100_v26 = vsel %vm8415_vm4, %v6234_v60, %v6238_v31  ;;  %v4101_v52 = vsel %vm8416_vm0, %v3934_v39, %v6239_v10  ;;  %vm8431_vm4 = vmmov %vm8416_vm0 }
0x17da   :  { %v8093_v55 = vpop.permute.xlu1 %6241  ;;  %v4052_v11 = vpop.permute.xlu0 %4051  ;;  %v5130_v51 = vpack.c.bf16 %v4101_v52, %v4100_v26 }
0x17db   :  { %v6244_v2 = vunpack.i.h.bf16 %v8093_v55  ;;  %v6243_v6 = vunpack.i.l.bf16 %v8093_v55  ;;  %v4103_v36 = vsel %vm8422_vm12, %v3952_v41, %v4052_v11 }
0x17dc   :  { %5131 = vmatprep.subr.bf16.mxu0 %v5130_v51 }
0x17dd   :  { %v3924_v20 = vsel %vm8420_vm6, %v6243_v6, %v6234_v60  ;;  %v4102_v9 = vsel %vm8421_vm14, %v3942_v19, %v6244_v2  ;;  %vm4313_vm6 = vcmp.lt.s32.totalorder %v62_v0, 500 }
0x17de   :  { %v5132_v40 = vpack.c.bf16 %v3933_v27, %v3924_v20  ;;  %v5134_v12 = vpack.c.bf16 %v4103_v36, %v4102_v9  ;;  %v3946_v18 = vpop.permute.xlu1 %3945  ;;  %v4022_v35 = vpop.permute.xlu0 %4021 }
0x17df   :  { %v3951_v58 = vsel %vm8423_vm15, %v3946_v18, %v3948_v17  ;;  %v4055_v42 = vsel %vm8425_vm9, %v6213_v29, %v4022_v35  ;;  %v5138_v63 = vpack.c.bf16 %v4022_v35, %v8005_v15 }
0x17e0   :  { %5133 = vmatpush1.bf16.msra.mxu0 %v5132_v40  ;;  %v5136_v4 = vpack.c.bf16 %v3951_v58, %v3941_v61  ;;  %v5140_v14 = vpack.c.bf16 %v4055_v42, %v8014_v59 }
0x17e1   :  { %5135 = vmatprep.subr.bf16.mxu0 %v5134_v12 }
0x17e2   :  { %v6247_v28 = vpop.permute.xlu1 %6246  ;;  %v6252_v50 = vpop.permute.xlu0 %6251 }
0x17e3   :  { %v6249_v34 = vunpack.i.h.bf16 %v6247_v28  ;;  %v6248_v7 = vunpack.i.l.bf16 %v6247_v28  ;;  %v6253_v16 = vunpack.i.l.bf16 %v6252_v50  ;;  %v6254_v3 = vunpack.i.h.bf16 %v6252_v50 }
0x17e4   :  { %5137 = vmatpush1.bf16.msra.mxu0 %v5136_v4  ;;  %v6300_v4 = vmov 1966171168  }
0x17e5   :  { %5139 = vmatprep.subr.bf16.mxu0 %v5138_v63  ;;  %v4056_v54 = vsel %vm8426_vm13, %v6214_v57, %v6248_v7  ;;  %v4057_v15 = vsel %vm8427_vm11, %v6218_v24, %v6249_v34  ;;  %v5142_v29 = vpack.c.bf16 %v6249_v34, %v6248_v7  ;;  %v4058_v59 = vsel %vm8429_vm8, %v6219_v56, %v6253_v16 }
0x17e6   :  { %v6257_v23 = vpop.permute.xlu1 %6256  ;;  %v5144_v44 = vpack.c.bf16 %v4057_v15, %v4056_v54  ;;  %v4059_v22 = vsel %vm8430_vm10, %v6233_v8, %v6254_v3  ;;  %v5146_v57 = vpack.c.bf16 %v6254_v3, %v6253_v16  ;;  %v6262_v43 = vpop.permute.xlu0 %6261  ;;  %v4289_v28 = vunpack.c.l.s4 %v6300_v4 }
0x17e7   :  { %4496 = vmatmul.mubr.msk.f32.vlgmr.msra.gmra.mrb[32].mxu0 %vm8428_vm2, %v3870_v49  ;;  %v6259_v24 = vunpack.i.h.bf16 %v6257_v23  ;;  %v6258_v33 = vunpack.i.l.bf16 %v6257_v23  ;;  %v5148_v38 = vpack.c.bf16 %v4059_v22, %v4058_v59  ;;  %v6264_v62 = vunpack.i.h.bf16 %v6262_v43 }
0x17e8   :  { %5141 = vmatpush1.bf16.msra.mxu0 %v5140_v14  ;;  %4251 = vmatprep.mubr.f32.mxu0 %v6283_v13  ;;  %v6263_v30 = vunpack.i.l.bf16 %v6262_v43  ;;  %v4290_v42 = vunpack.c.0.s8 %v4289_v28 }
0x17e9   :  { %5143 = vmatprep.subr.bf16.mxu0 %v5142_v29  ;;  %v4060_v13 = vsel %vm8431_vm4, %v6238_v31, %v6258_v33  ;;  %v4061_v25 = vsel %vm8416_vm0, %v6239_v10, %v6259_v24  ;;  %v5150_v56 = vpack.c.bf16 %v6259_v24, %v6258_v33  ;;  %v4063_v47 = vsel %vm8432_vm3, %v4052_v11, %v6264_v62 }
0x17ea   :  { %v5152_v8 = vpack.c.bf16 %v4061_v25, %v4060_v13  ;;  %v4062_v32 = vsel %vm8433_vm5, %v6244_v2, %v6263_v30  ;;  %v5154_v17 = vpack.c.bf16 %v6264_v62, %v6263_v30  ;;  %v4293_v34 = vsub.s32 %v4290_v42, %v6392_v1 }
0x17eb   :  { %v5156_v46 = vpack.c.bf16 %v4063_v47, %v4062_v32 }
0x17ec   :  { %5145 = vmatpush1.bf16.msra.mxu0 %v5144_v44 }
0x17ed   :  { %5147 = vmatprep.subr.bf16.mxu0 %v5146_v57 }
0x17f0   :  { %5149 = vmatpush1.bf16.msra.mxu0 %v5148_v38 }
0x17f1   :  { %5151 = vmatprep.subr.bf16.mxu0 %v5150_v56 }
0x17f4   :  { %5153 = vmatpush1.bf16.msra.mxu0 %v5152_v8 }
0x17f5   :  { %5155 = vmatprep.subr.bf16.mxu0 %v5154_v17 }
0x17f7   :  { %v4107_v48 = vpop.permute.xlu1 %4106 }
0x17f8   :  { %5157 = vmatpush1.bf16.msra.mxu0 %v5156_v46  ;;  %v4112_v21 = vrot.slane %v4107_v48, %v64_v5 }
0x17fb   :  { %4497 = vmatmul.mubr.msk.f32.vlgmr.msra.gmra.mrb[34].mxu0 %vm8434_vm1, %v3870_v49 }
0x18ba   :  { %v4182_v60 = vpop.f32.mrb[32].mxu0 }
0x18bb   :  { %v4183_v10 = vadd.f32 %v4182_v60, %v4112_v21  ;;  %v4184_v31 = vpop.f32.mrb[33].mxu0 }
0x18bc   :  { %v4185_v37 = vadd.f32 %v4184_v31, %v4112_v21 }
0x18bd   :  { %v4258_v39 = vsub.f32 0.0, %v4183_v10 }
0x18be   :  { %v4259_v53 = vsub.f32 0.0, %v4185_v37 }
0x18bf   :  { %v4262_v26 = vmul.f32 1.442695, %v4258_v39 }
0x18c0   :  { %v4264_v52 = vmul.f32 1.442695, %v4259_v53 }
0x18c1   :  { %6265 = vpow2.f32 %v4262_v26 }
0x18c2   :  { %6267 = vpow2.f32 %v4264_v52 }
0x18cb   :  { %v6266_v55 = vpop.eup %6265 }
0x18cc   :  { %v6268_v11 = vpop.eup %6267  ;;  %v4270_v51 = vadd.f32 1.0, %v6266_v55 }
0x18cd   :  { %v4271_v2 = vadd.f32 1.0, %v6268_v11 }
0x18ce   :  { %6269 = vrcp.f32 %v4270_v51  ;;  %v4253_v6 = vpop.f32.mrb[34].mxu0 }
0x18cf   :  { %6271 = vrcp.f32 %v4271_v2  ;;  %v4254_v45 = vadd.f32 %v4253_v6, %v4112_v21  ;;  %v4255_v41 = vpop.f32.mrb[35].mxu0 }
0x18d0   :  { %v4256_v5 = vadd.f32 %v4255_v41, %v4112_v21 }
0x18d1   :  { %v4260_v19 = vsub.f32 0.0, %v4254_v45 }
0x18d2   :  { %v4261_v27 = vsub.f32 0.0, %v4256_v5 }
0x18d3   :  { %v4266_v20 = vmul.f32 1.442695, %v4260_v19 }
0x18d4   :  { %v4268_v9 = vmul.f32 1.442695, %v4261_v27 }
0x18d5   :  { %6273 = vpow2.f32 %v4266_v20 }
0x18d6   :  { %6275 = vpow2.f32 %v4268_v9 }
0x18d8   :  { %v6270_v36 = vpop.eup %6269 }
0x18d9   :  { %v6272_v40 = vpop.eup %6271 }
0x18da   :  { %v4286_v12 = vcombine.low %v6270_v36, %v6272_v40 }
0x18dc   :  { %v4294_v49 = vrot.slane %v4286_v12, %v4293_v34 }
0x18df   :  { %v6274_v18 = vpop.eup %6273 }
0x18e0   :  { %v6276_v35 = vpop.eup %6275  ;;  %v4272_v58 = vadd.f32 1.0, %v6274_v18 }
0x18e1   :  { %v4273_v61 = vadd.f32 1.0, %v6276_v35 }
0x18e2   :  { %6277 = vrcp.f32 %v4272_v58 }
0x18e3   :  { %6279 = vrcp.f32 %v4273_v61 }
0x18ec   :  { %v6278_v63 = vpop.eup %6277 }
0x18ed   :  { %v6280_v7 = vpop.eup %6279 }
0x18ee   :  { %v4287_v50 = vcombine.low %v6278_v63, %v6280_v7 }
0x18f0   :  { %v4301_v14 = vrot.slane %v4287_v50, %v4293_v34 }
0x18f2   :  { %v4302_v16 = vcombine.low %v4294_v49, %v4301_v14 }
0x18f4   :  { %v4309_v54 = vrot.slane %v4302_v16, %v4293_v34 }
0x18f6   :  { %4315 = vst.msk [vmem:[%s8162_s17] sm:$0xf] %vm4313_vm6, %v4309_v54 }

</bundles_post_ra>
